<compile_context>
chip_gen: v5e
topology: v5e:2x2
jax: 0.10.0
libtpu: 0.0.40
codegen_flags: <defaults>
</compile_context>

<pallas_src>
import functools

import jax
import jax.numpy as jnp
from jax.experimental import pallas as pl
from jax.experimental.pallas import tpu as pltpu

PAD = 3
KSIZE = 7


def _reflect_pad_2d(p, h, w):
    """Edge-excluding reflect pad by PAD on both dims of an (h, w) f32 map."""
    left = jnp.concatenate([p[:, i:i + 1] for i in range(PAD, 0, -1)], axis=1)
    right = jnp.concatenate([p[:, w - 1 - i:w - i] for i in range(1, PAD + 1)],
                            axis=1)
    pw = jnp.concatenate([left, p, right], axis=1)                  # (h, w+6)
    top = jnp.concatenate([pw[i:i + 1, :] for i in range(PAD, 0, -1)], axis=0)
    bot = jnp.concatenate([pw[h - 1 - i:h - i, :] for i in range(1, PAD + 1)],
                          axis=0)
    return jnp.concatenate([top, pw, bot], axis=0)                  # (h+6, w+6)


def _sam_kernel(w_ref, b_ref, x_ref, o_ref, *, H, W, output_weight):
    # w_ref: SMEM (2*7*7,) f32   b_ref: SMEM (1,) f32
    # x_ref: (1, C, H*W) input dtype
    # o_ref: (1, C, H*W) input dtype   OR  (1, 1, H*W) if output_weight
    x = x_ref[0]                                   # (C, HW), lane-dense
    xf = x.astype(jnp.float32)

    # ---- channel pool (reduce over the C / sublane axis) ----
    pmax = jnp.max(xf, axis=0, keepdims=True)      # (1, HW)
    pmean = jnp.mean(xf, axis=0, keepdims=True)    # (1, HW)

    # ---- unflatten the two tiny pooled maps to (H, W) for the conv ----
    def unflatten(v):                              # (1, HW) -> (H, W)
        return jnp.concatenate([v[:, i * W:(i + 1) * W] for i in range(H)],
                               axis=0)

    # ---- in-kernel reflection pad (nn.ReflectionPad2d(3)) ----
    padded = [_reflect_pad_2d(unflatten(pmax), H, W),
              _reflect_pad_2d(unflatten(pmean), H, W)]      # 2 x (H+6, W+6)

    # ---- 7x7 conv (2 -> 1 ch) + bias: 7 pre-shifted lane planes per channel,
    #      4 independent partial accumulators ----
    accs = [jnp.zeros((H, W), jnp.float32) for _ in range(4)]
    for c in range(2):
        shifted = [padded[c][:, dj:dj + W] for dj in range(KSIZE)]  # 7x(H+6, W)
        for di in range(KSIZE):
            a = 2 * c + (di & 1)
            for dj in range(KSIZE):
                wv = w_ref[c * KSIZE * KSIZE + di * KSIZE + dj]
                accs[a] = accs[a] + wv * shifted[dj][di:di + H, :]
    conv = (accs[0] + accs[1]) + (accs[2] + accs[3]) + b_ref[0]
    scale = jax.nn.sigmoid(conv)                   # (H, W) f32

    # ---- flatten scale back to lane-dense layout and apply / emit ----
    scale_flat = jnp.concatenate([scale[i:i + 1, :] for i in range(H)], axis=1)
    if output_weight:
        o_ref[0] = scale_flat.astype(o_ref.dtype)                   # (1, HW)
    else:
        o_ref[0] = (xf * scale_flat).astype(o_ref.dtype)            # (C, HW)


def sam_forward(x, weight, bias, output_weight=False):
    """SAM forward: x * sigmoid(conv7x7(reflect_pad(channel_pool(x))))."""
    N, C, H, W = x.shape
    assert H > PAD and W > PAD, "reflection pad of 3 requires H, W >= 4"
    HW = H * W

    x_flat = x.reshape(N, C, HW)                       # lane-dense view (free)
    w_flat = weight.reshape(-1).astype(jnp.float32)    # (2*7*7,)
    b_flat = bias.reshape(-1).astype(jnp.float32)      # (1,)

    out_c = 1 if output_weight else C
    block_bytes = (C + out_c) * HW * jnp.dtype(x.dtype).itemsize
    vmem_limit = int(min(100 * 2**20, max(16 * 2**20, 8 * block_bytes)))

    kernel = functools.partial(_sam_kernel, H=H, W=W,
                               output_weight=output_weight)

    out_flat = pl.pallas_call(
        kernel,
        out_shape=jax.ShapeDtypeStruct((N, out_c, HW), x.dtype),
        grid=(N,),
        in_specs=[
            pl.BlockSpec(memory_space=pltpu.MemorySpace.SMEM),  # conv weights
            pl.BlockSpec(memory_space=pltpu.MemorySpace.SMEM),  # conv bias
            pl.BlockSpec((1, C, HW), lambda n: (n, 0, 0)),
        ],
        out_specs=pl.BlockSpec((1, out_c, HW), lambda n: (n, 0, 0)),
        compiler_params=pltpu.CompilerParams(
            dimension_semantics=("parallel",),
            vmem_limit_bytes=vmem_limit,
        ),
    )(w_flat, b_flat, x_flat)

    return out_flat.reshape(N, out_c, H, W)


def sam_reference(x, weight, bias, output_weight=False):
    """Pure-JAX reference mirroring the PyTorch module."""
    xf = x.astype(jnp.float32)
    pooled = jnp.concatenate(
        [jnp.max(xf, axis=1, keepdims=True), jnp.mean(xf, axis=1, keepdims=True)],
        axis=1,
    )
    padded = jnp.pad(pooled, ((0, 0), (0, 0), (PAD, PAD), (PAD, PAD)),
                     mode="reflect")
    conv = jax.lax.conv_general_dilated(
        padded, weight.astype(jnp.float32), window_strides=(1, 1),
        padding="VALID", dimension_numbers=("NCHW", "OIHW", "NCHW"),
    ) + bias.reshape(1, 1, 1, 1).astype(jnp.float32)
    scale = jax.nn.sigmoid(conv)
    if output_weight:
        return scale.astype(x.dtype)
    return (xf * scale).astype(x.dtype)


if __name__ == "__main__":
    key = jax.random.PRNGKey(0)
    kx, kw, kb = jax.random.split(key, 3)

    N, C, H, W = 2, 4, 16, 16
    x = jax.random.normal(kx, (N, C, H, W), dtype=jnp.float32)

    # nn.Conv2d(2, 1, 7) default init: uniform(-1/sqrt(fan_in), 1/sqrt(fan_in))
    fan_in = 2 * KSIZE * KSIZE
    bound = 1.0 / (fan_in ** 0.5)
    weight = jax.random.uniform(kw, (1, 2, KSIZE, KSIZE),
                                minval=-bound, maxval=bound, dtype=jnp.float32)
    bias = jax.random.uniform(kb, (1,), minval=-bound, maxval=bound,
                              dtype=jnp.float32)

    # Default branch: out = x * scale
    out = jax.block_until_ready(sam_forward(x, weight, bias))
    ref = sam_reference(x, weight, bias)
    assert out.shape == (N, C, H, W)
    assert out.dtype == x.dtype
    assert jnp.allclose(out, ref, rtol=1e-5, atol=1e-5), (
        f"max abs err {jnp.max(jnp.abs(out - ref))}"
    )

    # output_weight=True branch: returns only the attention map.
    scale = jax.block_until_ready(
        sam_forward(x, weight, bias, output_weight=True))
    scale_ref = sam_reference(x, weight, bias, output_weight=True)
    assert scale.shape == (N, 1, H, W)
    assert jnp.allclose(scale, scale_ref, rtol=1e-5, atol=1e-5), (
        f"max abs err {jnp.max(jnp.abs(scale - scale_ref))}"
    )

    print("KERNEL_OK")
</pallas_src>

<mosaic_0001>
module attributes {stable_mosaic.version = 11 : i64} {
  func.func @_sam_kernel(%arg0: i32, %arg1: memref<98xf32, #tpu.memory_space<smem>>, %arg2: memref<1xf32, #tpu.memory_space<smem>>, %arg3: memref<1x4x256xf32, #tpu.memory_space<vmem>>, %arg4: memref<1x4x256xf32, #tpu.memory_space<vmem>>) attributes {dimension_semantics = [#tpu.dimension_semantics<parallel>], iteration_bounds = array<i64: 2>, scalar_prefetch = 0 : i64, scratch_operands = 0 : i64, tpu.core_type = #tpu.core_type<tc>, window_params = [{transform_indices = @transform_0, window_bounds = array<i64: 98>}, {transform_indices = @transform_1, window_bounds = array<i64: 1>}, {transform_indices = @transform_2, window_bounds = array<i64: 1, 4, 256>}, {transform_indices = @transform_3, window_bounds = array<i64: 1, 4, 256>}]} {
    %c0 = arith.constant 0 : index
    %c0_0 = arith.constant 0 : index
    %c0_1 = arith.constant 0 : index
    %0 = vector.load %arg3[%c0, %c0_0, %c0_1] : memref<1x4x256xf32, #tpu.memory_space<vmem>>, vector<1x4x256xf32>
    %1 = vector.shape_cast %0 : vector<1x4x256xf32> to vector<4x256xf32>
    %cst = arith.constant dense<0xFF800000> : vector<256xf32>
    %2 = vector.multi_reduction <maximumf>, %1, %cst [0] : vector<4x256xf32> to vector<256xf32>
    %3 = vector.shape_cast %2 : vector<256xf32> to vector<1x256xf32>
    %cst_2 = arith.constant dense<0.000000e+00> : vector<256xf32>
    %4 = vector.multi_reduction <add>, %1, %cst_2 [0] : vector<4x256xf32> to vector<256xf32>
    %5 = vector.shape_cast %4 : vector<256xf32> to vector<1x256xf32>
    %cst_3 = arith.constant 4.000000e+00 : f32
    %6 = vector.broadcast %cst_3 : f32 to vector<1x256xf32>
    %7 = arith.divf %5, %6 : vector<1x256xf32>
    %8 = vector.extract_strided_slice %3 {offsets = [0, 0], sizes = [1, 16], strides = [1, 1]} : vector<1x256xf32> to vector<1x16xf32>
    %9 = vector.extract_strided_slice %3 {offsets = [0, 16], sizes = [1, 16], strides = [1, 1]} : vector<1x256xf32> to vector<1x16xf32>
    %10 = vector.extract_strided_slice %3 {offsets = [0, 32], sizes = [1, 16], strides = [1, 1]} : vector<1x256xf32> to vector<1x16xf32>
    %11 = vector.extract_strided_slice %3 {offsets = [0, 48], sizes = [1, 16], strides = [1, 1]} : vector<1x256xf32> to vector<1x16xf32>
    %12 = vector.extract_strided_slice %3 {offsets = [0, 64], sizes = [1, 16], strides = [1, 1]} : vector<1x256xf32> to vector<1x16xf32>
    %13 = vector.extract_strided_slice %3 {offsets = [0, 80], sizes = [1, 16], strides = [1, 1]} : vector<1x256xf32> to vector<1x16xf32>
    %14 = vector.extract_strided_slice %3 {offsets = [0, 96], sizes = [1, 16], strides = [1, 1]} : vector<1x256xf32> to vector<1x16xf32>
    %15 = vector.extract_strided_slice %3 {offsets = [0, 112], sizes = [1, 16], strides = [1, 1]} : vector<1x256xf32> to vector<1x16xf32>
    %16 = vector.extract_strided_slice %3 {offsets = [0, 128], sizes = [1, 16], strides = [1, 1]} : vector<1x256xf32> to vector<1x16xf32>
    %17 = vector.extract_strided_slice %3 {offsets = [0, 144], sizes = [1, 16], strides = [1, 1]} : vector<1x256xf32> to vector<1x16xf32>
    %18 = vector.extract_strided_slice %3 {offsets = [0, 160], sizes = [1, 16], strides = [1, 1]} : vector<1x256xf32> to vector<1x16xf32>
    %19 = vector.extract_strided_slice %3 {offsets = [0, 176], sizes = [1, 16], strides = [1, 1]} : vector<1x256xf32> to vector<1x16xf32>
    %20 = vector.extract_strided_slice %3 {offsets = [0, 192], sizes = [1, 16], strides = [1, 1]} : vector<1x256xf32> to vector<1x16xf32>
    %21 = vector.extract_strided_slice %3 {offsets = [0, 208], sizes = [1, 16], strides = [1, 1]} : vector<1x256xf32> to vector<1x16xf32>
    %22 = vector.extract_strided_slice %3 {offsets = [0, 224], sizes = [1, 16], strides = [1, 1]} : vector<1x256xf32> to vector<1x16xf32>
    %23 = vector.extract_strided_slice %3 {offsets = [0, 240], sizes = [1, 16], strides = [1, 1]} : vector<1x256xf32> to vector<1x16xf32>
    %24 = tpu.concatenate %8, %9, %10, %11, %12, %13, %14, %15, %16, %17, %18, %19, %20, %21, %22, %23 in 0 : vector<1x16xf32>, vector<1x16xf32>, vector<1x16xf32>, vector<1x16xf32>, vector<1x16xf32>, vector<1x16xf32>, vector<1x16xf32>, vector<1x16xf32>, vector<1x16xf32>, vector<1x16xf32>, vector<1x16xf32>, vector<1x16xf32>, vector<1x16xf32>, vector<1x16xf32>, vector<1x16xf32>, vector<1x16xf32> -> vector<16x16xf32>
    %25 = vector.extract_strided_slice %24 {offsets = [0, 3], sizes = [16, 1], strides = [1, 1]} : vector<16x16xf32> to vector<16x1xf32>
    %26 = vector.extract_strided_slice %24 {offsets = [0, 2], sizes = [16, 1], strides = [1, 1]} : vector<16x16xf32> to vector<16x1xf32>
    %27 = vector.extract_strided_slice %24 {offsets = [0, 1], sizes = [16, 1], strides = [1, 1]} : vector<16x16xf32> to vector<16x1xf32>
    %28 = tpu.concatenate %25, %26, %27 in 1 : vector<16x1xf32>, vector<16x1xf32>, vector<16x1xf32> -> vector<16x3xf32>
    %29 = vector.extract_strided_slice %24 {offsets = [0, 14], sizes = [16, 1], strides = [1, 1]} : vector<16x16xf32> to vector<16x1xf32>
    %30 = vector.extract_strided_slice %24 {offsets = [0, 13], sizes = [16, 1], strides = [1, 1]} : vector<16x16xf32> to vector<16x1xf32>
    %31 = vector.extract_strided_slice %24 {offsets = [0, 12], sizes = [16, 1], strides = [1, 1]} : vector<16x16xf32> to vector<16x1xf32>
    %32 = tpu.concatenate %29, %30, %31 in 1 : vector<16x1xf32>, vector<16x1xf32>, vector<16x1xf32> -> vector<16x3xf32>
    %33 = tpu.concatenate %28, %24, %32 in 1 : vector<16x3xf32>, vector<16x16xf32>, vector<16x3xf32> -> vector<16x22xf32>
    %34 = vector.extract_strided_slice %33 {offsets = [3, 0], sizes = [1, 22], strides = [1, 1]} : vector<16x22xf32> to vector<1x22xf32>
    %35 = vector.extract_strided_slice %33 {offsets = [2, 0], sizes = [1, 22], strides = [1, 1]} : vector<16x22xf32> to vector<1x22xf32>
    %36 = vector.extract_strided_slice %33 {offsets = [1, 0], sizes = [1, 22], strides = [1, 1]} : vector<16x22xf32> to vector<1x22xf32>
    %37 = tpu.concatenate %34, %35, %36 in 0 : vector<1x22xf32>, vector<1x22xf32>, vector<1x22xf32> -> vector<3x22xf32>
    %38 = vector.extract_strided_slice %33 {offsets = [14, 0], sizes = [1, 22], strides = [1, 1]} : vector<16x22xf32> to vector<1x22xf32>
    %39 = vector.extract_strided_slice %33 {offsets = [13, 0], sizes = [1, 22], strides = [1, 1]} : vector<16x22xf32> to vector<1x22xf32>
    %40 = vector.extract_strided_slice %33 {offsets = [12, 0], sizes = [1, 22], strides = [1, 1]} : vector<16x22xf32> to vector<1x22xf32>
    %41 = tpu.concatenate %38, %39, %40 in 0 : vector<1x22xf32>, vector<1x22xf32>, vector<1x22xf32> -> vector<3x22xf32>
    %42 = tpu.concatenate %37, %33, %41 in 0 : vector<3x22xf32>, vector<16x22xf32>, vector<3x22xf32> -> vector<22x22xf32>
    %43 = vector.extract_strided_slice %7 {offsets = [0, 0], sizes = [1, 16], strides = [1, 1]} : vector<1x256xf32> to vector<1x16xf32>
    %44 = vector.extract_strided_slice %7 {offsets = [0, 16], sizes = [1, 16], strides = [1, 1]} : vector<1x256xf32> to vector<1x16xf32>
    %45 = vector.extract_strided_slice %7 {offsets = [0, 32], sizes = [1, 16], strides = [1, 1]} : vector<1x256xf32> to vector<1x16xf32>
    %46 = vector.extract_strided_slice %7 {offsets = [0, 48], sizes = [1, 16], strides = [1, 1]} : vector<1x256xf32> to vector<1x16xf32>
    %47 = vector.extract_strided_slice %7 {offsets = [0, 64], sizes = [1, 16], strides = [1, 1]} : vector<1x256xf32> to vector<1x16xf32>
    %48 = vector.extract_strided_slice %7 {offsets = [0, 80], sizes = [1, 16], strides = [1, 1]} : vector<1x256xf32> to vector<1x16xf32>
    %49 = vector.extract_strided_slice %7 {offsets = [0, 96], sizes = [1, 16], strides = [1, 1]} : vector<1x256xf32> to vector<1x16xf32>
    %50 = vector.extract_strided_slice %7 {offsets = [0, 112], sizes = [1, 16], strides = [1, 1]} : vector<1x256xf32> to vector<1x16xf32>
    %51 = vector.extract_strided_slice %7 {offsets = [0, 128], sizes = [1, 16], strides = [1, 1]} : vector<1x256xf32> to vector<1x16xf32>
    %52 = vector.extract_strided_slice %7 {offsets = [0, 144], sizes = [1, 16], strides = [1, 1]} : vector<1x256xf32> to vector<1x16xf32>
    %53 = vector.extract_strided_slice %7 {offsets = [0, 160], sizes = [1, 16], strides = [1, 1]} : vector<1x256xf32> to vector<1x16xf32>
    %54 = vector.extract_strided_slice %7 {offsets = [0, 176], sizes = [1, 16], strides = [1, 1]} : vector<1x256xf32> to vector<1x16xf32>
    %55 = vector.extract_strided_slice %7 {offsets = [0, 192], sizes = [1, 16], strides = [1, 1]} : vector<1x256xf32> to vector<1x16xf32>
    %56 = vector.extract_strided_slice %7 {offsets = [0, 208], sizes = [1, 16], strides = [1, 1]} : vector<1x256xf32> to vector<1x16xf32>
    %57 = vector.extract_strided_slice %7 {offsets = [0, 224], sizes = [1, 16], strides = [1, 1]} : vector<1x256xf32> to vector<1x16xf32>
    %58 = vector.extract_strided_slice %7 {offsets = [0, 240], sizes = [1, 16], strides = [1, 1]} : vector<1x256xf32> to vector<1x16xf32>
    %59 = tpu.concatenate %43, %44, %45, %46, %47, %48, %49, %50, %51, %52, %53, %54, %55, %56, %57, %58 in 0 : vector<1x16xf32>, vector<1x16xf32>, vector<1x16xf32>, vector<1x16xf32>, vector<1x16xf32>, vector<1x16xf32>, vector<1x16xf32>, vector<1x16xf32>, vector<1x16xf32>, vector<1x16xf32>, vector<1x16xf32>, vector<1x16xf32>, vector<1x16xf32>, vector<1x16xf32>, vector<1x16xf32>, vector<1x16xf32> -> vector<16x16xf32>
    %60 = vector.extract_strided_slice %59 {offsets = [0, 3], sizes = [16, 1], strides = [1, 1]} : vector<16x16xf32> to vector<16x1xf32>
    %61 = vector.extract_strided_slice %59 {offsets = [0, 2], sizes = [16, 1], strides = [1, 1]} : vector<16x16xf32> to vector<16x1xf32>
    %62 = vector.extract_strided_slice %59 {offsets = [0, 1], sizes = [16, 1], strides = [1, 1]} : vector<16x16xf32> to vector<16x1xf32>
    %63 = tpu.concatenate %60, %61, %62 in 1 : vector<16x1xf32>, vector<16x1xf32>, vector<16x1xf32> -> vector<16x3xf32>
    %64 = vector.extract_strided_slice %59 {offsets = [0, 14], sizes = [16, 1], strides = [1, 1]} : vector<16x16xf32> to vector<16x1xf32>
    %65 = vector.extract_strided_slice %59 {offsets = [0, 13], sizes = [16, 1], strides = [1, 1]} : vector<16x16xf32> to vector<16x1xf32>
    %66 = vector.extract_strided_slice %59 {offsets = [0, 12], sizes = [16, 1], strides = [1, 1]} : vector<16x16xf32> to vector<16x1xf32>
    %67 = tpu.concatenate %64, %65, %66 in 1 : vector<16x1xf32>, vector<16x1xf32>, vector<16x1xf32> -> vector<16x3xf32>
    %68 = tpu.concatenate %63, %59, %67 in 1 : vector<16x3xf32>, vector<16x16xf32>, vector<16x3xf32> -> vector<16x22xf32>
    %69 = vector.extract_strided_slice %68 {offsets = [3, 0], sizes = [1, 22], strides = [1, 1]} : vector<16x22xf32> to vector<1x22xf32>
    %70 = vector.extract_strided_slice %68 {offsets = [2, 0], sizes = [1, 22], strides = [1, 1]} : vector<16x22xf32> to vector<1x22xf32>
    %71 = vector.extract_strided_slice %68 {offsets = [1, 0], sizes = [1, 22], strides = [1, 1]} : vector<16x22xf32> to vector<1x22xf32>
    %72 = tpu.concatenate %69, %70, %71 in 0 : vector<1x22xf32>, vector<1x22xf32>, vector<1x22xf32> -> vector<3x22xf32>
    %73 = vector.extract_strided_slice %68 {offsets = [14, 0], sizes = [1, 22], strides = [1, 1]} : vector<16x22xf32> to vector<1x22xf32>
    %74 = vector.extract_strided_slice %68 {offsets = [13, 0], sizes = [1, 22], strides = [1, 1]} : vector<16x22xf32> to vector<1x22xf32>
    %75 = vector.extract_strided_slice %68 {offsets = [12, 0], sizes = [1, 22], strides = [1, 1]} : vector<16x22xf32> to vector<1x22xf32>
    %76 = tpu.concatenate %73, %74, %75 in 0 : vector<1x22xf32>, vector<1x22xf32>, vector<1x22xf32> -> vector<3x22xf32>
    %77 = tpu.concatenate %72, %68, %76 in 0 : vector<3x22xf32>, vector<16x22xf32>, vector<3x22xf32> -> vector<22x22xf32>
    %cst_4 = arith.constant 0.000000e+00 : f32
    %78 = vector.broadcast %cst_4 : f32 to vector<16x16xf32>
    %cst_5 = arith.constant 0.000000e+00 : f32
    %79 = vector.broadcast %cst_5 : f32 to vector<16x16xf32>
    %cst_6 = arith.constant 0.000000e+00 : f32
    %80 = vector.broadcast %cst_6 : f32 to vector<16x16xf32>
    %cst_7 = arith.constant 0.000000e+00 : f32
    %81 = vector.broadcast %cst_7 : f32 to vector<16x16xf32>
    %82 = vector.extract_strided_slice %42 {offsets = [0, 0], sizes = [22, 16], strides = [1, 1]} : vector<22x22xf32> to vector<22x16xf32>
    %83 = vector.extract_strided_slice %42 {offsets = [0, 1], sizes = [22, 16], strides = [1, 1]} : vector<22x22xf32> to vector<22x16xf32>
    %84 = vector.extract_strided_slice %42 {offsets = [0, 2], sizes = [22, 16], strides = [1, 1]} : vector<22x22xf32> to vector<22x16xf32>
    %85 = vector.extract_strided_slice %42 {offsets = [0, 3], sizes = [22, 16], strides = [1, 1]} : vector<22x22xf32> to vector<22x16xf32>
    %86 = vector.extract_strided_slice %42 {offsets = [0, 4], sizes = [22, 16], strides = [1, 1]} : vector<22x22xf32> to vector<22x16xf32>
    %87 = vector.extract_strided_slice %42 {offsets = [0, 5], sizes = [22, 16], strides = [1, 1]} : vector<22x22xf32> to vector<22x16xf32>
    %88 = vector.extract_strided_slice %42 {offsets = [0, 6], sizes = [22, 16], strides = [1, 1]} : vector<22x22xf32> to vector<22x16xf32>
    %c0_8 = arith.constant 0 : index
    %89 = memref.load %arg1[%c0_8] : memref<98xf32, #tpu.memory_space<smem>>
    %90 = vector.extract_strided_slice %82 {offsets = [0, 0], sizes = [16, 16], strides = [1, 1]} : vector<22x16xf32> to vector<16x16xf32>
    %91 = vector.broadcast %89 : f32 to vector<16x16xf32>
    %92 = arith.mulf %91, %90 : vector<16x16xf32>
    %93 = arith.addf %78, %92 : vector<16x16xf32>
    %c1 = arith.constant 1 : index
    %94 = memref.load %arg1[%c1] : memref<98xf32, #tpu.memory_space<smem>>
    %95 = vector.extract_strided_slice %83 {offsets = [0, 0], sizes = [16, 16], strides = [1, 1]} : vector<22x16xf32> to vector<16x16xf32>
    %96 = vector.broadcast %94 : f32 to vector<16x16xf32>
    %97 = arith.mulf %96, %95 : vector<16x16xf32>
    %98 = arith.addf %93, %97 : vector<16x16xf32>
    %c2 = arith.constant 2 : index
    %99 = memref.load %arg1[%c2] : memref<98xf32, #tpu.memory_space<smem>>
    %100 = vector.extract_strided_slice %84 {offsets = [0, 0], sizes = [16, 16], strides = [1, 1]} : vector<22x16xf32> to vector<16x16xf32>
    %101 = vector.broadcast %99 : f32 to vector<16x16xf32>
    %102 = arith.mulf %101, %100 : vector<16x16xf32>
    %103 = arith.addf %98, %102 : vector<16x16xf32>
    %c3 = arith.constant 3 : index
    %104 = memref.load %arg1[%c3] : memref<98xf32, #tpu.memory_space<smem>>
    %105 = vector.extract_strided_slice %85 {offsets = [0, 0], sizes = [16, 16], strides = [1, 1]} : vector<22x16xf32> to vector<16x16xf32>
    %106 = vector.broadcast %104 : f32 to vector<16x16xf32>
    %107 = arith.mulf %106, %105 : vector<16x16xf32>
    %108 = arith.addf %103, %107 : vector<16x16xf32>
    %c4 = arith.constant 4 : index
    %109 = memref.load %arg1[%c4] : memref<98xf32, #tpu.memory_space<smem>>
    %110 = vector.extract_strided_slice %86 {offsets = [0, 0], sizes = [16, 16], strides = [1, 1]} : vector<22x16xf32> to vector<16x16xf32>
    %111 = vector.broadcast %109 : f32 to vector<16x16xf32>
    %112 = arith.mulf %111, %110 : vector<16x16xf32>
    %113 = arith.addf %108, %112 : vector<16x16xf32>
    %c5 = arith.constant 5 : index
    %114 = memref.load %arg1[%c5] : memref<98xf32, #tpu.memory_space<smem>>
    %115 = vector.extract_strided_slice %87 {offsets = [0, 0], sizes = [16, 16], strides = [1, 1]} : vector<22x16xf32> to vector<16x16xf32>
    %116 = vector.broadcast %114 : f32 to vector<16x16xf32>
    %117 = arith.mulf %116, %115 : vector<16x16xf32>
    %118 = arith.addf %113, %117 : vector<16x16xf32>
    %c6 = arith.constant 6 : index
    %119 = memref.load %arg1[%c6] : memref<98xf32, #tpu.memory_space<smem>>
    %120 = vector.extract_strided_slice %88 {offsets = [0, 0], sizes = [16, 16], strides = [1, 1]} : vector<22x16xf32> to vector<16x16xf32>
    %121 = vector.broadcast %119 : f32 to vector<16x16xf32>
    %122 = arith.mulf %121, %120 : vector<16x16xf32>
    %123 = arith.addf %118, %122 : vector<16x16xf32>
    %c7 = arith.constant 7 : index
    %124 = memref.load %arg1[%c7] : memref<98xf32, #tpu.memory_space<smem>>
    %125 = vector.extract_strided_slice %82 {offsets = [1, 0], sizes = [16, 16], strides = [1, 1]} : vector<22x16xf32> to vector<16x16xf32>
    %126 = vector.broadcast %124 : f32 to vector<16x16xf32>
    %127 = arith.mulf %126, %125 : vector<16x16xf32>
    %128 = arith.addf %79, %127 : vector<16x16xf32>
    %c8 = arith.constant 8 : index
    %129 = memref.load %arg1[%c8] : memref<98xf32, #tpu.memory_space<smem>>
    %130 = vector.extract_strided_slice %83 {offsets = [1, 0], sizes = [16, 16], strides = [1, 1]} : vector<22x16xf32> to vector<16x16xf32>
    %131 = vector.broadcast %129 : f32 to vector<16x16xf32>
    %132 = arith.mulf %131, %130 : vector<16x16xf32>
    %133 = arith.addf %128, %132 : vector<16x16xf32>
    %c9 = arith.constant 9 : index
    %134 = memref.load %arg1[%c9] : memref<98xf32, #tpu.memory_space<smem>>
    %135 = vector.extract_strided_slice %84 {offsets = [1, 0], sizes = [16, 16], strides = [1, 1]} : vector<22x16xf32> to vector<16x16xf32>
    %136 = vector.broadcast %134 : f32 to vector<16x16xf32>
    %137 = arith.mulf %136, %135 : vector<16x16xf32>
    %138 = arith.addf %133, %137 : vector<16x16xf32>
    %c10 = arith.constant 10 : index
    %139 = memref.load %arg1[%c10] : memref<98xf32, #tpu.memory_space<smem>>
    %140 = vector.extract_strided_slice %85 {offsets = [1, 0], sizes = [16, 16], strides = [1, 1]} : vector<22x16xf32> to vector<16x16xf32>
    %141 = vector.broadcast %139 : f32 to vector<16x16xf32>
    %142 = arith.mulf %141, %140 : vector<16x16xf32>
    %143 = arith.addf %138, %142 : vector<16x16xf32>
    %c11 = arith.constant 11 : index
    %144 = memref.load %arg1[%c11] : memref<98xf32, #tpu.memory_space<smem>>
    %145 = vector.extract_strided_slice %86 {offsets = [1, 0], sizes = [16, 16], strides = [1, 1]} : vector<22x16xf32> to vector<16x16xf32>
    %146 = vector.broadcast %144 : f32 to vector<16x16xf32>
    %147 = arith.mulf %146, %145 : vector<16x16xf32>
    %148 = arith.addf %143, %147 : vector<16x16xf32>
    %c12 = arith.constant 12 : index
    %149 = memref.load %arg1[%c12] : memref<98xf32, #tpu.memory_space<smem>>
    %150 = vector.extract_strided_slice %87 {offsets = [1, 0], sizes = [16, 16], strides = [1, 1]} : vector<22x16xf32> to vector<16x16xf32>
    %151 = vector.broadcast %149 : f32 to vector<16x16xf32>
    %152 = arith.mulf %151, %150 : vector<16x16xf32>
    %153 = arith.addf %148, %152 : vector<16x16xf32>
    %c13 = arith.constant 13 : index
    %154 = memref.load %arg1[%c13] : memref<98xf32, #tpu.memory_space<smem>>
    %155 = vector.extract_strided_slice %88 {offsets = [1, 0], sizes = [16, 16], strides = [1, 1]} : vector<22x16xf32> to vector<16x16xf32>
    %156 = vector.broadcast %154 : f32 to vector<16x16xf32>
    %157 = arith.mulf %156, %155 : vector<16x16xf32>
    %158 = arith.addf %153, %157 : vector<16x16xf32>
    %c14 = arith.constant 14 : index
    %159 = memref.load %arg1[%c14] : memref<98xf32, #tpu.memory_space<smem>>
    %160 = vector.extract_strided_slice %82 {offsets = [2, 0], sizes = [16, 16], strides = [1, 1]} : vector<22x16xf32> to vector<16x16xf32>
    %161 = vector.broadcast %159 : f32 to vector<16x16xf32>
    %162 = arith.mulf %161, %160 : vector<16x16xf32>
    %163 = arith.addf %123, %162 : vector<16x16xf32>
    %c15 = arith.constant 15 : index
    %164 = memref.load %arg1[%c15] : memref<98xf32, #tpu.memory_space<smem>>
    %165 = vector.extract_strided_slice %83 {offsets = [2, 0], sizes = [16, 16], strides = [1, 1]} : vector<22x16xf32> to vector<16x16xf32>
    %166 = vector.broadcast %164 : f32 to vector<16x16xf32>
    %167 = arith.mulf %166, %165 : vector<16x16xf32>
    %168 = arith.addf %163, %167 : vector<16x16xf32>
    %c16 = arith.constant 16 : index
    %169 = memref.load %arg1[%c16] : memref<98xf32, #tpu.memory_space<smem>>
    %170 = vector.extract_strided_slice %84 {offsets = [2, 0], sizes = [16, 16], strides = [1, 1]} : vector<22x16xf32> to vector<16x16xf32>
    %171 = vector.broadcast %169 : f32 to vector<16x16xf32>
    %172 = arith.mulf %171, %170 : vector<16x16xf32>
    %173 = arith.addf %168, %172 : vector<16x16xf32>
    %c17 = arith.constant 17 : index
    %174 = memref.load %arg1[%c17] : memref<98xf32, #tpu.memory_space<smem>>
    %175 = vector.extract_strided_slice %85 {offsets = [2, 0], sizes = [16, 16], strides = [1, 1]} : vector<22x16xf32> to vector<16x16xf32>
    %176 = vector.broadcast %174 : f32 to vector<16x16xf32>
    %177 = arith.mulf %176, %175 : vector<16x16xf32>
    %178 = arith.addf %173, %177 : vector<16x16xf32>
    %c18 = arith.constant 18 : index
    %179 = memref.load %arg1[%c18] : memref<98xf32, #tpu.memory_space<smem>>
    %180 = vector.extract_strided_slice %86 {offsets = [2, 0], sizes = [16, 16], strides = [1, 1]} : vector<22x16xf32> to vector<16x16xf32>
    %181 = vector.broadcast %179 : f32 to vector<16x16xf32>
    %182 = arith.mulf %181, %180 : vector<16x16xf32>
    %183 = arith.addf %178, %182 : vector<16x16xf32>
    %c19 = arith.constant 19 : index
    %184 = memref.load %arg1[%c19] : memref<98xf32, #tpu.memory_space<smem>>
    %185 = vector.extract_strided_slice %87 {offsets = [2, 0], sizes = [16, 16], strides = [1, 1]} : vector<22x16xf32> to vector<16x16xf32>
    %186 = vector.broadcast %184 : f32 to vector<16x16xf32>
    %187 = arith.mulf %186, %185 : vector<16x16xf32>
    %188 = arith.addf %183, %187 : vector<16x16xf32>
    %c20 = arith.constant 20 : index
    %189 = memref.load %arg1[%c20] : memref<98xf32, #tpu.memory_space<smem>>
    %190 = vector.extract_strided_slice %88 {offsets = [2, 0], sizes = [16, 16], strides = [1, 1]} : vector<22x16xf32> to vector<16x16xf32>
    %191 = vector.broadcast %189 : f32 to vector<16x16xf32>
    %192 = arith.mulf %191, %190 : vector<16x16xf32>
    %193 = arith.addf %188, %192 : vector<16x16xf32>
    %c21 = arith.constant 21 : index
    %194 = memref.load %arg1[%c21] : memref<98xf32, #tpu.memory_space<smem>>
    %195 = vector.extract_strided_slice %82 {offsets = [3, 0], sizes = [16, 16], strides = [1, 1]} : vector<22x16xf32> to vector<16x16xf32>
    %196 = vector.broadcast %194 : f32 to vector<16x16xf32>
    %197 = arith.mulf %196, %195 : vector<16x16xf32>
    %198 = arith.addf %158, %197 : vector<16x16xf32>
    %c22 = arith.constant 22 : index
    %199 = memref.load %arg1[%c22] : memref<98xf32, #tpu.memory_space<smem>>
    %200 = vector.extract_strided_slice %83 {offsets = [3, 0], sizes = [16, 16], strides = [1, 1]} : vector<22x16xf32> to vector<16x16xf32>
    %201 = vector.broadcast %199 : f32 to vector<16x16xf32>
    %202 = arith.mulf %201, %200 : vector<16x16xf32>
    %203 = arith.addf %198, %202 : vector<16x16xf32>
    %c23 = arith.constant 23 : index
    %204 = memref.load %arg1[%c23] : memref<98xf32, #tpu.memory_space<smem>>
    %205 = vector.extract_strided_slice %84 {offsets = [3, 0], sizes = [16, 16], strides = [1, 1]} : vector<22x16xf32> to vector<16x16xf32>
    %206 = vector.broadcast %204 : f32 to vector<16x16xf32>
    %207 = arith.mulf %206, %205 : vector<16x16xf32>
    %208 = arith.addf %203, %207 : vector<16x16xf32>
    %c24 = arith.constant 24 : index
    %209 = memref.load %arg1[%c24] : memref<98xf32, #tpu.memory_space<smem>>
    %210 = vector.extract_strided_slice %85 {offsets = [3, 0], sizes = [16, 16], strides = [1, 1]} : vector<22x16xf32> to vector<16x16xf32>
    %211 = vector.broadcast %209 : f32 to vector<16x16xf32>
    %212 = arith.mulf %211, %210 : vector<16x16xf32>
    %213 = arith.addf %208, %212 : vector<16x16xf32>
    %c25 = arith.constant 25 : index
    %214 = memref.load %arg1[%c25] : memref<98xf32, #tpu.memory_space<smem>>
    %215 = vector.extract_strided_slice %86 {offsets = [3, 0], sizes = [16, 16], strides = [1, 1]} : vector<22x16xf32> to vector<16x16xf32>
    %216 = vector.broadcast %214 : f32 to vector<16x16xf32>
    %217 = arith.mulf %216, %215 : vector<16x16xf32>
    %218 = arith.addf %213, %217 : vector<16x16xf32>
    %c26 = arith.constant 26 : index
    %219 = memref.load %arg1[%c26] : memref<98xf32, #tpu.memory_space<smem>>
    %220 = vector.extract_strided_slice %87 {offsets = [3, 0], sizes = [16, 16], strides = [1, 1]} : vector<22x16xf32> to vector<16x16xf32>
    %221 = vector.broadcast %219 : f32 to vector<16x16xf32>
    %222 = arith.mulf %221, %220 : vector<16x16xf32>
    %223 = arith.addf %218, %222 : vector<16x16xf32>
    %c27 = arith.constant 27 : index
    %224 = memref.load %arg1[%c27] : memref<98xf32, #tpu.memory_space<smem>>
    %225 = vector.extract_strided_slice %88 {offsets = [3, 0], sizes = [16, 16], strides = [1, 1]} : vector<22x16xf32> to vector<16x16xf32>
    %226 = vector.broadcast %224 : f32 to vector<16x16xf32>
    %227 = arith.mulf %226, %225 : vector<16x16xf32>
    %228 = arith.addf %223, %227 : vector<16x16xf32>
    %c28 = arith.constant 28 : index
    %229 = memref.load %arg1[%c28] : memref<98xf32, #tpu.memory_space<smem>>
    %230 = vector.extract_strided_slice %82 {offsets = [4, 0], sizes = [16, 16], strides = [1, 1]} : vector<22x16xf32> to vector<16x16xf32>
    %231 = vector.broadcast %229 : f32 to vector<16x16xf32>
    %232 = arith.mulf %231, %230 : vector<16x16xf32>
    %233 = arith.addf %193, %232 : vector<16x16xf32>
    %c29 = arith.constant 29 : index
    %234 = memref.load %arg1[%c29] : memref<98xf32, #tpu.memory_space<smem>>
    %235 = vector.extract_strided_slice %83 {offsets = [4, 0], sizes = [16, 16], strides = [1, 1]} : vector<22x16xf32> to vector<16x16xf32>
    %236 = vector.broadcast %234 : f32 to vector<16x16xf32>
    %237 = arith.mulf %236, %235 : vector<16x16xf32>
    %238 = arith.addf %233, %237 : vector<16x16xf32>
    %c30 = arith.constant 30 : index
    %239 = memref.load %arg1[%c30] : memref<98xf32, #tpu.memory_space<smem>>
    %240 = vector.extract_strided_slice %84 {offsets = [4, 0], sizes = [16, 16], strides = [1, 1]} : vector<22x16xf32> to vector<16x16xf32>
    %241 = vector.broadcast %239 : f32 to vector<16x16xf32>
    %242 = arith.mulf %241, %240 : vector<16x16xf32>
    %243 = arith.addf %238, %242 : vector<16x16xf32>
    %c31 = arith.constant 31 : index
    %244 = memref.load %arg1[%c31] : memref<98xf32, #tpu.memory_space<smem>>
    %245 = vector.extract_strided_slice %85 {offsets = [4, 0], sizes = [16, 16], strides = [1, 1]} : vector<22x16xf32> to vector<16x16xf32>
    %246 = vector.broadcast %244 : f32 to vector<16x16xf32>
    %247 = arith.mulf %246, %245 : vector<16x16xf32>
    %248 = arith.addf %243, %247 : vector<16x16xf32>
    %c32 = arith.constant 32 : index
    %249 = memref.load %arg1[%c32] : memref<98xf32, #tpu.memory_space<smem>>
    %250 = vector.extract_strided_slice %86 {offsets = [4, 0], sizes = [16, 16], strides = [1, 1]} : vector<22x16xf32> to vector<16x16xf32>
    %251 = vector.broadcast %249 : f32 to vector<16x16xf32>
    %252 = arith.mulf %251, %250 : vector<16x16xf32>
    %253 = arith.addf %248, %252 : vector<16x16xf32>
    %c33 = arith.constant 33 : index
    %254 = memref.load %arg1[%c33] : memref<98xf32, #tpu.memory_space<smem>>
    %255 = vector.extract_strided_slice %87 {offsets = [4, 0], sizes = [16, 16], strides = [1, 1]} : vector<22x16xf32> to vector<16x16xf32>
    %256 = vector.broadcast %254 : f32 to vector<16x16xf32>
    %257 = arith.mulf %256, %255 : vector<16x16xf32>
    %258 = arith.addf %253, %257 : vector<16x16xf32>
    %c34 = arith.constant 34 : index
    %259 = memref.load %arg1[%c34] : memref<98xf32, #tpu.memory_space<smem>>
    %260 = vector.extract_strided_slice %88 {offsets = [4, 0], sizes = [16, 16], strides = [1, 1]} : vector<22x16xf32> to vector<16x16xf32>
    %261 = vector.broadcast %259 : f32 to vector<16x16xf32>
    %262 = arith.mulf %261, %260 : vector<16x16xf32>
    %263 = arith.addf %258, %262 : vector<16x16xf32>
    %c35 = arith.constant 35 : index
    %264 = memref.load %arg1[%c35] : memref<98xf32, #tpu.memory_space<smem>>
    %265 = vector.extract_strided_slice %82 {offsets = [5, 0], sizes = [16, 16], strides = [1, 1]} : vector<22x16xf32> to vector<16x16xf32>
    %266 = vector.broadcast %264 : f32 to vector<16x16xf32>
    %267 = arith.mulf %266, %265 : vector<16x16xf32>
    %268 = arith.addf %228, %267 : vector<16x16xf32>
    %c36 = arith.constant 36 : index
    %269 = memref.load %arg1[%c36] : memref<98xf32, #tpu.memory_space<smem>>
    %270 = vector.extract_strided_slice %83 {offsets = [5, 0], sizes = [16, 16], strides = [1, 1]} : vector<22x16xf32> to vector<16x16xf32>
    %271 = vector.broadcast %269 : f32 to vector<16x16xf32>
    %272 = arith.mulf %271, %270 : vector<16x16xf32>
    %273 = arith.addf %268, %272 : vector<16x16xf32>
    %c37 = arith.constant 37 : index
    %274 = memref.load %arg1[%c37] : memref<98xf32, #tpu.memory_space<smem>>
    %275 = vector.extract_strided_slice %84 {offsets = [5, 0], sizes = [16, 16], strides = [1, 1]} : vector<22x16xf32> to vector<16x16xf32>
    %276 = vector.broadcast %274 : f32 to vector<16x16xf32>
    %277 = arith.mulf %276, %275 : vector<16x16xf32>
    %278 = arith.addf %273, %277 : vector<16x16xf32>
    %c38 = arith.constant 38 : index
    %279 = memref.load %arg1[%c38] : memref<98xf32, #tpu.memory_space<smem>>
    %280 = vector.extract_strided_slice %85 {offsets = [5, 0], sizes = [16, 16], strides = [1, 1]} : vector<22x16xf32> to vector<16x16xf32>
    %281 = vector.broadcast %279 : f32 to vector<16x16xf32>
    %282 = arith.mulf %281, %280 : vector<16x16xf32>
    %283 = arith.addf %278, %282 : vector<16x16xf32>
    %c39 = arith.constant 39 : index
    %284 = memref.load %arg1[%c39] : memref<98xf32, #tpu.memory_space<smem>>
    %285 = vector.extract_strided_slice %86 {offsets = [5, 0], sizes = [16, 16], strides = [1, 1]} : vector<22x16xf32> to vector<16x16xf32>
    %286 = vector.broadcast %284 : f32 to vector<16x16xf32>
    %287 = arith.mulf %286, %285 : vector<16x16xf32>
    %288 = arith.addf %283, %287 : vector<16x16xf32>
    %c40 = arith.constant 40 : index
    %289 = memref.load %arg1[%c40] : memref<98xf32, #tpu.memory_space<smem>>
    %290 = vector.extract_strided_slice %87 {offsets = [5, 0], sizes = [16, 16], strides = [1, 1]} : vector<22x16xf32> to vector<16x16xf32>
    %291 = vector.broadcast %289 : f32 to vector<16x16xf32>
    %292 = arith.mulf %291, %290 : vector<16x16xf32>
    %293 = arith.addf %288, %292 : vector<16x16xf32>
    %c41 = arith.constant 41 : index
    %294 = memref.load %arg1[%c41] : memref<98xf32, #tpu.memory_space<smem>>
    %295 = vector.extract_strided_slice %88 {offsets = [5, 0], sizes = [16, 16], strides = [1, 1]} : vector<22x16xf32> to vector<16x16xf32>
    %296 = vector.broadcast %294 : f32 to vector<16x16xf32>
    %297 = arith.mulf %296, %295 : vector<16x16xf32>
    %298 = arith.addf %293, %297 : vector<16x16xf32>
    %c42 = arith.constant 42 : index
    %299 = memref.load %arg1[%c42] : memref<98xf32, #tpu.memory_space<smem>>
    %300 = vector.extract_strided_slice %82 {offsets = [6, 0], sizes = [16, 16], strides = [1, 1]} : vector<22x16xf32> to vector<16x16xf32>
    %301 = vector.broadcast %299 : f32 to vector<16x16xf32>
    %302 = arith.mulf %301, %300 : vector<16x16xf32>
    %303 = arith.addf %263, %302 : vector<16x16xf32>
    %c43 = arith.constant 43 : index
    %304 = memref.load %arg1[%c43] : memref<98xf32, #tpu.memory_space<smem>>
    %305 = vector.extract_strided_slice %83 {offsets = [6, 0], sizes = [16, 16], strides = [1, 1]} : vector<22x16xf32> to vector<16x16xf32>
    %306 = vector.broadcast %304 : f32 to vector<16x16xf32>
    %307 = arith.mulf %306, %305 : vector<16x16xf32>
    %308 = arith.addf %303, %307 : vector<16x16xf32>
    %c44 = arith.constant 44 : index
    %309 = memref.load %arg1[%c44] : memref<98xf32, #tpu.memory_space<smem>>
    %310 = vector.extract_strided_slice %84 {offsets = [6, 0], sizes = [16, 16], strides = [1, 1]} : vector<22x16xf32> to vector<16x16xf32>
    %311 = vector.broadcast %309 : f32 to vector<16x16xf32>
    %312 = arith.mulf %311, %310 : vector<16x16xf32>
    %313 = arith.addf %308, %312 : vector<16x16xf32>
    %c45 = arith.constant 45 : index
    %314 = memref.load %arg1[%c45] : memref<98xf32, #tpu.memory_space<smem>>
    %315 = vector.extract_strided_slice %85 {offsets = [6, 0], sizes = [16, 16], strides = [1, 1]} : vector<22x16xf32> to vector<16x16xf32>
    %316 = vector.broadcast %314 : f32 to vector<16x16xf32>
    %317 = arith.mulf %316, %315 : vector<16x16xf32>
    %318 = arith.addf %313, %317 : vector<16x16xf32>
    %c46 = arith.constant 46 : index
    %319 = memref.load %arg1[%c46] : memref<98xf32, #tpu.memory_space<smem>>
    %320 = vector.extract_strided_slice %86 {offsets = [6, 0], sizes = [16, 16], strides = [1, 1]} : vector<22x16xf32> to vector<16x16xf32>
    %321 = vector.broadcast %319 : f32 to vector<16x16xf32>
    %322 = arith.mulf %321, %320 : vector<16x16xf32>
    %323 = arith.addf %318, %322 : vector<16x16xf32>
    %c47 = arith.constant 47 : index
    %324 = memref.load %arg1[%c47] : memref<98xf32, #tpu.memory_space<smem>>
    %325 = vector.extract_strided_slice %87 {offsets = [6, 0], sizes = [16, 16], strides = [1, 1]} : vector<22x16xf32> to vector<16x16xf32>
    %326 = vector.broadcast %324 : f32 to vector<16x16xf32>
    %327 = arith.mulf %326, %325 : vector<16x16xf32>
    %328 = arith.addf %323, %327 : vector<16x16xf32>
    %c48 = arith.constant 48 : index
    %329 = memref.load %arg1[%c48] : memref<98xf32, #tpu.memory_space<smem>>
    %330 = vector.extract_strided_slice %88 {offsets = [6, 0], sizes = [16, 16], strides = [1, 1]} : vector<22x16xf32> to vector<16x16xf32>
    %331 = vector.broadcast %329 : f32 to vector<16x16xf32>
    %332 = arith.mulf %331, %330 : vector<16x16xf32>
    %333 = arith.addf %328, %332 : vector<16x16xf32>
    %334 = vector.extract_strided_slice %77 {offsets = [0, 0], sizes = [22, 16], strides = [1, 1]} : vector<22x22xf32> to vector<22x16xf32>
    %335 = vector.extract_strided_slice %77 {offsets = [0, 1], sizes = [22, 16], strides = [1, 1]} : vector<22x22xf32> to vector<22x16xf32>
    %336 = vector.extract_strided_slice %77 {offsets = [0, 2], sizes = [22, 16], strides = [1, 1]} : vector<22x22xf32> to vector<22x16xf32>
    %337 = vector.extract_strided_slice %77 {offsets = [0, 3], sizes = [22, 16], strides = [1, 1]} : vector<22x22xf32> to vector<22x16xf32>
    %338 = vector.extract_strided_slice %77 {offsets = [0, 4], sizes = [22, 16], strides = [1, 1]} : vector<22x22xf32> to vector<22x16xf32>
    %339 = vector.extract_strided_slice %77 {offsets = [0, 5], sizes = [22, 16], strides = [1, 1]} : vector<22x22xf32> to vector<22x16xf32>
    %340 = vector.extract_strided_slice %77 {offsets = [0, 6], sizes = [22, 16], strides = [1, 1]} : vector<22x22xf32> to vector<22x16xf32>
    %c49 = arith.constant 49 : index
    %341 = memref.load %arg1[%c49] : memref<98xf32, #tpu.memory_space<smem>>
    %342 = vector.extract_strided_slice %334 {offsets = [0, 0], sizes = [16, 16], strides = [1, 1]} : vector<22x16xf32> to vector<16x16xf32>
    %343 = vector.broadcast %341 : f32 to vector<16x16xf32>
    %344 = arith.mulf %343, %342 : vector<16x16xf32>
    %345 = arith.addf %80, %344 : vector<16x16xf32>
    %c50 = arith.constant 50 : index
    %346 = memref.load %arg1[%c50] : memref<98xf32, #tpu.memory_space<smem>>
    %347 = vector.extract_strided_slice %335 {offsets = [0, 0], sizes = [16, 16], strides = [1, 1]} : vector<22x16xf32> to vector<16x16xf32>
    %348 = vector.broadcast %346 : f32 to vector<16x16xf32>
    %349 = arith.mulf %348, %347 : vector<16x16xf32>
    %350 = arith.addf %345, %349 : vector<16x16xf32>
    %c51 = arith.constant 51 : index
    %351 = memref.load %arg1[%c51] : memref<98xf32, #tpu.memory_space<smem>>
    %352 = vector.extract_strided_slice %336 {offsets = [0, 0], sizes = [16, 16], strides = [1, 1]} : vector<22x16xf32> to vector<16x16xf32>
    %353 = vector.broadcast %351 : f32 to vector<16x16xf32>
    %354 = arith.mulf %353, %352 : vector<16x16xf32>
    %355 = arith.addf %350, %354 : vector<16x16xf32>
    %c52 = arith.constant 52 : index
    %356 = memref.load %arg1[%c52] : memref<98xf32, #tpu.memory_space<smem>>
    %357 = vector.extract_strided_slice %337 {offsets = [0, 0], sizes = [16, 16], strides = [1, 1]} : vector<22x16xf32> to vector<16x16xf32>
    %358 = vector.broadcast %356 : f32 to vector<16x16xf32>
    %359 = arith.mulf %358, %357 : vector<16x16xf32>
    %360 = arith.addf %355, %359 : vector<16x16xf32>
    %c53 = arith.constant 53 : index
    %361 = memref.load %arg1[%c53] : memref<98xf32, #tpu.memory_space<smem>>
    %362 = vector.extract_strided_slice %338 {offsets = [0, 0], sizes = [16, 16], strides = [1, 1]} : vector<22x16xf32> to vector<16x16xf32>
    %363 = vector.broadcast %361 : f32 to vector<16x16xf32>
    %364 = arith.mulf %363, %362 : vector<16x16xf32>
    %365 = arith.addf %360, %364 : vector<16x16xf32>
    %c54 = arith.constant 54 : index
    %366 = memref.load %arg1[%c54] : memref<98xf32, #tpu.memory_space<smem>>
    %367 = vector.extract_strided_slice %339 {offsets = [0, 0], sizes = [16, 16], strides = [1, 1]} : vector<22x16xf32> to vector<16x16xf32>
    %368 = vector.broadcast %366 : f32 to vector<16x16xf32>
    %369 = arith.mulf %368, %367 : vector<16x16xf32>
    %370 = arith.addf %365, %369 : vector<16x16xf32>
    %c55 = arith.constant 55 : index
    %371 = memref.load %arg1[%c55] : memref<98xf32, #tpu.memory_space<smem>>
    %372 = vector.extract_strided_slice %340 {offsets = [0, 0], sizes = [16, 16], strides = [1, 1]} : vector<22x16xf32> to vector<16x16xf32>
    %373 = vector.broadcast %371 : f32 to vector<16x16xf32>
    %374 = arith.mulf %373, %372 : vector<16x16xf32>
    %375 = arith.addf %370, %374 : vector<16x16xf32>
    %c56 = arith.constant 56 : index
    %376 = memref.load %arg1[%c56] : memref<98xf32, #tpu.memory_space<smem>>
    %377 = vector.extract_strided_slice %334 {offsets = [1, 0], sizes = [16, 16], strides = [1, 1]} : vector<22x16xf32> to vector<16x16xf32>
    %378 = vector.broadcast %376 : f32 to vector<16x16xf32>
    %379 = arith.mulf %378, %377 : vector<16x16xf32>
    %380 = arith.addf %81, %379 : vector<16x16xf32>
    %c57 = arith.constant 57 : index
    %381 = memref.load %arg1[%c57] : memref<98xf32, #tpu.memory_space<smem>>
    %382 = vector.extract_strided_slice %335 {offsets = [1, 0], sizes = [16, 16], strides = [1, 1]} : vector<22x16xf32> to vector<16x16xf32>
    %383 = vector.broadcast %381 : f32 to vector<16x16xf32>
    %384 = arith.mulf %383, %382 : vector<16x16xf32>
    %385 = arith.addf %380, %384 : vector<16x16xf32>
    %c58 = arith.constant 58 : index
    %386 = memref.load %arg1[%c58] : memref<98xf32, #tpu.memory_space<smem>>
    %387 = vector.extract_strided_slice %336 {offsets = [1, 0], sizes = [16, 16], strides = [1, 1]} : vector<22x16xf32> to vector<16x16xf32>
    %388 = vector.broadcast %386 : f32 to vector<16x16xf32>
    %389 = arith.mulf %388, %387 : vector<16x16xf32>
    %390 = arith.addf %385, %389 : vector<16x16xf32>
    %c59 = arith.constant 59 : index
    %391 = memref.load %arg1[%c59] : memref<98xf32, #tpu.memory_space<smem>>
    %392 = vector.extract_strided_slice %337 {offsets = [1, 0], sizes = [16, 16], strides = [1, 1]} : vector<22x16xf32> to vector<16x16xf32>
    %393 = vector.broadcast %391 : f32 to vector<16x16xf32>
    %394 = arith.mulf %393, %392 : vector<16x16xf32>
    %395 = arith.addf %390, %394 : vector<16x16xf32>
    %c60 = arith.constant 60 : index
    %396 = memref.load %arg1[%c60] : memref<98xf32, #tpu.memory_space<smem>>
    %397 = vector.extract_strided_slice %338 {offsets = [1, 0], sizes = [16, 16], strides = [1, 1]} : vector<22x16xf32> to vector<16x16xf32>
    %398 = vector.broadcast %396 : f32 to vector<16x16xf32>
    %399 = arith.mulf %398, %397 : vector<16x16xf32>
    %400 = arith.addf %395, %399 : vector<16x16xf32>
    %c61 = arith.constant 61 : index
    %401 = memref.load %arg1[%c61] : memref<98xf32, #tpu.memory_space<smem>>
    %402 = vector.extract_strided_slice %339 {offsets = [1, 0], sizes = [16, 16], strides = [1, 1]} : vector<22x16xf32> to vector<16x16xf32>
    %403 = vector.broadcast %401 : f32 to vector<16x16xf32>
    %404 = arith.mulf %403, %402 : vector<16x16xf32>
    %405 = arith.addf %400, %404 : vector<16x16xf32>
    %c62 = arith.constant 62 : index
    %406 = memref.load %arg1[%c62] : memref<98xf32, #tpu.memory_space<smem>>
    %407 = vector.extract_strided_slice %340 {offsets = [1, 0], sizes = [16, 16], strides = [1, 1]} : vector<22x16xf32> to vector<16x16xf32>
    %408 = vector.broadcast %406 : f32 to vector<16x16xf32>
    %409 = arith.mulf %408, %407 : vector<16x16xf32>
    %410 = arith.addf %405, %409 : vector<16x16xf32>
    %c63 = arith.constant 63 : index
    %411 = memref.load %arg1[%c63] : memref<98xf32, #tpu.memory_space<smem>>
    %412 = vector.extract_strided_slice %334 {offsets = [2, 0], sizes = [16, 16], strides = [1, 1]} : vector<22x16xf32> to vector<16x16xf32>
    %413 = vector.broadcast %411 : f32 to vector<16x16xf32>
    %414 = arith.mulf %413, %412 : vector<16x16xf32>
    %415 = arith.addf %375, %414 : vector<16x16xf32>
    %c64 = arith.constant 64 : index
    %416 = memref.load %arg1[%c64] : memref<98xf32, #tpu.memory_space<smem>>
    %417 = vector.extract_strided_slice %335 {offsets = [2, 0], sizes = [16, 16], strides = [1, 1]} : vector<22x16xf32> to vector<16x16xf32>
    %418 = vector.broadcast %416 : f32 to vector<16x16xf32>
    %419 = arith.mulf %418, %417 : vector<16x16xf32>
    %420 = arith.addf %415, %419 : vector<16x16xf32>
    %c65 = arith.constant 65 : index
    %421 = memref.load %arg1[%c65] : memref<98xf32, #tpu.memory_space<smem>>
    %422 = vector.extract_strided_slice %336 {offsets = [2, 0], sizes = [16, 16], strides = [1, 1]} : vector<22x16xf32> to vector<16x16xf32>
    %423 = vector.broadcast %421 : f32 to vector<16x16xf32>
    %424 = arith.mulf %423, %422 : vector<16x16xf32>
    %425 = arith.addf %420, %424 : vector<16x16xf32>
    %c66 = arith.constant 66 : index
    %426 = memref.load %arg1[%c66] : memref<98xf32, #tpu.memory_space<smem>>
    %427 = vector.extract_strided_slice %337 {offsets = [2, 0], sizes = [16, 16], strides = [1, 1]} : vector<22x16xf32> to vector<16x16xf32>
    %428 = vector.broadcast %426 : f32 to vector<16x16xf32>
    %429 = arith.mulf %428, %427 : vector<16x16xf32>
    %430 = arith.addf %425, %429 : vector<16x16xf32>
    %c67 = arith.constant 67 : index
    %431 = memref.load %arg1[%c67] : memref<98xf32, #tpu.memory_space<smem>>
    %432 = vector.extract_strided_slice %338 {offsets = [2, 0], sizes = [16, 16], strides = [1, 1]} : vector<22x16xf32> to vector<16x16xf32>
    %433 = vector.broadcast %431 : f32 to vector<16x16xf32>
    %434 = arith.mulf %433, %432 : vector<16x16xf32>
    %435 = arith.addf %430, %434 : vector<16x16xf32>
    %c68 = arith.constant 68 : index
    %436 = memref.load %arg1[%c68] : memref<98xf32, #tpu.memory_space<smem>>
    %437 = vector.extract_strided_slice %339 {offsets = [2, 0], sizes = [16, 16], strides = [1, 1]} : vector<22x16xf32> to vector<16x16xf32>
    %438 = vector.broadcast %436 : f32 to vector<16x16xf32>
    %439 = arith.mulf %438, %437 : vector<16x16xf32>
    %440 = arith.addf %435, %439 : vector<16x16xf32>
    %c69 = arith.constant 69 : index
    %441 = memref.load %arg1[%c69] : memref<98xf32, #tpu.memory_space<smem>>
    %442 = vector.extract_strided_slice %340 {offsets = [2, 0], sizes = [16, 16], strides = [1, 1]} : vector<22x16xf32> to vector<16x16xf32>
    %443 = vector.broadcast %441 : f32 to vector<16x16xf32>
    %444 = arith.mulf %443, %442 : vector<16x16xf32>
    %445 = arith.addf %440, %444 : vector<16x16xf32>
    %c70 = arith.constant 70 : index
    %446 = memref.load %arg1[%c70] : memref<98xf32, #tpu.memory_space<smem>>
    %447 = vector.extract_strided_slice %334 {offsets = [3, 0], sizes = [16, 16], strides = [1, 1]} : vector<22x16xf32> to vector<16x16xf32>
    %448 = vector.broadcast %446 : f32 to vector<16x16xf32>
    %449 = arith.mulf %448, %447 : vector<16x16xf32>
    %450 = arith.addf %410, %449 : vector<16x16xf32>
    %c71 = arith.constant 71 : index
    %451 = memref.load %arg1[%c71] : memref<98xf32, #tpu.memory_space<smem>>
    %452 = vector.extract_strided_slice %335 {offsets = [3, 0], sizes = [16, 16], strides = [1, 1]} : vector<22x16xf32> to vector<16x16xf32>
    %453 = vector.broadcast %451 : f32 to vector<16x16xf32>
    %454 = arith.mulf %453, %452 : vector<16x16xf32>
    %455 = arith.addf %450, %454 : vector<16x16xf32>
    %c72 = arith.constant 72 : index
    %456 = memref.load %arg1[%c72] : memref<98xf32, #tpu.memory_space<smem>>
    %457 = vector.extract_strided_slice %336 {offsets = [3, 0], sizes = [16, 16], strides = [1, 1]} : vector<22x16xf32> to vector<16x16xf32>
    %458 = vector.broadcast %456 : f32 to vector<16x16xf32>
    %459 = arith.mulf %458, %457 : vector<16x16xf32>
    %460 = arith.addf %455, %459 : vector<16x16xf32>
    %c73 = arith.constant 73 : index
    %461 = memref.load %arg1[%c73] : memref<98xf32, #tpu.memory_space<smem>>
    %462 = vector.extract_strided_slice %337 {offsets = [3, 0], sizes = [16, 16], strides = [1, 1]} : vector<22x16xf32> to vector<16x16xf32>
    %463 = vector.broadcast %461 : f32 to vector<16x16xf32>
    %464 = arith.mulf %463, %462 : vector<16x16xf32>
    %465 = arith.addf %460, %464 : vector<16x16xf32>
    %c74 = arith.constant 74 : index
    %466 = memref.load %arg1[%c74] : memref<98xf32, #tpu.memory_space<smem>>
    %467 = vector.extract_strided_slice %338 {offsets = [3, 0], sizes = [16, 16], strides = [1, 1]} : vector<22x16xf32> to vector<16x16xf32>
    %468 = vector.broadcast %466 : f32 to vector<16x16xf32>
    %469 = arith.mulf %468, %467 : vector<16x16xf32>
    %470 = arith.addf %465, %469 : vector<16x16xf32>
    %c75 = arith.constant 75 : index
    %471 = memref.load %arg1[%c75] : memref<98xf32, #tpu.memory_space<smem>>
    %472 = vector.extract_strided_slice %339 {offsets = [3, 0], sizes = [16, 16], strides = [1, 1]} : vector<22x16xf32> to vector<16x16xf32>
    %473 = vector.broadcast %471 : f32 to vector<16x16xf32>
    %474 = arith.mulf %473, %472 : vector<16x16xf32>
    %475 = arith.addf %470, %474 : vector<16x16xf32>
    %c76 = arith.constant 76 : index
    %476 = memref.load %arg1[%c76] : memref<98xf32, #tpu.memory_space<smem>>
    %477 = vector.extract_strided_slice %340 {offsets = [3, 0], sizes = [16, 16], strides = [1, 1]} : vector<22x16xf32> to vector<16x16xf32>
    %478 = vector.broadcast %476 : f32 to vector<16x16xf32>
    %479 = arith.mulf %478, %477 : vector<16x16xf32>
    %480 = arith.addf %475, %479 : vector<16x16xf32>
    %c77 = arith.constant 77 : index
    %481 = memref.load %arg1[%c77] : memref<98xf32, #tpu.memory_space<smem>>
    %482 = vector.extract_strided_slice %334 {offsets = [4, 0], sizes = [16, 16], strides = [1, 1]} : vector<22x16xf32> to vector<16x16xf32>
    %483 = vector.broadcast %481 : f32 to vector<16x16xf32>
    %484 = arith.mulf %483, %482 : vector<16x16xf32>
    %485 = arith.addf %445, %484 : vector<16x16xf32>
    %c78 = arith.constant 78 : index
    %486 = memref.load %arg1[%c78] : memref<98xf32, #tpu.memory_space<smem>>
    %487 = vector.extract_strided_slice %335 {offsets = [4, 0], sizes = [16, 16], strides = [1, 1]} : vector<22x16xf32> to vector<16x16xf32>
    %488 = vector.broadcast %486 : f32 to vector<16x16xf32>
    %489 = arith.mulf %488, %487 : vector<16x16xf32>
    %490 = arith.addf %485, %489 : vector<16x16xf32>
    %c79 = arith.constant 79 : index
    %491 = memref.load %arg1[%c79] : memref<98xf32, #tpu.memory_space<smem>>
    %492 = vector.extract_strided_slice %336 {offsets = [4, 0], sizes = [16, 16], strides = [1, 1]} : vector<22x16xf32> to vector<16x16xf32>
    %493 = vector.broadcast %491 : f32 to vector<16x16xf32>
    %494 = arith.mulf %493, %492 : vector<16x16xf32>
    %495 = arith.addf %490, %494 : vector<16x16xf32>
    %c80 = arith.constant 80 : index
    %496 = memref.load %arg1[%c80] : memref<98xf32, #tpu.memory_space<smem>>
    %497 = vector.extract_strided_slice %337 {offsets = [4, 0], sizes = [16, 16], strides = [1, 1]} : vector<22x16xf32> to vector<16x16xf32>
    %498 = vector.broadcast %496 : f32 to vector<16x16xf32>
    %499 = arith.mulf %498, %497 : vector<16x16xf32>
    %500 = arith.addf %495, %499 : vector<16x16xf32>
    %c81 = arith.constant 81 : index
    %501 = memref.load %arg1[%c81] : memref<98xf32, #tpu.memory_space<smem>>
    %502 = vector.extract_strided_slice %338 {offsets = [4, 0], sizes = [16, 16], strides = [1, 1]} : vector<22x16xf32> to vector<16x16xf32>
    %503 = vector.broadcast %501 : f32 to vector<16x16xf32>
    %504 = arith.mulf %503, %502 : vector<16x16xf32>
    %505 = arith.addf %500, %504 : vector<16x16xf32>
    %c82 = arith.constant 82 : index
    %506 = memref.load %arg1[%c82] : memref<98xf32, #tpu.memory_space<smem>>
    %507 = vector.extract_strided_slice %339 {offsets = [4, 0], sizes = [16, 16], strides = [1, 1]} : vector<22x16xf32> to vector<16x16xf32>
    %508 = vector.broadcast %506 : f32 to vector<16x16xf32>
    %509 = arith.mulf %508, %507 : vector<16x16xf32>
    %510 = arith.addf %505, %509 : vector<16x16xf32>
    %c83 = arith.constant 83 : index
    %511 = memref.load %arg1[%c83] : memref<98xf32, #tpu.memory_space<smem>>
    %512 = vector.extract_strided_slice %340 {offsets = [4, 0], sizes = [16, 16], strides = [1, 1]} : vector<22x16xf32> to vector<16x16xf32>
    %513 = vector.broadcast %511 : f32 to vector<16x16xf32>
    %514 = arith.mulf %513, %512 : vector<16x16xf32>
    %515 = arith.addf %510, %514 : vector<16x16xf32>
    %c84 = arith.constant 84 : index
    %516 = memref.load %arg1[%c84] : memref<98xf32, #tpu.memory_space<smem>>
    %517 = vector.extract_strided_slice %334 {offsets = [5, 0], sizes = [16, 16], strides = [1, 1]} : vector<22x16xf32> to vector<16x16xf32>
    %518 = vector.broadcast %516 : f32 to vector<16x16xf32>
    %519 = arith.mulf %518, %517 : vector<16x16xf32>
    %520 = arith.addf %480, %519 : vector<16x16xf32>
    %c85 = arith.constant 85 : index
    %521 = memref.load %arg1[%c85] : memref<98xf32, #tpu.memory_space<smem>>
    %522 = vector.extract_strided_slice %335 {offsets = [5, 0], sizes = [16, 16], strides = [1, 1]} : vector<22x16xf32> to vector<16x16xf32>
    %523 = vector.broadcast %521 : f32 to vector<16x16xf32>
    %524 = arith.mulf %523, %522 : vector<16x16xf32>
    %525 = arith.addf %520, %524 : vector<16x16xf32>
    %c86 = arith.constant 86 : index
    %526 = memref.load %arg1[%c86] : memref<98xf32, #tpu.memory_space<smem>>
    %527 = vector.extract_strided_slice %336 {offsets = [5, 0], sizes = [16, 16], strides = [1, 1]} : vector<22x16xf32> to vector<16x16xf32>
    %528 = vector.broadcast %526 : f32 to vector<16x16xf32>
    %529 = arith.mulf %528, %527 : vector<16x16xf32>
    %530 = arith.addf %525, %529 : vector<16x16xf32>
    %c87 = arith.constant 87 : index
    %531 = memref.load %arg1[%c87] : memref<98xf32, #tpu.memory_space<smem>>
    %532 = vector.extract_strided_slice %337 {offsets = [5, 0], sizes = [16, 16], strides = [1, 1]} : vector<22x16xf32> to vector<16x16xf32>
    %533 = vector.broadcast %531 : f32 to vector<16x16xf32>
    %534 = arith.mulf %533, %532 : vector<16x16xf32>
    %535 = arith.addf %530, %534 : vector<16x16xf32>
    %c88 = arith.constant 88 : index
    %536 = memref.load %arg1[%c88] : memref<98xf32, #tpu.memory_space<smem>>
    %537 = vector.extract_strided_slice %338 {offsets = [5, 0], sizes = [16, 16], strides = [1, 1]} : vector<22x16xf32> to vector<16x16xf32>
    %538 = vector.broadcast %536 : f32 to vector<16x16xf32>
    %539 = arith.mulf %538, %537 : vector<16x16xf32>
    %540 = arith.addf %535, %539 : vector<16x16xf32>
    %c89 = arith.constant 89 : index
    %541 = memref.load %arg1[%c89] : memref<98xf32, #tpu.memory_space<smem>>
    %542 = vector.extract_strided_slice %339 {offsets = [5, 0], sizes = [16, 16], strides = [1, 1]} : vector<22x16xf32> to vector<16x16xf32>
    %543 = vector.broadcast %541 : f32 to vector<16x16xf32>
    %544 = arith.mulf %543, %542 : vector<16x16xf32>
    %545 = arith.addf %540, %544 : vector<16x16xf32>
    %c90 = arith.constant 90 : index
    %546 = memref.load %arg1[%c90] : memref<98xf32, #tpu.memory_space<smem>>
    %547 = vector.extract_strided_slice %340 {offsets = [5, 0], sizes = [16, 16], strides = [1, 1]} : vector<22x16xf32> to vector<16x16xf32>
    %548 = vector.broadcast %546 : f32 to vector<16x16xf32>
    %549 = arith.mulf %548, %547 : vector<16x16xf32>
    %550 = arith.addf %545, %549 : vector<16x16xf32>
    %c91 = arith.constant 91 : index
    %551 = memref.load %arg1[%c91] : memref<98xf32, #tpu.memory_space<smem>>
    %552 = vector.extract_strided_slice %334 {offsets = [6, 0], sizes = [16, 16], strides = [1, 1]} : vector<22x16xf32> to vector<16x16xf32>
    %553 = vector.broadcast %551 : f32 to vector<16x16xf32>
    %554 = arith.mulf %553, %552 : vector<16x16xf32>
    %555 = arith.addf %515, %554 : vector<16x16xf32>
    %c92 = arith.constant 92 : index
    %556 = memref.load %arg1[%c92] : memref<98xf32, #tpu.memory_space<smem>>
    %557 = vector.extract_strided_slice %335 {offsets = [6, 0], sizes = [16, 16], strides = [1, 1]} : vector<22x16xf32> to vector<16x16xf32>
    %558 = vector.broadcast %556 : f32 to vector<16x16xf32>
    %559 = arith.mulf %558, %557 : vector<16x16xf32>
    %560 = arith.addf %555, %559 : vector<16x16xf32>
    %c93 = arith.constant 93 : index
    %561 = memref.load %arg1[%c93] : memref<98xf32, #tpu.memory_space<smem>>
    %562 = vector.extract_strided_slice %336 {offsets = [6, 0], sizes = [16, 16], strides = [1, 1]} : vector<22x16xf32> to vector<16x16xf32>
    %563 = vector.broadcast %561 : f32 to vector<16x16xf32>
    %564 = arith.mulf %563, %562 : vector<16x16xf32>
    %565 = arith.addf %560, %564 : vector<16x16xf32>
    %c94 = arith.constant 94 : index
    %566 = memref.load %arg1[%c94] : memref<98xf32, #tpu.memory_space<smem>>
    %567 = vector.extract_strided_slice %337 {offsets = [6, 0], sizes = [16, 16], strides = [1, 1]} : vector<22x16xf32> to vector<16x16xf32>
    %568 = vector.broadcast %566 : f32 to vector<16x16xf32>
    %569 = arith.mulf %568, %567 : vector<16x16xf32>
    %570 = arith.addf %565, %569 : vector<16x16xf32>
    %c95 = arith.constant 95 : index
    %571 = memref.load %arg1[%c95] : memref<98xf32, #tpu.memory_space<smem>>
    %572 = vector.extract_strided_slice %338 {offsets = [6, 0], sizes = [16, 16], strides = [1, 1]} : vector<22x16xf32> to vector<16x16xf32>
    %573 = vector.broadcast %571 : f32 to vector<16x16xf32>
    %574 = arith.mulf %573, %572 : vector<16x16xf32>
    %575 = arith.addf %570, %574 : vector<16x16xf32>
    %c96 = arith.constant 96 : index
    %576 = memref.load %arg1[%c96] : memref<98xf32, #tpu.memory_space<smem>>
    %577 = vector.extract_strided_slice %339 {offsets = [6, 0], sizes = [16, 16], strides = [1, 1]} : vector<22x16xf32> to vector<16x16xf32>
    %578 = vector.broadcast %576 : f32 to vector<16x16xf32>
    %579 = arith.mulf %578, %577 : vector<16x16xf32>
    %580 = arith.addf %575, %579 : vector<16x16xf32>
    %c97 = arith.constant 97 : index
    %581 = memref.load %arg1[%c97] : memref<98xf32, #tpu.memory_space<smem>>
    %582 = vector.extract_strided_slice %340 {offsets = [6, 0], sizes = [16, 16], strides = [1, 1]} : vector<22x16xf32> to vector<16x16xf32>
    %583 = vector.broadcast %581 : f32 to vector<16x16xf32>
    %584 = arith.mulf %583, %582 : vector<16x16xf32>
    %585 = arith.addf %580, %584 : vector<16x16xf32>
    %586 = arith.addf %333, %298 : vector<16x16xf32>
    %587 = arith.addf %585, %550 : vector<16x16xf32>
    %588 = arith.addf %586, %587 : vector<16x16xf32>
    %c0_9 = arith.constant 0 : index
    %589 = memref.load %arg2[%c0_9] : memref<1xf32, #tpu.memory_space<smem>>
    %590 = vector.broadcast %589 : f32 to vector<16x16xf32>
    %591 = arith.addf %588, %590 : vector<16x16xf32>
    %592 = arith.negf %591 : vector<16x16xf32>
    %593 = math.exp %592 : vector<16x16xf32>
    %cst_10 = arith.constant 1.000000e+00 : f32
    %594 = vector.broadcast %cst_10 : f32 to vector<16x16xf32>
    %595 = arith.addf %594, %593 : vector<16x16xf32>
    %596 = arith.divf %594, %595 : vector<16x16xf32>
    %597 = vector.extract_strided_slice %596 {offsets = [0, 0], sizes = [1, 16], strides = [1, 1]} : vector<16x16xf32> to vector<1x16xf32>
    %598 = vector.extract_strided_slice %596 {offsets = [1, 0], sizes = [1, 16], strides = [1, 1]} : vector<16x16xf32> to vector<1x16xf32>
    %599 = vector.extract_strided_slice %596 {offsets = [2, 0], sizes = [1, 16], strides = [1, 1]} : vector<16x16xf32> to vector<1x16xf32>
    %600 = vector.extract_strided_slice %596 {offsets = [3, 0], sizes = [1, 16], strides = [1, 1]} : vector<16x16xf32> to vector<1x16xf32>
    %601 = vector.extract_strided_slice %596 {offsets = [4, 0], sizes = [1, 16], strides = [1, 1]} : vector<16x16xf32> to vector<1x16xf32>
    %602 = vector.extract_strided_slice %596 {offsets = [5, 0], sizes = [1, 16], strides = [1, 1]} : vector<16x16xf32> to vector<1x16xf32>
    %603 = vector.extract_strided_slice %596 {offsets = [6, 0], sizes = [1, 16], strides = [1, 1]} : vector<16x16xf32> to vector<1x16xf32>
    %604 = vector.extract_strided_slice %596 {offsets = [7, 0], sizes = [1, 16], strides = [1, 1]} : vector<16x16xf32> to vector<1x16xf32>
    %605 = vector.extract_strided_slice %596 {offsets = [8, 0], sizes = [1, 16], strides = [1, 1]} : vector<16x16xf32> to vector<1x16xf32>
    %606 = vector.extract_strided_slice %596 {offsets = [9, 0], sizes = [1, 16], strides = [1, 1]} : vector<16x16xf32> to vector<1x16xf32>
    %607 = vector.extract_strided_slice %596 {offsets = [10, 0], sizes = [1, 16], strides = [1, 1]} : vector<16x16xf32> to vector<1x16xf32>
    %608 = vector.extract_strided_slice %596 {offsets = [11, 0], sizes = [1, 16], strides = [1, 1]} : vector<16x16xf32> to vector<1x16xf32>
    %609 = vector.extract_strided_slice %596 {offsets = [12, 0], sizes = [1, 16], strides = [1, 1]} : vector<16x16xf32> to vector<1x16xf32>
    %610 = vector.extract_strided_slice %596 {offsets = [13, 0], sizes = [1, 16], strides = [1, 1]} : vector<16x16xf32> to vector<1x16xf32>
    %611 = vector.extract_strided_slice %596 {offsets = [14, 0], sizes = [1, 16], strides = [1, 1]} : vector<16x16xf32> to vector<1x16xf32>
    %612 = vector.extract_strided_slice %596 {offsets = [15, 0], sizes = [1, 16], strides = [1, 1]} : vector<16x16xf32> to vector<1x16xf32>
    %613 = tpu.concatenate %597, %598, %599, %600, %601, %602, %603, %604, %605, %606, %607, %608, %609, %610, %611, %612 in 1 : vector<1x16xf32>, vector<1x16xf32>, vector<1x16xf32>, vector<1x16xf32>, vector<1x16xf32>, vector<1x16xf32>, vector<1x16xf32>, vector<1x16xf32>, vector<1x16xf32>, vector<1x16xf32>, vector<1x16xf32>, vector<1x16xf32>, vector<1x16xf32>, vector<1x16xf32>, vector<1x16xf32>, vector<1x16xf32> -> vector<1x256xf32>
    %614 = vector.broadcast %613 : vector<1x256xf32> to vector<4x256xf32>
    %615 = arith.mulf %1, %614 : vector<4x256xf32>
    %c0_11 = arith.constant 0 : index
    %c0_12 = arith.constant 0 : index
    %c0_13 = arith.constant 0 : index
    %616 = vector.load %arg4[%c0_11, %c0_12, %c0_13] : memref<1x4x256xf32, #tpu.memory_space<vmem>>, vector<1x4x256xf32>
    %617 = vector.shape_cast %616 : vector<1x4x256xf32> to vector<4x256xf32>
    %618 = vector.shape_cast %615 : vector<4x256xf32> to vector<1x4x256xf32>
    tpu.vector_store %arg4[%c0_11, %c0_12, %c0_13], %618 {strides = array<i32>} : memref<1x4x256xf32, #tpu.memory_space<vmem>>, vector<1x4x256xf32>,
    return
  }
  func.func @transform_0(%arg0: i32) -> i32 {
    %c0_i32 = arith.constant 0 : i32
    %c0_i32_0 = arith.constant 0 : i32
    return %c0_i32 : i32
  }
  func.func @transform_1(%arg0: i32) -> i32 {
    %c0_i32 = arith.constant 0 : i32
    %c0_i32_0 = arith.constant 0 : i32
    return %c0_i32 : i32
  }
  func.func @transform_2(%arg0: i32) -> (i32, i32, i32) {
    %c0_i32 = arith.constant 0 : i32
    %c0_i32_0 = arith.constant 0 : i32
    %c0_i32_1 = arith.constant 0 : i32
    return %arg0, %c0_i32, %c0_i32_0 : i32, i32, i32
  }
  func.func @transform_3(%arg0: i32) -> (i32, i32, i32) {
    %c0_i32 = arith.constant 0 : i32
    %c0_i32_0 = arith.constant 0 : i32
    %c0_i32_1 = arith.constant 0 : i32
    return %arg0, %c0_i32, %c0_i32_0 : i32, i32, i32
  }
}

</mosaic_0001>

<bundles_post_ra>
// kernel: tpu_custom_call.1
= control target key start
LH: loop header
LB: loop body
LE: loop exit
PB: predicated region body
PF: predicated region fallthrough
CT: control target
= control target key end

     0   :  { %s4844_s0 = inlined_call_operand.vmem [shape: f32[98], index: 0, kind: input, shape index: {}]   ;;  %s4845_s1 = inlined_call_operand.<no memory space> [shape: f32[1], index: 1, kind: input, shape index: {}]   ;;  %s4846_s2 = inlined_call_operand.hbm [shape: f32[2,4,256], index: 2, kind: input, shape index: {}]   ;;  %s4847_s3 = inlined_call_operand.hbm [shape: f32[2,4,256], index: 3, kind: output, shape index: {}]  }
   0x1   :  { %8 = sst [smem:[#allocation2]] %s4845_s1 }
   0x2   :  { %9 = vsyncpa [#allocation6], 0 }
   0x3   :  { %10 = vsyncpa [#allocation4], 0 }
   0x4   :  { %12 = vsyncpa [#allocation4 + $0x1], 0 }
   0x5   :  { %13 = vsyncpa [#allocation5], 0 }
   0x6   :  { %15 = vsyncpa [#allocation5 + $0x1], 0  ;;  %s3156_s14 = smov 0   ;;  %s3158_s15 = smov 0  }
   0x7   :  { %s3160_s16 = smov 0   ;;  %s3162_s17 = smov 0  }
   0x8 LB: > { %s3177_s1 = sadd.s32 4294967295, %s3110_s17   ;;  %s2791_s18 = sadd.s32 4294967294, %s3110_s17   ;;  %s3110_s17 = sphi %s3162_s17, %s4928_s17   ;;  %s3106_s16 = sphi %s3160_s16, %s4927_s16   ;;  %s3102_s15 = sphi %s3158_s15, %s4926_s15   ;;  %s3098_s14 = sphi %s3156_s14, %s4925_s14  }
   0x9   : > { %p83_p0 = scmp.ne.s32.totalorder %s3102_s15, %s3098_s14  ;;  %p84_p1 = scmp.eq.s32.totalorder %s3177_s1, 0 }
   0xa   : > { %p107_p2 = scmp.eq.s32.totalorder %s3177_s1, 1  ;;  %p113_p3 = scmp.eq.s32.totalorder %s2791_s18, 1 }
   0xb   : > { %p3186_p4 = por %p84_p1, %p83_p0  ;;  %p2792_p5 = scmp.ge.s32.totalorder %s3110_s17, 1 }
   0xc   : > { %p3191_p6 = por %p113_p3, %p83_p0  ;;  %p120_p7 = scmp.lt.s32.totalorder %s3110_s17, 3 }
   0xd   : > { %s132_s23 = sshll.u32 %s4844_s0, 4  ;;  %s3207_s25 = sadd.s32 1, %s3110_s17   ;;  %s133_s23 = int_to_ptr.vmem [resolvable:$true] %s132_s23 }
   0xe   : > { %p3199_p8 = pnand %p2792_p5, %p120_p7  ;;  %s67_s26 = ssub.s32 %s3110_s17, %s3207_s25 }
   0xf   : > { %p68_p12 = scmp.eq.s32.totalorder %s67_s26, 0  ;;  %s70_s27 = sadd.s32 1, %s3106_s16 }
  0x10   : > { %p2916_p10 = pneg %p3199_p8  ;;  %p77_p13 = scmp.ne.s32.totalorder %s3106_s16, %s3102_s15 }
  0x11   : > { %s3112_s28 = smov [#allocation3]   ;;  %p78_p0 = scmp.eq.s32.totalorder %s3110_s17, 0 }
  0x12   : > { %p2917_p11 = pnand %p2916_p10, %p84_p1  ;;  %p3222_p3 = por %p107_p2, %p77_p13 }
  0x13   : > { %s3217_s29 = scalar_select %p68_p12, %s3106_s16, %s70_s27  }
  0x14   : > { %2919 = dma.vmem_to_smem (!%p2917_p11), %s133_s23, 16, %s3112_s28, [#allocation6]  }
  0x15   : > { %s146_s4 = sand.u32 1, %s3106_s16   ;;  %p79_p5 = por %p78_p0, %p77_p13 }
  0x16   : > { %p2929_p7 = scmp.lt.s32.totalorder %s3110_s17, 2  ;;  %s2795_s5 = sshll.u32 %s146_s4, 3 }
  0x17   : > { %s2906_s6 = sshll.u32 %s3110_s17, 3  ;;  %s150_s11 = scalar_lea.vmem [#allocation7], %s2795_s5 }
  0x18   : > { %s155_s9 = scalar_lea.hbm %s4846_s2, %s2906_s6  ;;  %s159_s12 = sshll.u32 %s150_s11, 4  ;;  %s160_s12 = int_to_ptr.vmem [resolvable:$true] %s159_s12 }
  0x19   : > { %s157_s10 = sshll.u32 %s155_s9, 4  ;;  %p3232_p10 = pnand %p2929_p7, %p79_p5  ;;  %s158_s10 = int_to_ptr.hbm [resolvable:$true] %s157_s10 }
  0x1a   : > { %s147_s18 = scalar_lea.sflag [#allocation4], %s146_s4  ;;  %s3010_s21 = sshra.s32 %s158_s10, 4  ;;  %s3011_s21 = int_to_ptr.hbm [resolvable:$true] %s3010_s21 }
  0x1b   : > { %s3012_s22 = scalar_lea.hbm %s3011_s21, 8  ;;  %p3014_p11 = pneg %p3232_p10 }
  0x1c   : > { %p3013_p2 = scmp.ne.s32.totalorder %s3011_s21, %s3012_s22  ;;  %s3017_s27 = scalar_lea.hbm %s4846_s2, 16 }
  0x1d   : > { %p3018_p0 = scmp.lt.s32.totalorder %s3011_s21, %s4846_s2  ;;  %p3019_p5 = scmp.lt.s32.totalorder %s3017_s27, %s3012_s22 }
  0x1e   : > { %p3015_p12 = pnand %p3014_p11, %p3013_p2 }
  0x1f   : > { %p3020_p7 = por %p3019_p5, %p3018_p0 }
  0x20   : > { %p3016_p13 = pneg %p3015_p12 }
  0x22   : > { %p3021_p9 = pnand %p3020_p7, %p3016_p13 }
  0x24   : > { %3024 = shalt.err (!%p3021_p9)
}
  0x25   : > { %2923 = dma.hbm_to_vmem [thread:$0]  (!%p3232_p10), %s158_s10, 128, %s160_s12, %s147_s18  }
  0x26   : > { %168 = sbr.rel (%p3199_p8) target bundleno = 1331 (0x533), region = 32 }
  0x2b   : > { %3085 = dma.done.wait (%p84_p1), [#allocation6], 16  }
  0x2c   : > { %3087 = vsyncadd (%p84_p1), [#allocation6], 4294967280  ;;  %s3253_s4 = sand.u32 1, %s3102_s15  }
  0x2d   : > { %s4848_s6 = sshll.u32 %s3253_s4, 3  ;;  %s176_s7 = scalar_lea.sflag [#allocation4], %s3253_s4 }
  0x2e   : > { %s179_s8 = scalar_lea.vmem [#allocation7], %s4848_s6 }
  0x2f   : > { %3089 = dma.done.wait (%p3186_p4), %s176_s7, 128  }
  0x30   : > { %3091 = vsyncadd (%p3186_p4), %s176_s7, 4294967168 }
  0x31   : > { %185 = sfence }
  0x32   : > { %v3263_v0 = vld [vmem:[%s179_s8] sm:$0xff]  ;;  %vm211_vm0 = vcmask 1043456   ;;  %s4849_s19 = smov 112   ;;  %s4853_s24 = smov 80   ;;  %v3116_v15 = vmov 4.0   ;;  %vm298_vm2 = vcmask 1040384  }
  0x33   : > { %4875 = vst [vmem:[#allocation12_spill] sm:$0xff] %v3263_v0  ;;  %s4857_s9 = smov 48   ;;  %2985 = vrcp.f32 %v3116_v15  ;;  %s4851_s10 = smov 96   ;;  %vm300_vm3 = vcmask 1041408   ;;  %vm302_vm4 = vcmask 1042432   ;;  %vm305_vm5 = vcmask 1044480  }
  0x34   : > { %206 = vst [vmem:[#allocation1] ss:$2 sm:$0xff] %v3263_v0  ;;  %s4855_s11 = smov 64   ;;  %s3119_s12 = smov 32   ;;  %vm307_vm6 = vcmask 1045504   ;;  %vm309_vm7 = vcmask 1046528  }
  0x35   : > { %s4859_s13 = smov 16   ;;  %s3121_s18 = smov 127   ;;  %vm338_vm8 = vcmask 7168   ;;  %vm341_vm9 = vcmask 15360   ;;  %vm380_vm10 = vcmask 23552   ;;  %vm383_vm11 = vcmask 154624  }
  0x36   : > { %s3122_s21 = smov 125   ;;  %s3123_s22 = smov 1  }
  0x37   : > { %s3124_s23 = smov 116   ;;  %s3125_s26 = smov 114  }
  0x38   : > { %s3126_s27 = smov 118   ;;  %s3127_s28 = smov 3  }
  0x39   : > { %v2986_v20 = vpop.eup %2985  ;;  %s3128_s5 = smov 19   ;;  %s3409_s7 = sld [smem:[#allocation3 + $0x2]] }
  0x3a   : > { %v246_v23 = vmul.f32 4.0, %v2986_v20  ;;  %vm250_vm1 = vweird.f32 %v2986_v20  ;;  %s3412_s8 = sld [smem:[#allocation3 + $0x3]] }
  0x3b   : > { %v207_v1 = vld.sshfl [vmem:[#allocation1] sm:$0xff pattern:$0x75316420]  ;;  %v208_v2 = vld.sshfl [vmem:[#allocation1 + $0x8] sm:$0xff pattern:$0x75316420] }
  0x3c   : > { %v212_v3 = vsel %vm211_vm0, %v207_v1, -inf  ;;  %226 = vst [vmem:[#allocation1] ss:$2 sm:$0xff] %v3263_v0  ;;  %v219_v5 = vsel %vm211_vm0, %v208_v2, -inf  ;;  %v247_v25 = vsub.f32 1.0, %v246_v23  ;;  %s2817_s6 = sld [smem:[#allocation3 + $0x10]] }
  0x3d   : > { %v213_v4 = vrot.slane %v212_v3, 4  ;;  %v220_v8 = vrot.slane %v219_v5, 4 }
  0x3e   : > { %v248_v28 = vmul.f32 %v2986_v20, %v247_v25 }
  0x3f   : > { %v214_v6 = vmax.f32 %v212_v3, %v213_v4  ;;  %v221_v11 = vmax.f32 %v219_v5, %v220_v8 }
  0x40   : > { %v249_v32 = vadd.f32 %v2986_v20, %v248_v28 }
  0x41   : > { %v215_v7 = vrot.slane %v214_v6, 2  ;;  %v222_v13 = vrot.slane %v221_v11, 2 }
  0x42   : > { %v251_v35 = vsel %vm250_vm1, %v2986_v20, %v249_v32 }
  0x43   : > { %v216_v9 = vmax.f32 %v214_v6, %v215_v7  ;;  %v227_v14 = vld.sshfl [vmem:[#allocation1] sm:$0xff pattern:$0x75316420]  ;;  %v223_v16 = vmax.f32 %v221_v11, %v222_v13  ;;  %v228_v26 = vld.sshfl [vmem:[#allocation1 + $0x8] sm:$0xff pattern:$0x75316420] }
  0x44   : > { %v231_v17 = vsel %vm211_vm0, %v227_v14, 0.0  ;;  %v238_v29 = vsel %vm211_vm0, %v228_v26, 0.0 }
  0x45   : > { %v217_v10 = vrot.slane %v216_v9, 1  ;;  %v232_v18 = vrot.slane %v231_v17, 4  ;;  %v224_v19 = vrot.slane %v223_v16, 1  ;;  %v239_v31 = vrot.slane %v238_v29, 4 }
  0x47   : > { %v3269_v12 = vmax.f32 %v216_v9, %v217_v10  ;;  %v233_v21 = vadd.f32 %v232_v18, %v231_v17  ;;  %v3284_v22 = vmax.f32 %v223_v16, %v224_v19  ;;  %v240_v34 = vadd.f32 %v239_v31, %v238_v29 }
  0x49   : > { %255 = vrot.lane.b32.xlu0 %v3269_v12, %s4849_s19  ;;  %261 = vrot.lane.b32.xlu1 %v3269_v12, %s4853_s24  ;;  %v234_v24 = vrot.slane %v233_v21, 2  ;;  %v241_v37 = vrot.slane %v240_v34, 2 }
  0x4a   : > { %267 = vrot.lane.b32.xlu2 %v3269_v12, %s4857_s9 }
  0x4b   : > { %v235_v27 = vadd.f32 %v234_v24, %v233_v21  ;;  %v242_v38 = vadd.f32 %v241_v37, %v240_v34 }
  0x4d   : > { %v236_v30 = vrot.slane %v235_v27, 1  ;;  %v243_v39 = vrot.slane %v242_v38, 1 }
  0x4f   : > { %v237_v33 = vadd.f32 %v236_v30, %v235_v27  ;;  %v244_v40 = vadd.f32 %v243_v39, %v242_v38 }
  0x51   : > { %258 = vrot.lane.b32.xlu0 %v3269_v12, %s4851_s10  ;;  %264 = vrot.lane.b32.xlu1 %v3269_v12, %s4855_s11  ;;  %v3299_v36 = vmul.f32 %v251_v35, %v237_v33  ;;  %v3313_v41 = vmul.f32 %v251_v35, %v244_v40 }
  0x52   : > { %270 = vrot.lane.b32.xlu2 %v3269_v12, %s3119_s12 }
  0x59   : > { %273 = vrot.lane.b32.xlu0 %v3269_v12, %s4859_s13  ;;  %277 = vrot.lane.b32.xlu1 %v3284_v22, %s4849_s19 }
  0x5a   : > { %280 = vrot.lane.b32.xlu2 %v3284_v22, %s4851_s10 }
  0x61   : > { %283 = vrot.lane.b32.xlu0 %v3284_v22, %s4853_s24  ;;  %286 = vrot.lane.b32.xlu1 %v3284_v22, %s4855_s11 }
  0x62   : > { %289 = vrot.lane.b32.xlu2 %v3284_v22, %s4857_s9 }
  0x69   : > { %292 = vrot.lane.b32.xlu0 %v3284_v22, %s3119_s12  ;;  %295 = vrot.lane.b32.xlu1 %v3284_v22, %s4859_s13 }
  0x6a   : > { %422 = vrot.lane.b32.xlu2 %v3299_v36, %s4853_s24 }
  0x71   : > { %416 = vrot.lane.b32.xlu0 %v3299_v36, %s4849_s19  ;;  %419 = vrot.lane.b32.xlu1 %v3299_v36, %s4851_s10 }
  0x72   : > { %431 = vrot.lane.b32.xlu2 %v3299_v36, %s3119_s12 }
  0x79   : > { %425 = vrot.lane.b32.xlu0 %v3299_v36, %s4855_s11  ;;  %428 = vrot.lane.b32.xlu1 %v3299_v36, %s4857_s9 }
  0x7a   : > { %441 = vrot.lane.b32.xlu2 %v3313_v41, %s4851_s10  ;;  %s2821_s10 = sld [smem:[#allocation3 + $0x14]] }
  0x81   : > { %434 = vrot.lane.b32.xlu0 %v3299_v36, %s4859_s13  ;;  %438 = vrot.lane.b32.xlu1 %v3313_v41, %s4849_s19  ;;  %s2818_s19 = sld [smem:[#allocation3 + $0x11]] }
  0x82   : > { %450 = vrot.lane.b32.xlu2 %v3313_v41, %s4857_s9  ;;  %s2834_s9 = sld [smem:[#allocation3 + $0x21]] }
  0x89   : > { %444 = vrot.lane.b32.xlu0 %v3313_v41, %s4853_s24  ;;  %447 = vrot.lane.b32.xlu1 %v3313_v41, %s4855_s11  ;;  %s2831_s24 = sld [smem:[#allocation3 + $0x1e]] }
  0x8a   : > { %s2832_s11 = sld [smem:[#allocation3 + $0x1f]] }
  0x91   : > { %453 = vrot.lane.b32.xlu0 %v3313_v41, %s3119_s12  ;;  %456 = vrot.lane.b32.xlu1 %v3313_v41, %s4859_s13  ;;  %s2835_s13 = sld [smem:[#allocation3 + $0x22]] }
  0xa4   : > { %v268_v42 = vpop.permute.xlu2 %267 }
  0xac   : > { %v271_v49 = vpop.permute.xlu2 %270 }
  0xb4   : > { %v281_v57 = vpop.permute.xlu2 %280 }
  0xbb   : > { %v256_v43 = vpop.permute.xlu0 %255  ;;  %v262_v44 = vpop.permute.xlu1 %261 }
  0xbc   : > { %v299_v45 = vsel %vm298_vm2, %v3269_v12, %v256_v43  ;;  %v290_v1 = vpop.permute.xlu2 %289 }
  0xc3   : > { %v259_v46 = vpop.permute.xlu0 %258  ;;  %v265_v47 = vpop.permute.xlu1 %264 }
  0xc4   : > { %v301_v48 = vsel %vm300_vm3, %v299_v45, %v259_v46  ;;  %v423_v7 = vpop.permute.xlu2 %422 }
  0xc5   : > { %v303_v50 = vsel %vm302_vm4, %v301_v48, %v262_v44 }
  0xc6   : > { %v304_v51 = vsel %vm211_vm0, %v303_v50, %v265_v47 }
  0xc7   : > { %v306_v52 = vsel %vm305_vm5, %v304_v51, %v268_v42 }
  0xc8   : > { %v308_v53 = vsel %vm307_vm6, %v306_v52, %v271_v49 }
  0xcb   : > { %v274_v54 = vpop.permute.xlu0 %273  ;;  %v278_v55 = vpop.permute.xlu1 %277 }
  0xcc   : > { %v310_v56 = vsel %vm309_vm7, %v308_v53, %v274_v54  ;;  %v311_v58 = vsel %vm298_vm2, %v3284_v22, %v278_v55  ;;  %v432_v13 = vpop.permute.xlu2 %431 }
  0xcd   : > { %326 = vrot.lane.b32.xlu1 %v310_v56, %s3121_s18  ;;  %320 = vrot.lane.b32.xlu2 %v310_v56, %s3122_s21  ;;  %v312_v61 = vsel %vm300_vm3, %v311_v58, %v281_v57 }
  0xd3   : > { %v284_v59 = vpop.permute.xlu0 %283  ;;  %v287_v60 = vpop.permute.xlu1 %286 }
  0xd4   : > { %v313_v62 = vsel %vm302_vm4, %v312_v61, %v284_v59  ;;  %v442_v22 = vpop.permute.xlu2 %441 }
  0xd5   : > { %v314_v63 = vsel %vm211_vm0, %v313_v62, %v287_v60 }
  0xd6   : > { %v315_v2 = vsel %vm305_vm5, %v314_v63, %v290_v1 }
  0xdb   : > { %v293_v3 = vpop.permute.xlu0 %292  ;;  %v296_v4 = vpop.permute.xlu1 %295 }
  0xdc   : > { %v316_v5 = vsel %vm307_vm6, %v315_v2, %v293_v3  ;;  %v451_v29 = vpop.permute.xlu2 %450 }
  0xdd   : > { %v317_v6 = vsel %vm309_vm7, %v316_v5, %v296_v4 }
  0xde   : > { %334 = vrot.lane.b32.xlu1 %v317_v6, %s3123_s22  ;;  %328 = vrot.lane.b32.xlu2 %v317_v6, %s3121_s18 }
  0xdf   : > { %322 = vrot.lane.b32.xlu0 %v317_v6, %s3122_s21 }
  0xe3   : > { %v417_v8 = vpop.permute.xlu0 %416  ;;  %v420_v9 = vpop.permute.xlu1 %419 }
  0xe4   : > { %v459_v10 = vsel %vm298_vm2, %v3299_v36, %v417_v8 }
  0xe5   : > { %v460_v11 = vsel %vm300_vm3, %v459_v10, %v420_v9 }
  0xe6   : > { %350 = vrot.lane.b32.xlu1 %v310_v56, %s3124_s23  ;;  %344 = vrot.lane.b32.xlu2 %v310_v56, %s3125_s26  ;;  %v461_v12 = vsel %vm302_vm4, %v460_v11, %v423_v7 }
  0xe7   : > { %332 = vrot.lane.b32.xlu0 %v310_v56, %s3123_s22 }
  0xeb   : > { %v426_v14 = vpop.permute.xlu0 %425  ;;  %v429_v15 = vpop.permute.xlu1 %428 }
  0xec   : > { %v462_v16 = vsel %vm211_vm0, %v461_v12, %v426_v14 }
  0xed   : > { %v463_v17 = vsel %vm305_vm5, %v462_v16, %v429_v15 }
  0xee   : > { %358 = vrot.lane.b32.xlu1 %v317_v6, %s3126_s27  ;;  %352 = vrot.lane.b32.xlu2 %v317_v6, %s3124_s23  ;;  %v464_v18 = vsel %vm307_vm6, %v463_v17, %v432_v13 }
  0xef   : > { %346 = vrot.lane.b32.xlu0 %v317_v6, %s3125_s26 }
  0xf3   : > { %v435_v19 = vpop.permute.xlu0 %434  ;;  %v439_v20 = vpop.permute.xlu1 %438 }
  0xf4   : > { %v465_v21 = vsel %vm309_vm7, %v464_v18, %v435_v19  ;;  %v466_v23 = vsel %vm298_vm2, %v3313_v41, %v439_v20 }
  0xf5   : > { %v467_v24 = vsel %vm300_vm3, %v466_v23, %v442_v22 }
  0xf6   : > { %366 = vrot.lane.b32.xlu2 %v310_v56, %s3127_s28  ;;  %481 = vrot.lane.b32.xlu1 %v465_v21, %s3121_s18 }
  0xf7   : > { %356 = vrot.lane.b32.xlu0 %v310_v56, %s3126_s27 }
  0xfb   : > { %v445_v25 = vpop.permute.xlu0 %444  ;;  %v448_v26 = vpop.permute.xlu1 %447 }
  0xfc   : > { %v468_v27 = vsel %vm302_vm4, %v467_v24, %v445_v25  ;;  %v587_v25 = vstv %s3409_s7  ;;  %s3130_s7 = smov 123  }
  0xfd   : > { %v469_v28 = vsel %vm211_vm0, %v468_v27, %v448_v26  ;;  %v601_v26 = vstv %s3412_s8  ;;  %s3131_s8 = smov 122  }
  0xfe   : > { %475 = vrot.lane.b32.xlu2 %v465_v21, %s3122_s21  ;;  %v470_v30 = vsel %vm305_vm5, %v469_v28, %v451_v29  ;;  %vm2662_vm5 = vcmask 130048  }
  0xff   : > { %368 = vrot.lane.b32.xlu0 %v317_v6, %s3127_s28 }
 0x103   : > { %v454_v31 = vpop.permute.xlu0 %453  ;;  %v457_v32 = vpop.permute.xlu1 %456 }
 0x104   : > { %v471_v33 = vsel %vm307_vm6, %v470_v30, %v454_v31 }
 0x105   : > { %v472_v34 = vsel %vm309_vm7, %v471_v33, %v457_v32 }
 0x106   : > { %489 = vrot.lane.b32.xlu1 %v472_v34, %s3123_s22  ;;  %483 = vrot.lane.b32.xlu2 %v472_v34, %s3121_s18 }
 0x107   : > { %477 = vrot.lane.b32.xlu0 %v472_v34, %s3122_s21 }
 0x10e   : > { %503 = vrot.lane.b32.xlu1 %v465_v21, %s3124_s23  ;;  %497 = vrot.lane.b32.xlu2 %v465_v21, %s3125_s26 }
 0x10f   : > { %487 = vrot.lane.b32.xlu0 %v465_v21, %s3123_s22  ;;  %s3414_s22 = sld [smem:[#allocation3 + $0x1]] }
 0x115   : > { %v573_v27 = vstv %s3414_s22  ;;  %s3132_s22 = smov 124  }
 0x116   : > { %511 = vrot.lane.b32.xlu1 %v472_v34, %s3126_s27  ;;  %505 = vrot.lane.b32.xlu2 %v472_v34, %s3124_s23  ;;  %s3429_s23 = sld [smem:[#allocation3 + $0x5]] }
 0x117   : > { %499 = vrot.lane.b32.xlu0 %v472_v34, %s3125_s26  ;;  %s2807_s26 = sld [smem:[#allocation3 + $0x6]] }
 0x11e   : > { %519 = vrot.lane.b32.xlu2 %v465_v21, %s3127_s28 }
 0x11f   : > { %509 = vrot.lane.b32.xlu0 %v465_v21, %s3126_s27  ;;  %s3431_s27 = sld [smem:[#allocation3 + $0x4]] }
 0x127   : > { %521 = vrot.lane.b32.xlu0 %v472_v34, %s3127_s28  ;;  %v321_v35 = vpop.permute.xlu2 %320  ;;  %s3129_s28 = smov 126  }
 0x138   : > { %v329_v36 = vpop.permute.xlu2 %328 }
 0x13f   : > { %v327_v38 = vpop.permute.xlu1 %326 }
 0x140   : > { %v345_v37 = vpop.permute.xlu2 %344  ;;  %v339_v17 = vsel %vm338_vm8, %v321_v35, %v327_v38 }
 0x148   : > { %v353_v39 = vpop.permute.xlu2 %352 }
 0x150   : > { %v335_v40 = vpop.permute.xlu1 %334  ;;  %v367_v41 = vpop.permute.xlu2 %366 }
 0x151   : > { %v323_v42 = vpop.permute.xlu0 %322 }
 0x152   : > { %v340_v14 = vsel %vm338_vm8, %v323_v42, %v329_v36 }
 0x153   : > { %v343_v16 = vsel %vm341_vm9, %v340_v14, %v335_v40  ;;  %v643_v40 = vstv %s2807_s26  ;;  %s2811_s26 = sld [smem:[#allocation3 + $0xa]] }
 0x158   : > { %v351_v43 = vpop.permute.xlu1 %350  ;;  %v476_v44 = vpop.permute.xlu2 %475 }
 0x159   : > { %v333_v45 = vpop.permute.xlu0 %332  ;;  %v362_v51 = vsel %vm338_vm8, %v345_v37, %v351_v43 }
 0x15a   : > { %v342_v19 = vsel %vm341_vm9, %v339_v17, %v333_v45  ;;  %v3520_v17 = vstv %s2835_s13  ;;  %s2825_s13 = sld [smem:[#allocation3 + $0x18]] }
 0x15b   : > { %v381_v22 = vsel %vm380_vm10, %v342_v19, %v367_v41  ;;  %v615_v41 = vstv %s3431_s27  ;;  %s2812_s27 = sld [smem:[#allocation3 + $0xb]] }
 0x160   : > { %v359_v46 = vpop.permute.xlu1 %358  ;;  %v484_v49 = vpop.permute.xlu2 %483 }
 0x161   : > { %v347_v47 = vpop.permute.xlu0 %346 }
 0x162   : > { %v363_v48 = vsel %vm338_vm8, %v347_v47, %v353_v39  ;;  %v629_v39 = vstv %s3429_s23  ;;  %s2810_s23 = sld [smem:[#allocation3 + $0x9]] }
 0x163   : > { %v365_v50 = vsel %vm341_vm9, %v363_v48, %v359_v46 }
 0x164   : > { %376 = vrot.lane.b32.xlu2 %v365_v50, %s3128_s5 }
 0x168   : > { %v498_v54 = vpop.permute.xlu2 %497  ;;  %v482_v55 = vpop.permute.xlu1 %481 }
 0x169   : > { %v357_v52 = vpop.permute.xlu0 %356  ;;  %v493_v60 = vsel %vm338_vm8, %v476_v44, %v482_v55 }
 0x16a   : > { %v364_v53 = vsel %vm341_vm9, %v362_v51, %v357_v52 }
 0x16b   : > { %374 = vrot.lane.b32.xlu1 %v364_v53, %s3128_s5 }
 0x170   : > { %v506_v57 = vpop.permute.xlu2 %505 }
 0x171   : > { %v369_v56 = vpop.permute.xlu0 %368 }
 0x172   : > { %v382_v18 = vsel %vm380_vm10, %v343_v16, %v369_v56  ;;  %v3518_v16 = vstv %s2834_s9  ;;  %s2819_s9 = sld [smem:[#allocation3 + $0x12]] }
 0x178   : > { %v490_v58 = vpop.permute.xlu1 %489  ;;  %v520_v62 = vpop.permute.xlu2 %519 }
 0x179   : > { %v478_v59 = vpop.permute.xlu0 %477 }
 0x17a   : > { %v494_v10 = vsel %vm338_vm8, %v478_v59, %v484_v49 }
 0x17b   : > { %v496_v11 = vsel %vm341_vm9, %v494_v10, %v490_v58  ;;  %v685_v58 = vstv %s2810_s23  ;;  %v3505_v10 = vstv %s2821_s10  ;;  %s2823_s10 = sld [smem:[#allocation3 + $0x16]] }
 0x17c   : > { %s2826_s23 = sld [smem:[#allocation3 + $0x19]] }
 0x180   : > { %v504_v61 = vpop.permute.xlu1 %503 }
 0x181   : > { %v488_v63 = vpop.permute.xlu0 %487  ;;  %v515_v7 = vsel %vm338_vm8, %v498_v54, %v504_v61 }
 0x182   : > { %v495_v1 = vsel %vm341_vm9, %v493_v60, %v488_v63  ;;  %v3485_v63 = vstv %s2817_s6  ;;  %s3556_s6 = sld [smem:[#allocation3 + $0xc]] }
 0x183   : > { %v3398_v2 = vsel %vm380_vm10, %v495_v1, %v520_v62 }
 0x188   : > { %v512_v3 = vpop.permute.xlu1 %511 }
 0x189   : > { %v500_v4 = vpop.permute.xlu0 %499 }
 0x18a   : > { %v516_v5 = vsel %vm338_vm8, %v500_v4, %v506_v57  ;;  %v3489_v4 = vstv %s2811_s26  ;;  %s2827_s26 = sld [smem:[#allocation3 + $0x1a]]  ;;  %vm2668_vm8 = vcmask 523264  }
 0x18b   : > { %v518_v6 = vsel %vm341_vm9, %v516_v5, %v512_v3 }
 0x18c   : > { %529 = vrot.lane.b32.xlu2 %v518_v6, %s3128_s5  ;;  %v3493_v6 = vstv %s2812_s27  ;;  %s2828_s27 = sld [smem:[#allocation3 + $0x1b]] }
 0x191   : > { %v510_v8 = vpop.permute.xlu0 %509 }
 0x192   : > { %v517_v9 = vsel %vm341_vm9, %v515_v7, %v510_v8  ;;  %v3495_v7 = vstv %s2818_s19  ;;  %s2814_s19 = sld [smem:[#allocation3 + $0xd]]  ;;  %vm2670_vm9 = vcmask 654336  }
 0x193   : > { %527 = vrot.lane.b32.xlu1 %v517_v9, %s3128_s5  ;;  %s2809_s5 = sld [smem:[#allocation3 + $0x8]] }
 0x199   : > { %v522_v12 = vpop.permute.xlu0 %521  ;;  %v665_v51 = vstv %s2809_s5  ;;  %s2820_s5 = sld [smem:[#allocation3 + $0x13]] }
 0x19a   : > { %v3407_v13 = vsel %vm380_vm10, %v496_v11, %v522_v12  ;;  %v3507_v11 = vstv %s2831_s24  ;;  %s2816_s24 = sld [smem:[#allocation3 + $0xf]]  ;;  %vm2672_vm10 = vcmask 785408  }
 0x19f   : > { %v3497_v8 = vstv %s2820_s5  ;;  %s2830_s5 = sld [smem:[#allocation3 + $0x1d]] }
 0x1be   : > { %v377_v15 = vpop.permute.xlu2 %376 }
 0x1bf   : > { %v3421_v20 = vsel %vm383_vm11, %v382_v18, %v377_v15 }
 0x1c0   : > { %v405_v21 = vrot.slane %v3421_v20, 5  ;;  %v396_v47 = vrot.slane %v3421_v20, 6  ;;  %v398_v48 = vrot.slane %v3421_v20, 4  ;;  %v400_v53 = vrot.slane %v3421_v20, 2 }
 0x1c2   : > { %v402_v54 = vsel %vm298_vm2, %v396_v47, %v398_v48 }
 0x1c3   : > { %v403_v55 = vsel %vm300_vm3, %v402_v54, %v400_v53 }
 0x1c4   : > { %v411_v59 = vrot.slane %v403_v55, 5 }
 0x1c6   : > { %v3483_v61 = vsel %vm302_vm4, %v405_v21, %v411_v59 }
 0x1c7   : > { %v668_v3 = vmul.f32 %v665_v51, %v3483_v61  ;;  %v826_v12 = vmul.f32 %v3485_v63, %v3483_v61  ;;  %v688_v19 = vmul.f32 %v685_v58, %v3483_v61  ;;  %v1201_v47 = vmul.f32 %v3518_v16, %v3483_v61 }
 0x1c8   : > { %v1222_v48 = vmul.f32 %v3520_v17, %v3483_v61 }
 0x1dd   : > { %v375_v23 = vpop.permute.xlu1 %374 }
 0x1de   : > { %v384_v24 = vsel %vm383_vm11, %v381_v22, %v375_v23 }
 0x1df   : > { %v387_v28 = vrot.slane %v384_v24, 3  ;;  %v389_v29 = vrot.slane %v384_v24, 1  ;;  %v391_v30 = vrot.slane %v384_v24, 7  ;;  %v404_v31 = vrot.slane %v384_v24, 5 }
 0x1e1   : > { %v393_v32 = vsel %vm298_vm2, %v387_v28, %v389_v29  ;;  %v3437_v33 = vsel %vm302_vm4, %v404_v31, %v405_v21  ;;  %v847_v21 = vmul.f32 %v3495_v7, %v3483_v61  ;;  %v1138_v28 = vmul.f32 %v3507_v11, %v3483_v61 }
 0x1e2   : > { %v589_v34 = vmul.f32 %v587_v25, %v3437_v33  ;;  %v603_v35 = vmul.f32 %v601_v26, %v3437_v33  ;;  %v575_v36 = vmul.f32 %v573_v27, %v3437_v33  ;;  %v394_v37 = vsel %vm300_vm3, %v393_v32, %v391_v30 }
 0x1e3   : > { %v3447_v38 = vsel %vm302_vm4, %v394_v37, %v404_v31  ;;  %v631_v44 = vmul.f32 %v629_v39, %v3437_v33  ;;  %v645_v45 = vmul.f32 %v643_v40, %v3437_v33  ;;  %v617_v46 = vmul.f32 %v615_v41, %v3437_v33 }
 0x1e4   : > { %594 = vrot.lane.b32.xlu0 %v589_v34, %s3129_s28  ;;  %608 = vrot.lane.b32.xlu2 %v603_v35, %s3122_s21  ;;  %v3452_v42 = vmul.f32 %v601_v26, %v3447_v38  ;;  %v3455_v43 = vmul.f32 %v643_v40, %v3447_v38  ;;  %v574_v49 = vmul.f32 %v573_v27, %v3447_v38 }
 0x1e5   : > { %580 = vrot.lane.b32.xlu1 %v575_v36, %s3121_s18  ;;  %v588_v50 = vmul.f32 %v587_v25, %v3447_v38  ;;  %v667_v52 = vmul.f32 %v665_v51, %v3437_v33  ;;  %v616_v56 = vmul.f32 %v615_v41, %v3447_v38  ;;  %v630_v57 = vmul.f32 %v629_v39, %v3447_v38 }
 0x1e6   : > { %v687_v60 = vmul.f32 %v685_v58, %v3437_v33  ;;  %v530_v62 = vpop.permute.xlu2 %529  ;;  %v666_v1 = vmul.f32 %v665_v51, %v3447_v38  ;;  %v707_v5 = vmul.f32 %v3489_v4, %v3437_v33  ;;  %v3514_v15 = vmul.f32 %v3485_v63, %v3437_v33 }
 0x1e7   : > { %v3501_v9 = vsel %vm383_vm11, %v3407_v13, %v530_v62  ;;  %v3516_v13 = vstv %s2832_s11  ;;  %v3529_v20 = vmul.f32 %v3495_v7, %v3437_v33  ;;  %v3537_v24 = vmul.f32 %v3497_v8, %v3437_v33  ;;  %s2824_s11 = sld [smem:[#allocation3 + $0x17]] }
 0x1e8   : > { %v4861_v22 = vrot.slane %v3501_v9, 5  ;;  %v833_v25 = vrot.slane %v826_v12, 2  ;;  %v889_v26 = vmul.f32 %v3497_v8, %v3483_v61  ;;  %v910_v27 = vmul.f32 %v3505_v10, %v3483_v61 }
 0x1e9   : > { %v831_v30 = vrot.slane %v3514_v15, 2  ;;  %v3561_v31 = vmul.f32 %v3507_v11, %v3437_v33  ;;  %v3565_v32 = vmul.f32 %v3516_v13, %v3437_v33  ;;  %v686_v34 = vmul.f32 %v685_v58, %v3447_v38 }
 0x1ea   : > { %v852_v35 = vrot.slane %v3529_v20, 2  ;;  %v3571_v36 = vmul.f32 %v3518_v16, %v3437_v33  ;;  %v3575_v37 = vmul.f32 %v3520_v17, %v3437_v33  ;;  %v727_v39 = vmul.f32 %v3493_v6, %v3437_v33 }
 0x1eb   : > { %v894_v40 = vrot.slane %v3537_v24, 2  ;;  %v3595_v51 = vsel %vm307_vm6, %v831_v30, %v833_v25  ;;  %v1145_v58 = vrot.slane %v1138_v28, 4  ;;  %v1229_v62 = vrot.slane %v1222_v48, 4 }
 0x1ec   : > { %636 = vrot.lane.b32.xlu0 %v631_v44, %s3130_s7  ;;  %650 = vrot.lane.b32.xlu2 %v645_v45, %s3131_s8  ;;  %v1159_v44 = vmul.f32 %v3516_v13, %v3483_v61  ;;  %v854_v45 = vrot.slane %v847_v21, 2  ;;  %v1206_v53 = vrot.slane %v3571_v36, 4  ;;  %v1227_v54 = vrot.slane %v3575_v37, 4 }
 0x1ed   : > { %622 = vrot.lane.b32.xlu1 %v617_v46, %s3132_s22  ;;  %v896_v46 = vrot.slane %v889_v26, 2  ;;  %v706_v12 = vmul.f32 %v3489_v4, %v3447_v38  ;;  %v728_v26 = vmul.f32 %v3493_v6, %v3483_v61  ;;  %v1022_v37 = vstv %s2826_s23  ;;  %s2844_s23 = sld [smem:[#allocation3 + $0x2b]] }
 0x1ee   : > { %v3602_v55 = vsel %vm307_vm6, %v852_v35, %v854_v45  ;;  %v1166_v59 = vrot.slane %v1159_v44, 4  ;;  %v3637_v21 = vsel %vm211_vm0, %v1227_v54, %v1229_v62  ;;  %v3659_v45 = vstv %s2816_s24  ;;  %s2838_s24 = sld [smem:[#allocation3 + $0x25]] }
 0x1ef   : > { %v3673_v48 = vmul.f32 %v3659_v45, %v3437_v33 }
 0x1f4   : > { %578 = vrot.lane.b32.xlu0 %v574_v49, %s3121_s18  ;;  %592 = vrot.lane.b32.xlu2 %v588_v50, %s3129_s28  ;;  %v1143_v49 = vrot.slane %v3561_v31, 4  ;;  %v1164_v50 = vrot.slane %v3565_v32, 4 }
 0x1f5   : > { %674 = vrot.lane.b32.xlu1 %v667_v52, %s3121_s18  ;;  %v917_v52 = vrot.slane %v910_v27, 2  ;;  %v765_v27 = vstv %s2814_s19  ;;  %s2837_s19 = sld [smem:[#allocation3 + $0x24]] }
 0x1f6   : > { %v767_v28 = vmul.f32 %v765_v27, %v3437_v33  ;;  %v768_v44 = vmul.f32 %v765_v27, %v3483_v61 }
 0x1fc   : > { %620 = vrot.lane.b32.xlu0 %v616_v56, %s3132_s22  ;;  %634 = vrot.lane.b32.xlu2 %v630_v57, %s3130_s7  ;;  %v3607_v56 = vsel %vm307_vm6, %v894_v40, %v896_v46  ;;  %v803_v46 = vmul.f32 %v3659_v45, %v3447_v38 }
 0x1fd   : > { %694 = vrot.lane.b32.xlu1 %v687_v60, %s3129_s28  ;;  %v1208_v60 = vrot.slane %v1201_v47, 4  ;;  %v824_v47 = vmul.f32 %v3485_v63, %v3447_v38  ;;  %v3676_v63 = vstv %s2819_s9  ;;  %s2839_s9 = sld [smem:[#allocation3 + $0x26]] }
 0x1fe   : > { %v3698_v15 = vmul.f32 %v3676_v63, %v3437_v33 }
 0x204   : > { %672 = vrot.lane.b32.xlu0 %v666_v1, %s3121_s18  ;;  %676 = vrot.lane.b32.xlu2 %v668_v3, %s3121_s18  ;;  %v745_v1 = vstv %s3556_s6  ;;  %v3618_v3 = vsel %vm211_vm0, %v1143_v49, %v1145_v58  ;;  %v830_v58 = vrot.slane %v824_v47, 2  ;;  %v1199_v47 = vmul.f32 %v3518_v16, %v3447_v38  ;;  %s2833_s6 = sld [smem:[#allocation3 + $0x20]] }
 0x205   : > { %714 = vrot.lane.b32.xlu1 %v707_v5, %s3122_s21  ;;  %v528_v14 = vpop.permute.xlu1 %527  ;;  %v3623_v5 = vsel %vm211_vm0, %v1164_v50, %v1166_v59  ;;  %v747_v25 = vmul.f32 %v745_v1, %v3437_v33 }
 0x206   : > { %v3524_v18 = vsel %vm383_vm11, %v3398_v2, %v528_v14  ;;  %v3541_v2 = vmul.f32 %v3505_v10, %v3437_v33  ;;  %v708_v14 = vmul.f32 %v3489_v4, %v3483_v61  ;;  %v726_v4 = vmul.f32 %v3493_v6, %v3447_v38 }
 0x207   : > { %v4862_v23 = vrot.slane %v3524_v18, 5  ;;  %v766_v6 = vmul.f32 %v765_v27, %v3447_v38  ;;  %v1136_v27 = vmul.f32 %v3507_v11, %v3447_v38  ;;  %v1205_v16 = vrot.slane %v1199_v47, 4 }
 0x208   : > { %v915_v41 = vrot.slane %v3541_v2, 2  ;;  %vm2674_vm11 = vcmask 916480  }
 0x209   : > { %v3554_v29 = vsel %vm302_vm4, %v4862_v23, %v4861_v22  ;;  %v1142_v11 = vrot.slane %v1136_v27, 4 }
 0x20a   : > { %v3612_v57 = vsel %vm307_vm6, %v915_v41, %v917_v52  ;;  %v809_v52 = vrot.slane %v803_v46, 2  ;;  %v972_v46 = vstv %s2824_s11  ;;  %s2841_s11 = sld [smem:[#allocation3 + $0x28]] }
 0x20b   : > { %v3742_v31 = vmul.f32 %v972_v46, %v3437_v33  ;;  %v975_v27 = vmul.f32 %v972_v46, %v3483_v61 }
 0x20c   : > { %692 = vrot.lane.b32.xlu0 %v686_v34, %s3129_s28  ;;  %696 = vrot.lane.b32.xlu2 %v688_v19, %s3129_s28  ;;  %v3632_v19 = vsel %vm211_vm0, %v1206_v53, %v1208_v60  ;;  %v746_v34 = vmul.f32 %v745_v1, %v3447_v38  ;;  %v810_v60 = vrot.slane %v3673_v48, 2 }
 0x20d   : > { %734 = vrot.lane.b32.xlu1 %v727_v39, %s3132_s22  ;;  %v748_v39 = vmul.f32 %v745_v1, %v3483_v61  ;;  %v887_v1 = vmul.f32 %v3497_v8, %v3447_v38 }
 0x20e   : > { %v811_v62 = vsel %vm307_vm6, %v809_v52, %v810_v60  ;;  %v1220_v52 = vmul.f32 %v3520_v17, %v3447_v38  ;;  %v1207_v17 = vsel %vm211_vm0, %v1205_v16, %v1206_v53  ;;  %v805_v53 = vmul.f32 %v3659_v45, %v3483_v61 }
 0x214   : > { %712 = vrot.lane.b32.xlu0 %v706_v12, %s3122_s21  ;;  %716 = vrot.lane.b32.xlu2 %v708_v14, %s3122_s21  ;;  %v908_v14 = vmul.f32 %v3505_v10, %v3447_v38 }
 0x215   : > { %754 = vrot.lane.b32.xlu1 %v747_v25, %s3130_s7  ;;  %v893_v25 = vrot.slane %v887_v1, 2 }
 0x216   : > { %v914_v8 = vrot.slane %v908_v14, 2 }
 0x217   : > { %v895_v10 = vsel %vm307_vm6, %v893_v25, %v894_v40 }
 0x21c   : > { %732 = vrot.lane.b32.xlu0 %v726_v4, %s3132_s22  ;;  %736 = vrot.lane.b32.xlu2 %v728_v26, %s3132_s22  ;;  %v873_v4 = vrot.slane %v3698_v15, 2  ;;  %v947_v26 = vstv %s2823_s10  ;;  %v1072_v15 = vstv %s2828_s27  ;;  %s2840_s10 = sld [smem:[#allocation3 + $0x27]] }
 0x21d   : > { %774 = vrot.lane.b32.xlu1 %v767_v28, %s3131_s8  ;;  %v916_v28 = vsel %vm307_vm6, %v914_v8, %v915_v41  ;;  %v3719_v24 = vmul.f32 %v947_v26, %v3437_v33  ;;  %v973_v41 = vmul.f32 %v972_v46, %v3447_v38  ;;  %v950_v36 = vmul.f32 %v947_v26, %v3483_v61  ;;  %s2808_s27 = sld [smem:[#allocation3 + $0x7]] }
 0x21e   : > { %v812_v8 = vrot.slane %v805_v53, 2 }
 0x21f   : > { %v957_v25 = vrot.slane %v950_v36, 2  ;;  %v1025_v36 = vmul.f32 %v1022_v37, %v3483_v61 }
 0x220   : > { %v813_v45 = vsel %vm307_vm6, %v810_v60, %v812_v8  ;;  %v982_v60 = vrot.slane %v975_v27, 2 }
 0x224   : > { %752 = vrot.lane.b32.xlu0 %v746_v34, %s3130_s7  ;;  %756 = vrot.lane.b32.xlu2 %v748_v39, %s3130_s7  ;;  %v1157_v34 = vmul.f32 %v3516_v13, %v3447_v38  ;;  %v1144_v13 = vsel %vm211_vm0, %v1142_v11, %v1143_v49 }
 0x225   : > { %606 = vrot.lane.b32.xlu1 %v3452_v42, %s3122_s21  ;;  %v845_v42 = vmul.f32 %v3495_v7, %v3447_v38  ;;  %v866_v7 = vmul.f32 %v3676_v63, %v3447_v38 }
 0x227   : > { %v851_v59 = vrot.slane %v845_v42, 2 }
 0x229   : > { %v853_v12 = vsel %vm307_vm6, %v851_v59, %v852_v35  ;;  %v948_v35 = vmul.f32 %v947_v26, %v3447_v38  ;;  %v1226_v59 = vrot.slane %v1220_v52, 4  ;;  %v3780_v26 = vmul.f32 %v1022_v37, %v3437_v33 }
 0x22b   : > { %v954_v39 = vrot.slane %v948_v35, 2  ;;  %v1030_v48 = vrot.slane %v3780_v26, 2 }
 0x22c   : > { %772 = vrot.lane.b32.xlu0 %v766_v6, %s3131_s8  ;;  %776 = vrot.lane.b32.xlu2 %v768_v44, %s3131_s8  ;;  %v1163_v6 = vrot.slane %v1157_v34, 4  ;;  %v955_v44 = vrot.slane %v3719_v24, 2  ;;  %v3834_v24 = vstv %s2830_s5  ;;  %s2846_s5 = sld [smem:[#allocation3 + $0x2d]] }
 0x22d   : > { %648 = vrot.lane.b32.xlu1 %v3455_v43, %s3131_s8  ;;  %v832_v43 = vsel %vm307_vm6, %v830_v58, %v831_v30  ;;  %v872_v30 = vrot.slane %v866_v7, 2  ;;  %v979_v58 = vrot.slane %v973_v41, 2  ;;  %v1228_v7 = vsel %vm211_vm0, %v1226_v59, %v1227_v54 }
 0x22e   : > { %v956_v2 = vsel %vm307_vm6, %v954_v39, %v955_v44  ;;  %v1165_v42 = vsel %vm211_vm0, %v1163_v6, %v1164_v50  ;;  %v1047_v6 = vstv %s2827_s26  ;;  %s2845_s26 = sld [smem:[#allocation3 + $0x2c]] }
 0x22f   : > { %v874_v20 = vsel %vm307_vm6, %v872_v30, %v873_v4  ;;  %v3803_v46 = vmul.f32 %v1047_v6, %v3437_v33 }
 0x231   : > { %v1055_v16 = vrot.slane %v3803_v46, 2 }
 0x234   : > { %814 = vrot.lane.b32.xlu0 %v811_v62, %s3121_s18  ;;  %835 = vrot.lane.b32.xlu2 %v832_v43, %s3129_s28  ;;  %v980_v62 = vrot.slane %v3742_v31, 2  ;;  %v997_v43 = vstv %s2825_s13  ;;  %s2842_s13 = sld [smem:[#allocation3 + $0x29]] }
 0x235   : > { %856 = vrot.lane.b32.xlu1 %v853_v12, %s3122_s21  ;;  %v998_v50 = vmul.f32 %v997_v43, %v3447_v38  ;;  %v3761_v1 = vmul.f32 %v997_v43, %v3437_v33 }
 0x236   : > { %v981_v32 = vsel %vm307_vm6, %v979_v58, %v980_v62 }
 0x237   : > { %v1004_v14 = vrot.slane %v998_v50, 2  ;;  %v1005_v30 = vrot.slane %v3761_v1, 2 }
 0x239   : > { %v1006_v54 = vsel %vm307_vm6, %v1004_v14, %v1005_v30 }
 0x23c   : > { %877 = vrot.lane.b32.xlu0 %v874_v20, %s3132_s22  ;;  %898 = vrot.lane.b32.xlu2 %v895_v10, %s3130_s7  ;;  %v1023_v20 = vmul.f32 %v1022_v37, %v3447_v38  ;;  %v983_v37 = vsel %vm307_vm6, %v980_v62, %v982_v60 }
 0x23d   : > { %919 = vrot.lane.b32.xlu1 %v916_v28, %s3131_s8  ;;  %v868_v28 = vmul.f32 %v3676_v63, %v3483_v61 }
 0x23e   : > { %v3721_v40 = vpop.permute.xlu2 %608  ;;  %v1029_v39 = vrot.slane %v1023_v20, 2  ;;  %v3849_v20 = vmul.f32 %v3834_v24, %v3437_v33 }
 0x23f   : > { %v875_v11 = vrot.slane %v868_v28, 2  ;;  %v1050_v28 = vmul.f32 %v1047_v6, %v3483_v61 }
 0x241   : > { %v876_v63 = vsel %vm307_vm6, %v873_v4, %v875_v11  ;;  %v1057_v31 = vrot.slane %v1050_v28, 2 }
 0x244   : > { %959 = vrot.lane.b32.xlu0 %v956_v2, %s3121_s18  ;;  %1147 = vrot.lane.b32.xlu2 %v1144_v13, %s3129_s28  ;;  %v1031_v2 = vsel %vm307_vm6, %v1029_v39, %v1030_v48  ;;  %v1048_v13 = vmul.f32 %v1047_v6, %v3447_v38 }
 0x245   : > { %1168 = vrot.lane.b32.xlu1 %v1165_v42, %s3122_s21  ;;  %v1000_v42 = vmul.f32 %v997_v43, %v3483_v61  ;;  %v958_v43 = vsel %vm307_vm6, %v955_v44, %v957_v25 }
 0x246   : > { %v3744_v49 = vpop.permute.xlu2 %650  ;;  %v1054_v58 = vrot.slane %v1048_v13, 2  ;;  %v3859_v13 = vstv %s2833_s6  ;;  %s2847_s6 = sld [smem:[#allocation3 + $0x2e]] }
 0x247   : > { %4876 = vst [vmem:[#allocation13_spill] sm:$0xff] %v3744_v49  ;;  %v1007_v59 = vrot.slane %v1000_v42, 2 }
 0x248   : > { %v1056_v4 = vsel %vm307_vm6, %v1054_v58, %v1055_v16 }
 0x249   : > { %v1008_v6 = vsel %vm307_vm6, %v1005_v30, %v1007_v59 }
 0x24c   : > { %984 = vrot.lane.b32.xlu0 %v981_v32, %s3129_s28  ;;  %1210 = vrot.lane.b32.xlu2 %v1207_v17, %s3130_s7  ;;  %v1073_v32 = vmul.f32 %v1072_v15, %v3447_v38  ;;  %v3824_v17 = vmul.f32 %v1072_v15, %v3437_v33 }
 0x24d   : > { %1231 = vrot.lane.b32.xlu1 %v1228_v7, %s3131_s8 }
 0x24e   : > { %v3763_v12 = vpop.permute.xlu2 %592  ;;  %v1079_v14 = vrot.slane %v1073_v32, 2  ;;  %v1080_v8 = vrot.slane %v3824_v17, 2 }
 0x250   : > { %v1081_v44 = vsel %vm307_vm6, %v1079_v14, %v1080_v8  ;;  %v1259_v14 = vstv %s2837_s19  ;;  %s2848_s19 = sld [smem:[#allocation3 + $0x2f]] }
 0x251   : > { %v3902_v28 = vmul.f32 %v1259_v14, %v3483_v61 }
 0x253   : > { %v4866_v26 = vrot.slane %v3902_v28, 4 }
 0x254   : > { %1009 = vrot.lane.b32.xlu0 %v1006_v54, %s3122_s21  ;;  %963 = vrot.lane.b32.xlu2 %v957_v25, %s3121_s18  ;;  %v1032_v54 = vrot.slane %v1025_v36, 2  ;;  %v1115_v25 = vmul.f32 %v3834_v24, %v3447_v38 }
 0x255   : > { %816 = vrot.lane.b32.xlu1 %v813_v45, %s3121_s18 }
 0x256   : > { %v3782_v10 = vpop.permute.xlu2 %634  ;;  %v3784_v35 = vpop.permute.xlu0 %594  ;;  %v1121_v11 = vrot.slane %v1115_v25, 4 }
 0x257   : > { %v3789_v34 = vpop.permute.xlu1 %580 }
 0x25c   : > { %1034 = vrot.lane.b32.xlu0 %v1031_v2, %s3132_s22  ;;  %988 = vrot.lane.b32.xlu2 %v982_v60, %s3129_s28  ;;  %v1122_v2 = vrot.slane %v3849_v20, 4  ;;  %v1178_v60 = vmul.f32 %v3859_v13, %v3447_v38 }
 0x25d   : > { %879 = vrot.lane.b32.xlu1 %v876_v63, %s3132_s22  ;;  %v3874_v63 = vmul.f32 %v3859_v13, %v3437_v33 }
 0x25e   : > { %v3805_v41 = vpop.permute.xlu2 %676  ;;  %v3807_v47 = vpop.permute.xlu0 %636  ;;  %v1123_v62 = vsel %vm211_vm0, %v1121_v11, %v1122_v2 }
 0x25f   : > { %4877 = vst [vmem:[#allocation14_spill] sm:$0xff] %v3807_v47  ;;  %v3810_v52 = vpop.permute.xlu1 %622  ;;  %v4867_v36 = vrot.slane %v3874_v63, 4 }
 0x264   : > { %1059 = vrot.lane.b32.xlu0 %v1056_v4, %s3130_s7  ;;  %1013 = vrot.lane.b32.xlu2 %v1007_v59, %s3122_s21  ;;  %v1075_v4 = vmul.f32 %v1072_v15, %v3483_v61  ;;  %v1260_v59 = vmul.f32 %v1259_v14, %v3447_v38  ;;  %v1033_v15 = vsel %vm307_vm6, %v1030_v48, %v1032_v54  ;;  %v1284_v48 = vstv %s2838_s24  ;;  %s2822_s24 = sld [smem:[#allocation3 + $0x15]] }
 0x265   : > { %961 = vrot.lane.b32.xlu1 %v958_v43, %s3121_s18  ;;  %v1184_v43 = vrot.slane %v1178_v60, 4 }
 0x266   : > { %v3826_v50 = vpop.permute.xlu2 %696  ;;  %v3828_v7 = vpop.permute.xlu0 %578  ;;  %v1082_v1 = vrot.slane %v1075_v4, 2  ;;  %v1058_v4 = vsel %vm307_vm6, %v1055_v16, %v1057_v31  ;;  %v1309_v16 = vstv %s2839_s9  ;;  %s2849_s9 = sld [smem:[#allocation3 + $0x30]] }
 0x267   : > { %v3831_v53 = vpop.permute.xlu1 %674  ;;  %v1186_v30 = vsel %vm211_vm0, %v1184_v43, %v4867_v36  ;;  %v3921_v43 = vmul.f32 %v1284_v48, %v3437_v33 }
 0x26c   : > { %1084 = vrot.lane.b32.xlu0 %v1081_v44, %s3131_s8  ;;  %1038 = vrot.lane.b32.xlu2 %v1032_v54, %s3132_s22  ;;  %v3895_v44 = vmul.f32 %v1259_v14, %v3437_v33 }
 0x26d   : > { %986 = vrot.lane.b32.xlu1 %v983_v37, %s3129_s28 }
 0x26e   : > { %v3851_v45 = vpop.permute.xlu2 %716  ;;  %v3853_v27 = vpop.permute.xlu0 %620  ;;  %v4865_v60 = vrot.slane %v3895_v44, 4 }
 0x26f   : > { %v3856_v39 = vpop.permute.xlu1 %694 }
 0x274   : > { %1126 = vrot.lane.b32.xlu0 %v1123_v62, %s3121_s18  ;;  %1063 = vrot.lane.b32.xlu2 %v1057_v31, %s3130_s7  ;;  %v1266_v62 = vrot.slane %v1260_v59, 4  ;;  %v3928_v59 = vmul.f32 %v1284_v48, %v3483_v61 }
 0x275   : > { %1011 = vrot.lane.b32.xlu1 %v1008_v6, %s3122_s21  ;;  %v1285_v6 = vmul.f32 %v1284_v48, %v3447_v38  ;;  %v1083_v48 = vsel %vm307_vm6, %v1080_v8, %v1082_v1  ;;  %v1334_v8 = vstv %s2840_s10  ;;  %s2836_s10 = sld [smem:[#allocation3 + $0x23]] }
 0x276   : > { %v3876_v42 = vpop.permute.xlu2 %736  ;;  %v3878_v58 = vpop.permute.xlu0 %672  ;;  %v1268_v54 = vsel %vm211_vm0, %v1266_v62, %v4865_v60  ;;  %v4864_v46 = vrot.slane %v3928_v59, 4 }
 0x277   : > { %v3881_v32 = vpop.permute.xlu1 %714  ;;  %v1291_v62 = vrot.slane %v1285_v6, 4  ;;  %v1311_v6 = vmul.f32 %v1309_v16, %v3437_v33 }
 0x279   : > { %v1317_v60 = vrot.slane %v1311_v6, 4 }
 0x27c   : > { %1189 = vrot.lane.b32.xlu0 %v1186_v30, %s3132_s22  ;;  %1088 = vrot.lane.b32.xlu2 %v1082_v1, %s3131_s8 }
 0x27d   : > { %1036 = vrot.lane.b32.xlu1 %v1033_v15, %s3132_s22 }
 0x27e   : > { %v3897_v25 = vpop.permute.xlu2 %756  ;;  %v3899_v37 = vpop.permute.xlu0 %692 }
 0x27f   : > { %v3904_v11 = vpop.permute.xlu1 %734 }
 0x284   : > { %1271 = vrot.lane.b32.xlu0 %v1268_v54, %s3121_s18  ;;  %1275 = vrot.lane.b32.xlu2 %v4866_v26, %s3121_s18  ;;  %v4863_v54 = vrot.slane %v3921_v43, 4 }
 0x285   : > { %1061 = vrot.lane.b32.xlu1 %v1058_v4, %s3130_s7  ;;  %v1310_v4 = vmul.f32 %v1309_v16, %v3447_v38 }
 0x286   : > { %v3923_v14 = vpop.permute.xlu2 %776  ;;  %v3925_v30 = vpop.permute.xlu0 %712  ;;  %v1293_v31 = vsel %vm211_vm0, %v1291_v62, %v4863_v54  ;;  %v1312_v62 = vmul.f32 %v1309_v16, %v3483_v61  ;;  %v1336_v16 = vmul.f32 %v1334_v8, %v3437_v33 }
 0x287   : > { %v3930_v15 = vpop.permute.xlu1 %754 }
 0x288   : > { %v1319_v17 = vrot.slane %v1312_v62, 4  ;;  %v1180_v62 = vmul.f32 %v3859_v13, %v3483_v61  ;;  %v1342_v36 = vrot.slane %v1336_v16, 4 }
 0x28a   : > { %v1187_v0 = vrot.slane %v1180_v62, 4 }
 0x28c   : > { %1296 = vrot.lane.b32.xlu0 %v1293_v31, %s3129_s28  ;;  %1300 = vrot.lane.b32.xlu2 %v4864_v46, %s3129_s28  ;;  %v1117_v31 = vmul.f32 %v3834_v24, %v3483_v61  ;;  %v1316_v46 = vrot.slane %v1310_v4, 4 }
 0x28d   : > { %1086 = vrot.lane.b32.xlu1 %v1083_v48, %s3131_s8  ;;  %v1335_v48 = vmul.f32 %v1334_v8, %v3447_v38 }
 0x28e   : > { %v3947_v22 = vpop.permute.xlu2 %835  ;;  %v3949_v23 = vpop.permute.xlu0 %732  ;;  %v1124_v26 = vrot.slane %v1117_v31, 4  ;;  %v1318_v1 = vsel %vm211_vm0, %v1316_v46, %v1317_v60  ;;  %v1337_v46 = vmul.f32 %v1334_v8, %v3483_v61  ;;  %v4880_v8 = vrot.slane %v3874_v63, 4 }
 0x28f   : > { %4878 = vst [vmem:[#allocation15_spill] sm:$0xff] %v3947_v22  ;;  %v3954_v54 = vpop.permute.xlu1 %774  ;;  %v4884_v63 = vrot.slane %v3895_v44, 4  ;;  %v4889_v44 = vrot.slane %v3921_v43, 4 }
 0x290   : > { %v1125_v24 = vsel %vm211_vm0, %v1122_v2, %v1124_v26  ;;  %v1344_v20 = vrot.slane %v1337_v46, 4  ;;  %v1359_v2 = vstv %s2841_s11  ;;  %s4146_s11 = sld [smem:[#allocation3 + $0x32]] }
 0x291   : > { %v1361_v13 = vmul.f32 %v1359_v2, %v3437_v33  ;;  %v1362_v46 = vmul.f32 %v1359_v2, %v3483_v61 }
 0x293   : > { %v1369_v22 = vrot.slane %v1362_v46, 4 }
 0x294   : > { %1321 = vrot.lane.b32.xlu0 %v1318_v1, %s3122_s21  ;;  %1325 = vrot.lane.b32.xlu2 %v1319_v17, %s3122_s21  ;;  %v1341_v1 = vrot.slane %v1335_v48, 4 }
 0x295   : > { %1128 = vrot.lane.b32.xlu1 %v1125_v24, %s3121_s18  ;;  %v1360_v24 = vmul.f32 %v1359_v2, %v3447_v38 }
 0x296   : > { %v3965_v4 = vpop.permute.xlu2 %898  ;;  %v3967_v6 = vpop.permute.xlu0 %752  ;;  %v1343_v26 = vsel %vm211_vm0, %v1341_v1, %v1342_v36 }
 0x297   : > { %4879 = vst [vmem:[#allocation16_spill] sm:$0xff] %v3965_v4  ;;  %v3972_v31 = vpop.permute.xlu1 %606  ;;  %v1188_v4 = vsel %vm211_vm0, %v4880_v8, %v1187_v0  ;;  %v1366_v1 = vrot.slane %v1360_v24, 4  ;;  %v4883_v0 = vrot.slane %v3902_v28, 4 }
 0x29c   : > { %1346 = vrot.lane.b32.xlu0 %v1343_v26, %s3132_s22  ;;  %1350 = vrot.lane.b32.xlu2 %v1344_v20, %s3132_s22  ;;  %v1367_v26 = vrot.slane %v1361_v13, 4 }
 0x29d   : > { %1191 = vrot.lane.b32.xlu1 %v1188_v4, %s3132_s22  ;;  %v1270_v4 = vsel %vm211_vm0, %v4884_v63, %v4883_v0  ;;  %v1384_v0 = vstv %s2842_s13  ;;  %s4150_s13 = sld [smem:[#allocation3 + $0x33]] }
 0x29e   : > { %v3983_v48 = vpop.permute.xlu2 %1147  ;;  %v3985_v16 = vpop.permute.xlu0 %772  ;;  %v1368_v49 = vsel %vm211_vm0, %v1366_v1, %v1367_v26  ;;  %v1385_v63 = vmul.f32 %v1384_v0, %v3447_v38 }
 0x29f   : > { %4881 = vst [vmem:[#allocation17_spill] sm:$0xff] %v3983_v48  ;;  %v3988_v62 = vpop.permute.xlu1 %648 }
 0x2a0   : > { %4882 = vst [vmem:[#allocation18_spill] sm:$0xff] %v3988_v62 }
 0x2a4   : > { %1371 = vrot.lane.b32.xlu0 %v1368_v49, %s3130_s7  ;;  %1375 = vrot.lane.b32.xlu2 %v1369_v22, %s3130_s7  ;;  %v4888_v49 = vrot.slane %v3928_v59, 4 }
 0x2a5   : > { %1273 = vrot.lane.b32.xlu1 %v1270_v4, %s3121_s18  ;;  %v1387_v4 = vmul.f32 %v1384_v0, %v3483_v61 }
 0x2a6   : > { %v3999_v2 = vpop.permute.xlu2 %1210  ;;  %v4001_v8 = vpop.permute.xlu0 %814  ;;  %v1295_v28 = vsel %vm211_vm0, %v4889_v44, %v4888_v49  ;;  %v1391_v44 = vrot.slane %v1385_v63, 4 }
 0x2a7   : > { %4885 = vst [vmem:[#allocation19_spill] sm:$0xff] %v3999_v2  ;;  %v4003_v24 = vpop.permute.xlu1 %856 }
 0x2a8   : > { %4886 = vst [vmem:[#allocation20_spill] sm:$0xff] %v4001_v8  ;;  %v1489_v8 = vstv %s2847_s6  ;;  %s4239_s6 = sld [smem:[#allocation3 + $0x37]] }
 0x2a9   : > { %4887 = vst [vmem:[#allocation21_spill] sm:$0xff] %v4003_v24  ;;  %v1490_v62 = vmul.f32 %v1489_v8, %v3447_v38 }
 0x2ac   : > { %837 = vrot.lane.b32.xlu0 %v3595_v51, %s3129_s28  ;;  %858 = vrot.lane.b32.xlu2 %v3602_v55, %s3122_s21  ;;  %v1320_v51 = vsel %vm211_vm0, %v1317_v60, %v1319_v17 }
 0x2ad   : > { %1298 = vrot.lane.b32.xlu1 %v1295_v28, %s3129_s28 }
 0x2ae   : > { %v4015_v13 = vpop.permute.xlu2 %963  ;;  %v4017_v46 = vpop.permute.xlu0 %877 }
 0x2af   : > { %4890 = vst [vmem:[#allocation22_spill] sm:$0xff] %v4017_v46  ;;  %v4019_v1 = vpop.permute.xlu1 %919 }
 0x2b0   : > { %4891 = vst [vmem:[#allocation23_spill] sm:$0xff] %v4019_v1  ;;  %v1468_v1 = vstv %s2846_s5  ;;  %s4215_s5 = sld [smem:[#allocation3 + $0x36]] }
 0x2b1   : > { %v1470_v24 = vmul.f32 %v1468_v1, %v3437_v33 }
 0x2b4   : > { %900 = vrot.lane.b32.xlu0 %v3607_v56, %s3130_s7  ;;  %921 = vrot.lane.b32.xlu2 %v3612_v57, %s3131_s8  ;;  %v1345_v56 = vsel %vm211_vm0, %v1342_v36, %v1344_v20 }
 0x2b5   : > { %1323 = vrot.lane.b32.xlu1 %v1320_v51, %s3122_s21  ;;  %v1426_v51 = vstv %s2844_s23  ;;  %s4180_s23 = sld [smem:[#allocation3 + $0x34]] }
 0x2b6   : > { %v4027_v55 = vpop.permute.xlu2 %988  ;;  %v4029_v43 = vpop.permute.xlu0 %959  ;;  %v1428_v63 = vmul.f32 %v1426_v51, %v3437_v33 }
 0x2b7   : > { %v4031_v59 = vpop.permute.xlu1 %1168 }
 0x2b8   : > { %4892 = vst [vmem:[#allocation24_spill] sm:$0xff] %v4031_v59  ;;  %v1434_v59 = vrot.slane %v1428_v63, 6 }
 0x2bc   : > { %1149 = vrot.lane.b32.xlu0 %v3618_v3, %s3129_s28  ;;  %1170 = vrot.lane.b32.xlu2 %v3623_v5, %s3122_s21  ;;  %v1370_v3 = vsel %vm211_vm0, %v1367_v26, %v1369_v22  ;;  %v1386_v5 = vmul.f32 %v1384_v0, %v3437_v33  ;;  %v1427_v26 = vmul.f32 %v1426_v51, %v3447_v38 }
 0x2bd   : > { %1348 = vrot.lane.b32.xlu1 %v1345_v56, %s3132_s22 }
 0x2be   : > { %v4039_v57 = vpop.permute.xlu2 %1013  ;;  %v4041_v60 = vpop.permute.xlu0 %984  ;;  %v1392_v28 = vrot.slane %v1386_v5, 4  ;;  %v1433_v2 = vrot.slane %v1427_v26, 6 }
 0x2bf   : > { %v4043_v17 = vpop.permute.xlu1 %1231 }
 0x2c0   : > { %4893 = vst [vmem:[#allocation25_spill] sm:$0xff] %v4043_v17  ;;  %v1393_v22 = vsel %vm211_vm0, %v1391_v44, %v1392_v28  ;;  %v1429_v44 = vmul.f32 %v1426_v51, %v3483_v61 }
 0x2c4   : > { %1212 = vrot.lane.b32.xlu0 %v3632_v19, %s3130_s7  ;;  %1233 = vrot.lane.b32.xlu2 %v3637_v21, %s3131_s8  ;;  %v1394_v19 = vrot.slane %v1387_v4, 4  ;;  %v1447_v21 = vstv %s2845_s26  ;;  %s4199_s26 = sld [smem:[#allocation3]] }
 0x2c5   : > { %1373 = vrot.lane.b32.xlu1 %v1370_v3, %s3130_s7  ;;  %v1448_v56 = vmul.f32 %v1447_v21, %v3447_v38  ;;  %v1449_v3 = vmul.f32 %v1447_v21, %v3437_v33  ;;  %v1450_v26 = vmul.f32 %v1447_v21, %v3483_v61 }
 0x2c6   : > { %v4053_v36 = vpop.permute.xlu2 %1038  ;;  %v4055_v20 = vpop.permute.xlu0 %1009  ;;  %v1395_v0 = vsel %vm211_vm0, %v1392_v28, %v1394_v19  ;;  %v4076_v28 = vstv %s2808_s27  ;;  %s4212_s27 = sld [smem:[#allocation3 + $0x35]] }
 0x2c7   : > { %v4058_v49 = vpop.permute.xlu1 %816  ;;  %v1455_v48 = vrot.slane %v1449_v3, 6  ;;  %v660_v63 = vmul.f32 %v4076_v28, %v3483_v61 }
 0x2c8   : > { %4894 = vst [vmem:[#allocation26_spill] sm:$0xff] %v4058_v49 }
 0x2cc   : > { %1396 = vrot.lane.b32.xlu0 %v1393_v22, %s3131_s8  ;;  %1400 = vrot.lane.b32.xlu2 %v1394_v19, %s3131_s8  ;;  %v1454_v22 = vrot.slane %v1448_v56, 6  ;;  %v1436_v19 = vrot.slane %v1429_v44, 6  ;;  %v1469_v56 = vmul.f32 %v1468_v1, %v3447_v38 }
 0x2cd   : > { %1398 = vrot.lane.b32.xlu1 %v1395_v0, %s3131_s8  ;;  %v1435_v0 = vsel %vm300_vm3, %v1433_v2, %v1434_v59  ;;  %v1471_v2 = vmul.f32 %v1468_v1, %v3483_v61 }
 0x2ce   : > { %v4069_v5 = vpop.permute.xlu2 %1063  ;;  %v4071_v4 = vpop.permute.xlu0 %1034  ;;  %v1456_v46 = vsel %vm300_vm3, %v1454_v22, %v1455_v48  ;;  %v1437_v51 = vsel %vm300_vm3, %v1434_v59, %v1436_v19  ;;  %v683_v22 = vadd.f32 %v3805_v41, %v660_v63  ;;  %v1476_v59 = vrot.slane %v1470_v24, 6 }
 0x2cf   : > { %v4074_v17 = vpop.permute.xlu1 %879  ;;  %v1457_v19 = vrot.slane %v1450_v26, 6  ;;  %v1475_v21 = vrot.slane %v1469_v56, 6  ;;  %v4103_v63 = vstv %s2822_s24  ;;  %v1492_v56 = vmul.f32 %v1489_v8, %v3483_v61  ;;  %s2858_s24 = sld [smem:[#allocation3 + $0x39]] }
 0x2d0   : > { %4895 = vst [vmem:[#allocation27_spill] sm:$0xff] %v4074_v17  ;;  %v1478_v17 = vrot.slane %v1471_v2, 6 }
 0x2d1   : > { %v1458_v49 = vsel %vm300_vm3, %v1455_v48, %v1457_v19  ;;  %v1491_v48 = vmul.f32 %v1489_v8, %v3437_v33 }
 0x2d2   : > { %v1479_v47 = vsel %vm300_vm3, %v1476_v59, %v1478_v17 }
 0x2d4   : > { %1438 = vrot.lane.b32.xlu0 %v1435_v0, %s3121_s18  ;;  %1459 = vrot.lane.b32.xlu2 %v1456_v46, %s3129_s28  ;;  %v703_v0 = vadd.f32 %v3826_v50, %v683_v22  ;;  %v1477_v50 = vsel %vm300_vm3, %v1475_v21, %v1476_v59  ;;  %v1496_v22 = vrot.slane %v1490_v62, 6  ;;  %v1497_v59 = vrot.slane %v1491_v48, 6 }
 0x2d5   : > { %1440 = vrot.lane.b32.xlu1 %v1437_v51, %s3121_s18  ;;  %v1510_v51 = vstv %s2848_s19  ;;  %v538_v48 = vrot.slane %v3524_v18, 3  ;;  %s4253_s19 = sld [smem:[#allocation3 + $0xe]] }
 0x2d6   : > { %v4090_v3 = vpop.permute.xlu2 %1088  ;;  %v4092_v44 = vpop.permute.xlu0 %1059  ;;  %v723_v1 = vadd.f32 %v3851_v45, %v703_v0  ;;  %v1511_v41 = vmul.f32 %v1510_v51, %v3447_v38  ;;  %v1512_v45 = vmul.f32 %v1510_v51, %v3437_v33  ;;  %v1499_v0 = vrot.slane %v1492_v56, 6 }
 0x2d7   : > { %v4095_v46 = vpop.permute.xlu1 %961  ;;  %v1498_v8 = vsel %vm300_vm3, %v1496_v22, %v1497_v59 }
 0x2d8   : > { %v743_v24 = vadd.f32 %v3876_v42, %v723_v1  ;;  %v1517_v42 = vrot.slane %v1511_v41, 6  ;;  %v1518_v21 = vrot.slane %v1512_v45, 6  ;;  %v1531_v1 = vstv %s2849_s9  ;;  %s2859_s9 = sld [smem:[#allocation3 + $0x3a]] }
 0x2d9   : > { %v1500_v62 = vsel %vm300_vm3, %v1497_v59, %v1499_v0  ;;  %v1532_v41 = vmul.f32 %v1531_v1, %v3447_v38  ;;  %v540_v45 = vrot.slane %v3524_v18, 1 }
 0x2dc   : > { %1461 = vrot.lane.b32.xlu0 %v1458_v49, %s3129_s28  ;;  %1482 = vrot.lane.b32.xlu2 %v1479_v47, %s3122_s21  ;;  %v763_v49 = vadd.f32 %v3897_v25, %v743_v24  ;;  %v4120_v47 = vmul.f32 %v4103_v63, %v3483_v61  ;;  %v1519_v25 = vsel %vm300_vm3, %v1517_v42, %v1518_v21 }
 0x2dd   : > { %1480 = vrot.lane.b32.xlu1 %v1477_v50, %s3122_s21  ;;  %v1533_v24 = vmul.f32 %v1531_v1, %v3437_v33 }
 0x2de   : > { %v4112_v17 = vpop.permute.xlu2 %1275  ;;  %v4114_v26 = vpop.permute.xlu0 %1084  ;;  %v783_v19 = vadd.f32 %v3923_v14, %v763_v49  ;;  %v4869_v50 = vrot.slane %v4120_v47, 2  ;;  %v1513_v14 = vmul.f32 %v1510_v51, %v3483_v61  ;;  %v1534_v49 = vmul.f32 %v1531_v1, %v3483_v61 }
 0x2df   : > { %v4122_v2 = vpop.permute.xlu1 %986  ;;  %v1539_v51 = vrot.slane %v1533_v24, 6 }
 0x2e0   : > { %4896 = vst [vmem:[#allocation28_spill] sm:$0xff] %v4122_v2  ;;  %v945_v56 = vadd.f32 %v4869_v50, %v783_v19  ;;  %v544_v2 = vsel %vm298_vm2, %v538_v48, %v540_v45  ;;  %v1541_v50 = vrot.slane %v1534_v49, 6 }
 0x2e2   : > { %v970_v59 = vadd.f32 %v4015_v13, %v945_v56  ;;  %v1542_v56 = vsel %vm300_vm3, %v1539_v51, %v1541_v50 }
 0x2e4   : > { %1501 = vrot.lane.b32.xlu0 %v1498_v8, %s3132_s22  ;;  %1522 = vrot.lane.b32.xlu2 %v1519_v25, %s3130_s7  ;;  %v542_v8 = vrot.slane %v3524_v18, 7  ;;  %v1538_v25 = vrot.slane %v1532_v41, 6  ;;  %v995_v19 = vadd.f32 %v4027_v55, %v970_v59  ;;  %v4156_v41 = vstv %s2836_s10  ;;  %s2860_s10 = sld [smem:[#allocation3 + $0x3b]] }
 0x2e5   : > { %1503 = vrot.lane.b32.xlu1 %v1500_v62, %s3132_s22  ;;  %v1520_v62 = vrot.slane %v1513_v14, 6  ;;  %v658_v14 = vmul.f32 %v4076_v28, %v3447_v38  ;;  %v4176_v59 = vmul.f32 %v4156_v41, %v3483_v61 }
 0x2e6   : > { %v1301_v22 = vpop.permute.xlu2 %1300  ;;  %v4140_v42 = vpop.permute.xlu0 %1126  ;;  %v1020_v1 = vadd.f32 %v4039_v57, %v995_v19  ;;  %v545_v24 = vsel %vm300_vm3, %v544_v2, %v542_v8  ;;  %v1540_v55 = vsel %vm300_vm3, %v1538_v25, %v1539_v51  ;;  %v4897_v2 = vrot.slane %v3524_v18, 5 }
 0x2e7   : > { %v4143_v0 = vpop.permute.xlu1 %1011  ;;  %v1521_v13 = vsel %vm300_vm3, %v1518_v21, %v1520_v62  ;;  %v681_v45 = vadd.f32 %v3878_v58, %v658_v14  ;;  %v1572_v25 = vstv %s4150_s13  ;;  %v1250_v62 = vrot.slane %v4176_v59, 4  ;;  %v4907_v59 = vld [vmem:[#allocation21_spill] sm:$0xff]  ;;  %s2861_s13 = sld [smem:[#allocation3 + $0x3c]] }
 0x2e8   : > { %v1045_v57 = vadd.f32 %v4053_v36, %v1020_v1  ;;  %v4170_v48 = vsel %vm302_vm4, %v545_v24, %v4897_v2  ;;  %v1558_v36 = vstv %s4146_s11  ;;  %s2829_s11 = sld [smem:[#allocation3 + $0x1c]] }
 0x2e9   : > { %v701_v8 = vadd.f32 %v3899_v37, %v681_v45  ;;  %v1573_v19 = vmul.f32 %v1572_v25, %v4170_v48  ;;  %v1559_v58 = vmul.f32 %v1558_v36, %v4170_v48  ;;  %v1560_v1 = vmul.f32 %v1558_v36, %v3554_v29 }
 0x2ea   : > { %v1070_v49 = vadd.f32 %v4069_v5, %v1045_v57 }
 0x2eb   : > { %v721_v5 = vadd.f32 %v3925_v30, %v701_v8  ;;  %v4203_v30 = vmul.f32 %v4103_v63, %v3437_v33 }
 0x2ec   : > { %1524 = vrot.lane.b32.xlu0 %v1521_v13, %s3130_s7  ;;  %1545 = vrot.lane.b32.xlu2 %v1542_v56, %s3131_s8  ;;  %v1095_v18 = vadd.f32 %v4090_v3, %v1070_v49  ;;  %v929_v13 = vmul.f32 %v4103_v63, %v3447_v38 }
 0x2ed   : > { %1543 = vrot.lane.b32.xlu1 %v1540_v55, %s3131_s8  ;;  %v741_v37 = vadd.f32 %v3949_v23, %v721_v5  ;;  %v1586_v23 = vstv %s4180_s23  ;;  %v936_v63 = vrot.slane %v4203_v30, 2  ;;  %v4899_v30 = vrot.slane %v3501_v9, 5  ;;  %s2862_s23 = sld [smem:[#allocation3 + $0x3d]] }
 0x2ee   : > { %v1326_v21 = vpop.permute.xlu2 %1325  ;;  %v4165_v50 = vpop.permute.xlu0 %1189  ;;  %v1257_v3 = vadd.f32 %v1250_v62, %v1095_v18  ;;  %v935_v2 = vrot.slane %v929_v13, 2  ;;  %v1588_v36 = vmul.f32 %v1586_v23, %v3554_v29  ;;  %v659_v18 = vmul.f32 %v4076_v28, %v3437_v33 }
 0x2ef   : > { %v4178_v51 = vpop.permute.xlu1 %1036  ;;  %v761_v55 = vadd.f32 %v3967_v6, %v741_v37  ;;  %v1574_v6 = vmul.f32 %v1572_v25, %v3554_v29 }
 0x2f0   : > { %v1282_v14 = vadd.f32 %v4112_v17, %v1257_v3  ;;  %v1587_v17 = vmul.f32 %v1586_v23, %v4170_v48  ;;  %v682_v25 = vadd.f32 %v3831_v53, %v659_v18  ;;  %v547_v3 = vrot.slane %v3501_v9, 6 }
 0x2f1   : > { %v781_v45 = vadd.f32 %v3985_v16, %v761_v55  ;;  %v1600_v53 = vstv %s4212_s27  ;;  %s2843_s27 = sld [smem:[#allocation3 + $0x2a]] }
 0x2f2   : > { %v1307_v49 = vadd.f32 %v1301_v22, %v1282_v14  ;;  %v702_v55 = vadd.f32 %v3856_v39, %v682_v25 }
 0x2f4   : > { %1577 = vrot.lane.b32.xlu2 %v1573_v19, %s3129_s28  ;;  %1563 = vrot.lane.b32.xlu0 %v1559_v58, %s3121_s18  ;;  %v1332_v8 = vadd.f32 %v1326_v21, %v1307_v49  ;;  %v937_v19 = vsel %vm307_vm6, %v935_v2, %v936_v63  ;;  %v567_v21 = vstv %s4199_s26  ;;  %v1614_v2 = vstv %s4215_s5  ;;  %s2863_s26 = sld [smem:[#allocation3 + $0x3e]] }
 0x2f5   : > { %1565 = vrot.lane.b32.xlu1 %v1560_v1, %s3121_s18  ;;  %v943_v16 = vadd.f32 %v937_v19, %v781_v45  ;;  %v568_v28 = vmul.f32 %v567_v21, %v3447_v38  ;;  %v1615_v45 = vmul.f32 %v1614_v2, %v4170_v48  ;;  %v1601_v49 = vmul.f32 %v1600_v53, %v4170_v48  ;;  %s2865_s5 = sld [smem:[#allocation3 + $0x40]] }
 0x2f6   : > { %v1351_v56 = vpop.permute.xlu2 %1350  ;;  %v4205_v24 = vpop.permute.xlu0 %1271 }
 0x2f7   : > { %v4209_v57 = vpop.permute.xlu1 %1061  ;;  %v1357_v22 = vadd.f32 %v1351_v56, %v1332_v8  ;;  %v968_v1 = vadd.f32 %v4029_v43, %v943_v16  ;;  %v549_v56 = vrot.slane %v3501_v9, 4  ;;  %v584_v14 = vadd.f32 %v3828_v7, %v568_v28 }
 0x2f8   : > { %v722_v43 = vadd.f32 %v3881_v32, %v702_v55  ;;  %v1602_v8 = vmul.f32 %v1600_v53, %v3554_v29  ;;  %v1241_v32 = vmul.f32 %v4156_v41, %v3447_v38  ;;  %v785_v55 = vstv %s4253_s19  ;;  %s4402_s19 = sld [smem:[#allocation3 + $0x42]] }
 0x2f9   : > { %v993_v23 = vadd.f32 %v4041_v60, %v968_v1  ;;  %v553_v7 = vsel %vm298_vm2, %v547_v3, %v549_v56  ;;  %v598_v18 = vadd.f32 %v3763_v12, %v584_v14  ;;  %v4898_v53 = vrot.slane %v4120_v47, 2 }
 0x2fa   : > { %v742_v60 = vadd.f32 %v3904_v11, %v722_v43  ;;  %v4270_v11 = vmul.f32 %v4156_v41, %v3437_v33 }
 0x2fb   : > { %v1018_v39 = vadd.f32 %v4055_v20, %v993_v23 }
 0x2fc   : > { %1593 = vrot.lane.b32.xlu2 %v1588_v36, %s3122_s21  ;;  %1579 = vrot.lane.b32.xlu0 %v1574_v6, %s3129_s28  ;;  %v551_v36 = vrot.slane %v3501_v9, 2  ;;  %v569_v6 = vmul.f32 %v567_v21, %v3437_v33  ;;  %v762_v19 = vadd.f32 %v3930_v15, %v742_v60  ;;  %v1248_v3 = vrot.slane %v4270_v11, 4 }
 0x2fd   : > { %1591 = vrot.lane.b32.xlu1 %v1587_v17, %s3122_s21  ;;  %v1043_v20 = vadd.f32 %v4071_v4, %v1018_v39  ;;  %v1628_v4 = vstv %s4239_s6  ;;  %s2866_s6 = sld [smem:[#allocation3 + $0x41]] }
 0x2fe   : > { %v1376_v58 = vpop.permute.xlu2 %1375  ;;  %v4231_v5 = vpop.permute.xlu0 %1296  ;;  %v585_v17 = vadd.f32 %v3789_v34, %v569_v6  ;;  %v554_v21 = vsel %vm300_vm3, %v553_v7, %v551_v36  ;;  %v612_v34 = vadd.f32 %v3972_v31, %v598_v18  ;;  %v782_v15 = vadd.f32 %v3954_v54, %v762_v19  ;;  %v4900_v7 = vld [vmem:[#allocation28_spill] sm:$0xff]  ;;  %v4902_v19 = vld [vmem:[#allocation14_spill] sm:$0xff] }
 0x2ff   : > { %v4235_v13 = vadd.f32 %v1376_v58, %v1357_v22  ;;  %v4237_v37 = vpop.permute.xlu1 %1086  ;;  %v1068_v12 = vadd.f32 %v4092_v44, %v1043_v20  ;;  %v1247_v58 = vrot.slane %v1241_v32, 4  ;;  %v562_v1 = vrot.slane %v554_v21, 5  ;;  %v4901_v32 = vld [vmem:[#allocation18_spill] sm:$0xff] }
 0x300   : > { %v599_v41 = vadd.f32 %v3784_v35, %v585_v17  ;;  %v1630_v56 = vmul.f32 %v1628_v4, %v3554_v29  ;;  %v1616_v31 = vmul.f32 %v1614_v2, %v3554_v29  ;;  %v626_v44 = vadd.f32 %v3853_v27, %v612_v34 }
 0x301   : > { %v1093_v28 = vadd.f32 %v4114_v26, %v1068_v12  ;;  %v939_v54 = vsel %vm307_vm6, %v936_v63, %v4898_v53  ;;  %v1629_v35 = vmul.f32 %v1628_v4, %v4170_v48  ;;  %v786_v26 = vmul.f32 %v785_v55, %v3447_v38 }
 0x302   : > { %v944_v14 = vadd.f32 %v939_v54, %v782_v15  ;;  %v1249_v23 = vsel %vm211_vm0, %v1247_v58, %v1248_v3  ;;  %v613_v27 = vadd.f32 %v3721_v40, %v599_v41  ;;  %v4305_v63 = vsel %vm302_vm4, %v4899_v30, %v562_v1 }
 0x303   : > { %v1255_v47 = vadd.f32 %v1249_v23, %v1093_v28  ;;  %v787_v2 = vmul.f32 %v785_v55, %v3437_v33  ;;  %v640_v6 = vadd.f32 %v3782_v10, %v626_v44  ;;  %v792_v9 = vrot.slane %v786_v26, 2  ;;  %v4903_v28 = vld [vmem:[#allocation13_spill] sm:$0xff] }
 0x304   : > { %1619 = vrot.lane.b32.xlu2 %v1615_v45, %s3130_s7  ;;  %1605 = vrot.lane.b32.xlu0 %v1601_v49, %s3132_s22  ;;  %v969_v43 = vadd.f32 %v4095_v46, %v944_v14  ;;  %v627_v36 = vadd.f32 %v3810_v52, %v613_v27  ;;  %v788_v4 = vmul.f32 %v785_v55, %v3483_v61  ;;  %v4905_v14 = vld [vmem:[#allocation15_spill] sm:$0xff] }
 0x305   : > { %1607 = vrot.lane.b32.xlu1 %v1602_v8, %s3132_s22  ;;  %v1280_v40 = vadd.f32 %v4205_v24, %v1255_v47  ;;  %v1650_v8 = vstv %s2858_s24  ;;  %v654_v17 = vadd.f32 %v4901_v32, %v640_v6  ;;  %v793_v18 = vrot.slane %v787_v2, 2  ;;  %s4420_s24 = sld [smem:[#allocation3 + $0x43]] }
 0x306   : > { %v4272_v16 = vpop.permute.xlu2 %858  ;;  %v1322_v22 = vpop.permute.xlu0 %1321  ;;  %v994_v60 = vadd.f32 %v4900_v7, %v969_v43  ;;  %v1651_v52 = vmul.f32 %v1650_v8, %v4170_v48  ;;  %v1653_v10 = vmul.f32 %v1650_v8, %v4305_v63  ;;  %v641_v24 = vadd.f32 %v4902_v19, %v627_v36  ;;  %v4909_v19 = vld [vmem:[#allocation16_spill] sm:$0xff] }
 0x307   : > { %v4277_v25 = vpop.permute.xlu1 %1128  ;;  %v1305_v46 = vadd.f32 %v4231_v5, %v1280_v40  ;;  %v1652_v34 = vmul.f32 %v1650_v8, %v3554_v29  ;;  %v794_v12 = vsel %vm307_vm6, %v792_v9, %v793_v18  ;;  %v795_v53 = vrot.slane %v788_v4, 2  ;;  %v4908_v9 = vld [vmem:[#allocation22_spill] sm:$0xff] }
 0x308   : > { %v1019_v20 = vadd.f32 %v4143_v0, %v994_v60  ;;  %v799_v0 = vadd.f32 %v794_v12, %v654_v17  ;;  %v655_v1 = vadd.f32 %v4903_v28, %v641_v24  ;;  %v1251_v47 = vsel %vm211_vm0, %v1248_v3, %v1250_v62 }
 0x309   : > { %v1330_v21 = vadd.f32 %v1322_v22, %v1305_v46  ;;  %v1690_v62 = vstv %s2860_s10  ;;  %v1097_v60 = vstv %s2829_s11  ;;  %s2870_s10 = sld [smem:[#allocation3 + $0x45]] }
 0x30a   : > { %v1044_v15 = vadd.f32 %v4178_v51, %v1019_v20  ;;  %v1670_v51 = vstv %s2859_s9  ;;  %v1099_v17 = vmul.f32 %v1097_v60, %v3437_v33  ;;  %v1691_v46 = vmul.f32 %v1690_v62, %v4170_v48  ;;  %s2869_s9 = sld [smem:[#allocation3 + $0x44]] }
 0x30b   : > { %v1673_v26 = vmul.f32 %v1670_v51, %v4305_v63  ;;  %v1672_v30 = vmul.f32 %v1670_v51, %v3554_v29  ;;  %v1692_v20 = vmul.f32 %v1690_v62, %v3554_v29  ;;  %s2872_s11 = sld [smem:[#allocation3 + $0x47]] }
 0x30c   : > { %1635 = vrot.lane.b32.xlu2 %v1630_v56, %s3131_s8  ;;  %1621 = vrot.lane.b32.xlu0 %v1616_v31, %s3130_s7  ;;  %v1069_v58 = vadd.f32 %v4209_v57, %v1044_v15  ;;  %v4904_v56 = vld [vmem:[#allocation20_spill] sm:$0xff]  ;;  %v1671_v57 = vmul.f32 %v1670_v51, %v4170_v48 }
 0x30d   : > { %1633 = vrot.lane.b32.xlu1 %v1629_v35, %s3131_s8  ;;  %v820_v31 = vadd.f32 %v4904_v56, %v799_v0  ;;  %v796_v35 = vsel %vm307_vm6, %v793_v18, %v795_v53  ;;  %v1693_v18 = vmul.f32 %v1690_v62, %v4305_v63  ;;  %v4911_v56 = vld [vmem:[#allocation23_spill] sm:$0xff] }
 0x30e   : > { %v4309_v45 = vpop.permute.xlu2 %921  ;;  %v1347_v49 = vpop.permute.xlu0 %1346  ;;  %v1094_v54 = vadd.f32 %v4237_v37, %v1069_v58  ;;  %v800_v27 = vadd.f32 %v796_v35, %v655_v1  ;;  %v4906_v37 = vld [vmem:[#allocation26_spill] sm:$0xff]  ;;  %v1710_v58 = vstv %s2861_s13  ;;  %s2873_s13 = sld [smem:[#allocation3 + $0x48]] }
 0x30f   : > { %v4314_v39 = vpop.permute.xlu1 %1191  ;;  %v1355_v5 = vadd.f32 %v1347_v49, %v1330_v21  ;;  %v841_v23 = vadd.f32 %v4905_v14, %v820_v31  ;;  %v1711_v51 = vmul.f32 %v1710_v58, %v4170_v48  ;;  %v1713_v53 = vmul.f32 %v1710_v58, %v4305_v63 }
 0x310   : > { %v1256_v2 = vadd.f32 %v1251_v47, %v1094_v54  ;;  %v821_v43 = vadd.f32 %v4906_v37, %v800_v27 }
 0x311   : > { %v862_v40 = vadd.f32 %v4907_v59, %v841_v23 }
 0x313   : > { %v883_v7 = vadd.f32 %v4908_v9, %v862_v40 }
 0x314   : > { %1657 = vrot.lane.b32.xlu0 %v1651_v52, %s3121_s18  ;;  %1661 = vrot.lane.b32.xlu2 %v1653_v10, %s3121_s18  ;;  %v1098_v52 = vmul.f32 %v1097_v60, %v3447_v38  ;;  %v1100_v10 = vmul.f32 %v1097_v60, %v3483_v61 }
 0x315   : > { %1659 = vrot.lane.b32.xlu1 %v1652_v34, %s3121_s18  ;;  %v904_v24 = vadd.f32 %v4909_v19, %v883_v7  ;;  %v1105_v34 = vrot.slane %v1099_v17, 4  ;;  %v1750_v7 = vstv %s2863_s26  ;;  %s2874_s26 = sld [smem:[#allocation3 + $0x49]] }
 0x316   : > { %v4331_v41 = vpop.permute.xlu2 %1170  ;;  %v1372_v22 = vpop.permute.xlu0 %1371  ;;  %v1107_v1 = vrot.slane %v1100_v10, 4  ;;  %v1808_v10 = vstv %s2866_s6  ;;  %v1752_v19 = vmul.f32 %v1750_v7, %v3554_v29  ;;  %s2876_s6 = sld [smem:[#allocation3 + $0x4b]] }
 0x317   : > { %v1274_v44 = vpop.permute.xlu1 %1273  ;;  %v4335_v55 = vadd.f32 %v1372_v22, %v1355_v5  ;;  %v1104_v22 = vrot.slane %v1098_v52, 4  ;;  %v925_v31 = vadd.f32 %v4911_v56, %v904_v24  ;;  %v1787_v52 = vstv %s2865_s5  ;;  %s2875_s5 = sld [smem:[#allocation3 + $0x4a]] }
 0x318   : > { %v1281_v49 = vadd.f32 %v1274_v44, %v1256_v2  ;;  %v1108_v54 = vsel %vm211_vm0, %v1105_v34, %v1107_v1  ;;  %v1730_v2 = vstv %s2862_s23  ;;  %v1788_v24 = vmul.f32 %v1787_v52, %v4170_v48  ;;  %s4480_s23 = sld [smem:[#allocation3 + $0x31]] }
 0x319   : > { %v1732_v40 = vmul.f32 %v1730_v2, %v3554_v29 }
 0x31a   : > { %v1794_v1 = vrot.slane %v1788_v24, 2 }
 0x31c   : > { %1677 = vrot.lane.b32.xlu0 %v1671_v57, %s3129_s28  ;;  %1681 = vrot.lane.b32.xlu2 %v1673_v26, %s3129_s28  ;;  %v1106_v57 = vsel %vm211_vm0, %v1104_v22, %v1105_v34 }
 0x31d   : > { %1679 = vrot.lane.b32.xlu1 %v1672_v30, %s3129_s28  ;;  %v1111_v26 = vadd.f32 %v1106_v57, %v925_v31 }
 0x31e   : > { %v4352_v36 = vpop.permute.xlu2 %1233  ;;  %v838_v6 = vpop.permute.xlu0 %837 }
 0x31f   : > { %v1299_v11 = vpop.permute.xlu1 %1298  ;;  %v842_v8 = vadd.f32 %v838_v6, %v821_v43  ;;  %v1132_v27 = vadd.f32 %v4140_v42, %v1111_v26  ;;  %v1733_v6 = vmul.f32 %v1730_v2, %v4305_v63 }
 0x320   : > { %v1306_v3 = vadd.f32 %v1299_v11, %v1281_v49  ;;  %v1731_v49 = vmul.f32 %v1730_v2, %v4170_v48 }
 0x321   : > { %v863_v32 = vadd.f32 %v4272_v16, %v842_v8  ;;  %v4910_v16 = vld [vmem:[#allocation27_spill] sm:$0xff]  ;;  %v4913_v8 = vld [vmem:[#allocation24_spill] sm:$0xff] }
 0x323   : > { %v884_v21 = vadd.f32 %v4910_v16, %v863_v32  ;;  %v1409_v32 = vstv %s2843_s27  ;;  %v1789_v16 = vmul.f32 %v1787_v52, %v3554_v29  ;;  %s2857_s27 = sld [smem:[#allocation3 + $0x38]] }
 0x324   : > { %1697 = vrot.lane.b32.xlu0 %v1691_v46, %s3122_s21  ;;  %1701 = vrot.lane.b32.xlu2 %v1693_v18, %s3122_s21  ;;  %v1410_v18 = vmul.f32 %v1409_v32, %v3447_v38  ;;  %v1411_v38 = vmul.f32 %v1409_v32, %v3437_v33 }
 0x325   : > { %1699 = vrot.lane.b32.xlu1 %v1692_v20, %s3122_s21  ;;  %v1751_v20 = vmul.f32 %v1750_v7, %v4170_v48  ;;  %v1795_v33 = vrot.slane %v1789_v16, 2 }
 0x326   : > { %v1401_v12 = vpop.permute.xlu2 %1400  ;;  %v901_v4 = vpop.permute.xlu0 %900  ;;  %v1417_v31 = vrot.slane %v1411_v38, 6 }
 0x327   : > { %v4369_v15 = vadd.f32 %v1401_v12, %v4235_v13  ;;  %v1324_v0 = vpop.permute.xlu1 %1323  ;;  %v905_v5 = vadd.f32 %v901_v4, %v884_v21  ;;  %v1712_v13 = vmul.f32 %v1710_v58, %v3554_v29  ;;  %v4914_v21 = vld [vmem:[#allocation19_spill] sm:$0xff]  ;;  %v1790_v12 = vmul.f32 %v1787_v52, %v4305_v63 }
 0x328   : > { %v1331_v28 = vadd.f32 %v1324_v0, %v1306_v3  ;;  %v1810_v4 = vmul.f32 %v1808_v10, %v3554_v29  ;;  %v1416_v58 = vrot.slane %v1410_v18, 6  ;;  %v1871_v18 = vstv %s2869_s9  ;;  %s2880_s9 = sld [smem:[#allocation3 + $0x4f]] }
 0x329   : > { %v926_v44 = vadd.f32 %v4309_v45, %v905_v5  ;;  %v2542_v57 = vrot.slane %v4369_v15, 1 }
 0x32b   : > { %v1112_v35 = vadd.f32 %v1108_v54, %v926_v44  ;;  %v1816_v54 = vrot.slane %v1810_v4, 2 }
 0x32c   : > { %1717 = vrot.lane.b32.xlu0 %v1711_v51, %s3132_s22  ;;  %1721 = vrot.lane.b32.xlu2 %v1713_v53, %s3132_s22  ;;  %v1797_v53 = vrot.slane %v1790_v12, 2 }
 0x32d   : > { %1719 = vrot.lane.b32.xlu1 %v1712_v13, %s3132_s22  ;;  %v1133_v45 = vadd.f32 %v4277_v25, %v1112_v35  ;;  %v4912_v25 = vld [vmem:[#allocation17_spill] sm:$0xff] }
 0x32e   : > { %v4382_v14 = vpop.permute.xlu2 %1459  ;;  %v1150_v23 = vpop.permute.xlu0 %1149  ;;  %v1153_v59 = vadd.f32 %v4912_v25, %v1132_v27  ;;  %v4915_v13 = vld [vmem:[#allocation25_spill] sm:$0xff]  ;;  %v1798_v27 = vsel %vm307_vm6, %v1795_v33, %v1797_v53 }
 0x32f   : > { %v1349_v47 = vpop.permute.xlu1 %1348  ;;  %v1154_v30 = vadd.f32 %v1150_v23, %v1133_v45  ;;  %v1418_v45 = vsel %vm300_vm3, %v1416_v58, %v1417_v31  ;;  %v1829_v23 = vstv %s4402_s19  ;;  %s2877_s19 = sld [smem:[#allocation3 + $0x4c]] }
 0x330   : > { %v1356_v37 = vadd.f32 %v1349_v47, %v1331_v28  ;;  %v1174_v62 = vadd.f32 %v4913_v8, %v1153_v59  ;;  %v1830_v2 = vmul.f32 %v1829_v23, %v4170_v48  ;;  %v1832_v25 = vmul.f32 %v1829_v23, %v4305_v63 }
 0x331   : > { %v1175_v43 = vadd.f32 %v4331_v41, %v1154_v30  ;;  %v1831_v30 = vmul.f32 %v1829_v23, %v3554_v29 }
 0x332   : > { %v1195_v17 = vadd.f32 %v4165_v50, %v1174_v62  ;;  %v1809_v50 = vmul.f32 %v1808_v10, %v4170_v48 }
 0x333   : > { %v1196_v42 = vadd.f32 %v4314_v39, %v1175_v43  ;;  %v1753_v39 = vmul.f32 %v1750_v7, %v4305_v63  ;;  %v1837_v62 = vrot.slane %v1831_v30, 2 }
 0x334   : > { %1737 = vrot.lane.b32.xlu0 %v1731_v49, %s3130_s7  ;;  %1741 = vrot.lane.b32.xlu2 %v1733_v6, %s3130_s7  ;;  %v1216_v34 = vadd.f32 %v4914_v21, %v1195_v17  ;;  %v1815_v56 = vrot.slane %v1809_v50, 2  ;;  %v1811_v6 = vmul.f32 %v1808_v10, %v4305_v63  ;;  %v1850_v17 = vstv %s4420_s24  ;;  %s2879_s24 = sld [smem:[#allocation3 + $0x4e]] }
 0x335   : > { %1739 = vrot.lane.b32.xlu1 %v1732_v40, %s3130_s7  ;;  %v1851_v52 = vmul.f32 %v1850_v17, %v4170_v48  ;;  %v1853_v50 = vmul.f32 %v1850_v17, %v4305_v63 }
 0x336   : > { %v4394_v11 = vpop.permute.xlu2 %1482  ;;  %v1213_v41 = vpop.permute.xlu0 %1212  ;;  %v1237_v35 = vadd.f32 %v4915_v13, %v1216_v34  ;;  %v1817_v47 = vsel %vm307_vm6, %v1815_v56, %v1816_v54  ;;  %v1818_v7 = vrot.slane %v1811_v6, 2 }
 0x337   : > { %v1374_v3 = vpop.permute.xlu1 %1373  ;;  %v1217_v9 = vadd.f32 %v1213_v41, %v1196_v42  ;;  %v1857_v21 = vrot.slane %v1851_v52, 2 }
 0x338   : > { %v1381_v60 = vadd.f32 %v1374_v3, %v1356_v37  ;;  %v1423_v49 = vadd.f32 %v1418_v45, %v1237_v35 }
 0x339   : > { %v1238_v46 = vadd.f32 %v4352_v36, %v1217_v9  ;;  %v1412_v36 = vmul.f32 %v1409_v32, %v3483_v61  ;;  %v1836_v9 = vrot.slane %v1830_v2, 2 }
 0x33b   : > { %v1419_v44 = vrot.slane %v1412_v36, 6  ;;  %v1838_v10 = vsel %vm307_vm6, %v1836_v9, %v1837_v62 }
 0x33c   : > { %1757 = vrot.lane.b32.xlu0 %v1751_v20, %s3131_s8  ;;  %1761 = vrot.lane.b32.xlu2 %v1753_v39, %s3131_s8  ;;  %v1819_v20 = vsel %vm307_vm6, %v1816_v54, %v1818_v7 }
 0x33d   : > { %1759 = vrot.lane.b32.xlu1 %v1752_v19, %s3131_s8  ;;  %v1420_v43 = vsel %vm300_vm3, %v1417_v31, %v1419_v44  ;;  %v1852_v19 = vmul.f32 %v1850_v17, %v3554_v29 }
 0x33e   : > { %v4416_v0 = vpop.permute.xlu2 %1522  ;;  %v1397_v5 = vpop.permute.xlu0 %1396  ;;  %v1424_v40 = vadd.f32 %v1420_v43, %v1238_v46  ;;  %v1872_v46 = vmul.f32 %v1871_v18, %v4170_v48 }
 0x33f   : > { %v1399_v22 = vpop.permute.xlu1 %1398  ;;  %v1405_v28 = vadd.f32 %v1397_v5, %v4335_v55  ;;  %v1796_v55 = vsel %vm307_vm6, %v1794_v1, %v1795_v33  ;;  %v1858_v4 = vrot.slane %v1852_v19, 2 }
 0x340   : > { %v1406_v61 = vadd.f32 %v1399_v22, %v1381_v60  ;;  %v1839_v60 = vrot.slane %v1832_v25, 2  ;;  %v1878_v34 = vrot.slane %v1872_v46, 2  ;;  %v1860_v22 = vrot.slane %v1853_v50, 2 }
 0x341   : > { %v2539_v51 = vrot.slane %v1405_v28, 1  ;;  %v1892_v28 = vstv %s2870_s10  ;;  %v1859_v1 = vsel %vm307_vm6, %v1857_v21, %v1858_v4  ;;  %s2881_s10 = sld [smem:[#allocation3 + $0x50]] }
 0x342   : > { %v2540_v26 = vrot.slane %v1406_v61, 1  ;;  %v1840_v39 = vsel %vm307_vm6, %v1837_v62, %v1839_v60  ;;  %v1894_v56 = vmul.f32 %v1892_v28, %v3554_v29  ;;  %v1861_v61 = vsel %vm307_vm6, %v1858_v4, %v1860_v22 }
 0x343   : > { %v1893_v31 = vmul.f32 %v1892_v28, %v4170_v48  ;;  %v1895_v44 = vmul.f32 %v1892_v28, %v4305_v63  ;;  %v1957_v60 = vstv %s2873_s13  ;;  %s2883_s13 = sld [smem:[#allocation3 + $0x52]] }
 0x344   : > { %1799 = vrot.lane.b32.xlu0 %v1796_v55, %s3121_s18  ;;  %1820 = vrot.lane.b32.xlu2 %v1817_v47, %s3129_s28  ;;  %v4433_v15 = vsel %vm309_vm7, %v2539_v51, %v2540_v26  ;;  %v4436_v37 = vsel %vm309_vm7, %v2540_v26, %v2542_v57  ;;  %v1900_v35 = vrot.slane %v1894_v56, 2  ;;  %v1960_v46 = vmul.f32 %v1957_v60, %v4305_v63 }
 0x345   : > { %1801 = vrot.lane.b32.xlu1 %v1798_v27, %s3121_s18  ;;  %v1899_v26 = vrot.slane %v1893_v31, 2  ;;  %v1902_v23 = vrot.slane %v1895_v44, 2  ;;  %v1932_v27 = vstv %s2872_s11  ;;  %v4515_v31 = vstv %s2857_s27  ;;  %s2882_s11 = sld [smem:[#allocation3 + $0x51]] }
 0x346   : > { %v4442_v59 = vpop.permute.xlu2 %1545  ;;  %v1439_v42 = vpop.permute.xlu0 %1438  ;;  %v1933_v2 = vmul.f32 %v1932_v27, %v4170_v48  ;;  %v1935_v25 = vmul.f32 %v1932_v27, %v4305_v63  ;;  %s2864_s27 = sld [smem:[#allocation3 + $0x3f]] }
 0x347   : > { %v1441_v41 = vpop.permute.xlu1 %1440  ;;  %v1444_v8 = vadd.f32 %v1439_v42, %v1423_v49  ;;  %v1903_v30 = vsel %vm307_vm6, %v1900_v35, %v1902_v23  ;;  %v1901_v43 = vsel %vm307_vm6, %v1899_v26, %v1900_v35  ;;  %v1934_v49 = vmul.f32 %v1932_v27, %v3554_v29 }
 0x348   : > { %v1445_v3 = vadd.f32 %v1441_v41, %v1424_v40  ;;  %v1939_v41 = vrot.slane %v1933_v2, 2  ;;  %v1942_v7 = vrot.slane %v1935_v25, 2 }
 0x349   : > { %v1465_v32 = vadd.f32 %v4382_v14, %v1444_v8  ;;  %v1873_v14 = vmul.f32 %v1871_v18, %v3554_v29  ;;  %v1940_v62 = vrot.slane %v1934_v49, 2 }
 0x34b   : > { %v1879_v5 = vrot.slane %v1873_v14, 2  ;;  %v1941_v17 = vsel %vm307_vm6, %v1939_v41, %v1940_v62 }
 0x34c   : > { %1822 = vrot.lane.b32.xlu0 %v1819_v20, %s3129_s28  ;;  %1843 = vrot.lane.b32.xlu2 %v1840_v39, %s3122_s21  ;;  %v1943_v20 = vsel %vm307_vm6, %v1940_v62, %v1942_v7 }
 0x34d   : > { %1841 = vrot.lane.b32.xlu1 %v1838_v10, %s3122_s21  ;;  %v1880_v33 = vsel %vm307_vm6, %v1878_v34, %v1879_v5 }
 0x34e   : > { %v4456_v24 = vpop.permute.xlu2 %1577  ;;  %v1462_v16 = vpop.permute.xlu0 %1461 }
 0x34f   : > { %v1481_v38 = vpop.permute.xlu1 %1480  ;;  %v1466_v36 = vadd.f32 %v1462_v16, %v1445_v3 }
 0x350   : > { %v1486_v12 = vadd.f32 %v1481_v38, %v1465_v32  ;;  %v1967_v38 = vrot.slane %v1960_v46, 2 }
 0x351   : > { %v1487_v58 = vadd.f32 %v4394_v11, %v1466_v36  ;;  %v1874_v11 = vmul.f32 %v1871_v18, %v4305_v63  ;;  %v1958_v18 = vmul.f32 %v1957_v60, %v4170_v48  ;;  %v1982_v36 = vstv %s2874_s26  ;;  %s2886_s26 = sld [smem:[#allocation3 + $0x55]] }
 0x352   : > { %v1985_v28 = vmul.f32 %v1982_v36, %v4305_v63 }
 0x353   : > { %v1881_v45 = vrot.slane %v1874_v11, 2  ;;  %v1964_v14 = vrot.slane %v1958_v18, 2 }
 0x354   : > { %1862 = vrot.lane.b32.xlu0 %v1859_v1, %s3132_s22  ;;  %1883 = vrot.lane.b32.xlu2 %v1880_v33, %s3130_s7 }
 0x355   : > { %1864 = vrot.lane.b32.xlu1 %v1861_v61, %s3132_s22  ;;  %v1882_v47 = vsel %vm307_vm6, %v1879_v5, %v1881_v45  ;;  %v1984_v5 = vmul.f32 %v1982_v36, %v3554_v29 }
 0x356   : > { %v4470_v51 = vpop.permute.xlu2 %1593  ;;  %v1502_v53 = vpop.permute.xlu0 %1501 }
 0x357   : > { %v1504_v54 = vpop.permute.xlu1 %1503  ;;  %v1507_v13 = vadd.f32 %v1502_v53, %v1486_v12  ;;  %v1983_v12 = vmul.f32 %v1982_v36, %v4170_v48  ;;  %v1990_v11 = vrot.slane %v1984_v5, 2  ;;  %v1992_v53 = vrot.slane %v1985_v28, 2 }
 0x358   : > { %v1508_v57 = vadd.f32 %v1504_v54, %v1487_v58  ;;  %v2007_v54 = vstv %s2875_s5  ;;  %s2887_s5 = sld [smem:[#allocation3 + $0x56]] }
 0x359   : > { %v1528_v55 = vadd.f32 %v4416_v0, %v1507_v13  ;;  %v1989_v56 = vrot.slane %v1983_v12, 2  ;;  %v1645_v13 = vmul.f32 %v4515_v31, %v4305_v63  ;;  %v1993_v26 = vsel %vm307_vm6, %v1990_v11, %v1992_v53 }
 0x35a   : > { %v2009_v45 = vmul.f32 %v2007_v54, %v3554_v29  ;;  %v2010_v27 = vmul.f32 %v2007_v54, %v4305_v63 }
 0x35b   : > { %v1991_v35 = vsel %vm307_vm6, %v1989_v56, %v1990_v11  ;;  %v1644_v56 = vmul.f32 %v4515_v31, %v3554_v29 }
 0x35c   : > { %1885 = vrot.lane.b32.xlu0 %v1882_v47, %s3130_s7  ;;  %1906 = vrot.lane.b32.xlu2 %v1903_v30, %s3131_s8 }
 0x35d   : > { %1904 = vrot.lane.b32.xlu1 %v1901_v43, %s3131_s8 }
 0x35e   : > { %v4483_v0 = vpop.permute.xlu2 %1619  ;;  %v1525_v6 = vpop.permute.xlu0 %1524 }
 0x35f   : > { %v1544_v40 = vpop.permute.xlu1 %1543  ;;  %v1529_v42 = vadd.f32 %v1525_v6, %v1508_v57  ;;  %v2008_v57 = vmul.f32 %v2007_v54, %v4170_v48  ;;  %v2015_v6 = vrot.slane %v2009_v45, 2 }
 0x360   : > { %v1549_v8 = vadd.f32 %v1544_v40, %v1528_v55  ;;  %v2017_v40 = vrot.slane %v2010_v27, 2 }
 0x361   : > { %v1550_v3 = vadd.f32 %v4442_v59, %v1529_v42  ;;  %v1552_v59 = vstv %s4480_s23  ;;  %v2014_v43 = vrot.slane %v2008_v57, 2  ;;  %v2032_v42 = vstv %s2876_s6  ;;  %s2884_s23 = sld [smem:[#allocation3 + $0x53]] }
 0x362   : > { %v4488_v9 = vadd.f32 %v4433_v15, %v1549_v8  ;;  %v1959_v15 = vmul.f32 %v1957_v60, %v3554_v29  ;;  %v1553_v39 = vmul.f32 %v1552_v59, %v4170_v48  ;;  %v1554_v21 = vmul.f32 %v1552_v59, %v3554_v29  ;;  %s2893_s6 = sld [smem:[#allocation3 + $0x5c]] }
 0x363   : > { %v4491_v32 = vadd.f32 %v4436_v37, %v1550_v3  ;;  %v2016_v41 = vsel %vm307_vm6, %v2014_v43, %v2015_v6  ;;  %v2033_v8 = vmul.f32 %v2032_v42, %v4170_v48  ;;  %v2018_v62 = vsel %vm307_vm6, %v2015_v6, %v2017_v40 }
 0x364   : > { %1944 = vrot.lane.b32.xlu0 %v1941_v17, %s3121_s18  ;;  %1948 = vrot.lane.b32.xlu2 %v1942_v7, %s3121_s18  ;;  %v1965_v16 = vrot.slane %v1959_v15, 2  ;;  %v2034_v3 = vmul.f32 %v2032_v42, %v3554_v29 }
 0x365   : > { %1946 = vrot.lane.b32.xlu1 %v1943_v20, %s3121_s18  ;;  %v2039_v59 = vrot.slane %v2033_v8, 2 }
 0x366   : > { %v4502_v52 = vpop.permute.xlu2 %1635  ;;  %v1564_v37 = vpop.permute.xlu0 %1563  ;;  %v1966_v34 = vsel %vm307_vm6, %v1964_v14, %v1965_v16  ;;  %v1968_v4 = vsel %vm307_vm6, %v1965_v16, %v1967_v38 }
 0x367   : > { %v1566_v10 = vpop.permute.xlu1 %1565  ;;  %v1569_v19 = vadd.f32 %v1564_v37, %v1553_v39  ;;  %v2040_v39 = vrot.slane %v2034_v3, 2 }
 0x368   : > { %v1570_v58 = vadd.f32 %v1566_v10, %v1554_v21  ;;  %v2057_v10 = vstv %s2877_s19  ;;  %s2871_s19 = sld [smem:[#allocation3 + $0x46]] }
 0x369   : > { %v1583_v50 = vadd.f32 %v4456_v24, %v1569_v19  ;;  %v2041_v19 = vsel %vm307_vm6, %v2039_v59, %v2040_v39  ;;  %v2058_v14 = vmul.f32 %v2057_v10, %v4170_v48  ;;  %v2060_v36 = vmul.f32 %v2057_v10, %v4305_v63 }
 0x36b   : > { %v2064_v12 = vrot.slane %v2058_v14, 2  ;;  %v2067_v5 = vrot.slane %v2060_v36, 2 }
 0x36c   : > { %1973 = vrot.lane.b32.xlu2 %v1967_v38, %s3129_s28  ;;  %1969 = vrot.lane.b32.xlu0 %v1966_v34, %s3129_s28 }
 0x36d   : > { %1971 = vrot.lane.b32.xlu1 %v1968_v4, %s3129_s28 }
 0x36e   : > { %v1662_v24 = vpop.permute.xlu2 %1661  ;;  %v1580_v22 = vpop.permute.xlu0 %1579 }
 0x36f   : > { %v1592_v1 = vpop.permute.xlu1 %1591  ;;  %v1584_v33 = vadd.f32 %v1580_v22, %v1570_v58  ;;  %v1668_v23 = vadd.f32 %v1662_v24, %v1645_v13  ;;  %v2099_v58 = vstv %s2879_s24  ;;  %v2120_v24 = vstv %s2880_s9  ;;  %s2888_s24 = sld [smem:[#allocation3 + $0x57]] }
 0x370   : > { %v1597_v61 = vadd.f32 %v1592_v1, %v1583_v50  ;;  %v2059_v50 = vmul.f32 %v2057_v10, %v3554_v29  ;;  %v1643_v22 = vmul.f32 %v4515_v31, %v4170_v48  ;;  %v2121_v1 = vmul.f32 %v2120_v24, %v4170_v48  ;;  %s2894_s9 = sld [smem:[#allocation3 + $0x5d]] }
 0x371   : > { %v1598_v44 = vadd.f32 %v4470_v51, %v1584_v33  ;;  %v2100_v33 = vmul.f32 %v2099_v58, %v4170_v48  ;;  %v2101_v11 = vmul.f32 %v2099_v58, %v3554_v29  ;;  %v2102_v57 = vmul.f32 %v2099_v58, %v4305_v63 }
 0x372   : > { %v2065_v4 = vrot.slane %v2059_v50, 2 }
 0x373   : > { %v2107_v27 = vrot.slane %v2101_v11, 4 }
 0x374   : > { %1998 = vrot.lane.b32.xlu2 %v1992_v53, %s3122_s21  ;;  %1994 = vrot.lane.b32.xlu0 %v1991_v35, %s3122_s21  ;;  %v2066_v28 = vsel %vm307_vm6, %v2064_v12, %v2065_v4  ;;  %v2122_v53 = vmul.f32 %v2120_v24, %v3554_v29 }
 0x375   : > { %1996 = vrot.lane.b32.xlu1 %v1993_v26, %s3122_s21 }
 0x376   : > { %v1682_v51 = vpop.permute.xlu2 %1681  ;;  %v1606_v55 = vpop.permute.xlu0 %1605 }
 0x377   : > { %v1608_v47 = vpop.permute.xlu1 %1607  ;;  %v1688_v30 = vadd.f32 %v1682_v51, %v1668_v23  ;;  %v1611_v2 = vadd.f32 %v1606_v55, %v1597_v61  ;;  %v2068_v61 = vsel %vm307_vm6, %v2065_v4, %v2067_v5  ;;  %v2127_v23 = vrot.slane %v2121_v1, 4 }
 0x378   : > { %v1612_v49 = vadd.f32 %v1608_v47, %v1598_v44  ;;  %v2106_v51 = vrot.slane %v2100_v33, 4  ;;  %v2128_v47 = vrot.slane %v2122_v53, 4  ;;  %v2204_v33 = vstv %s2884_s23  ;;  %s2897_s23 = sld [smem:[#allocation3 + $0x60]] }
 0x379   : > { %v1625_v25 = vadd.f32 %v4483_v0, %v1611_v2  ;;  %v2035_v0 = vmul.f32 %v2032_v42, %v4305_v63  ;;  %v2141_v2 = vstv %s2881_s10  ;;  %s2889_s10 = sld [smem:[#allocation3 + $0x58]] }
 0x37a   : > { %v2129_v43 = vsel %vm211_vm0, %v2127_v23, %v2128_v47  ;;  %v2143_v6 = vmul.f32 %v2141_v2, %v3554_v29  ;;  %v2144_v42 = vmul.f32 %v2141_v2, %v4305_v63 }
 0x37b   : > { %v2042_v46 = vrot.slane %v2035_v0, 2 }
 0x37c   : > { %2023 = vrot.lane.b32.xlu2 %v2017_v40, %s3132_s22  ;;  %2019 = vrot.lane.b32.xlu0 %v2016_v41, %s3132_s22  ;;  %v2142_v40 = vmul.f32 %v2141_v2, %v4170_v48  ;;  %v2123_v41 = vmul.f32 %v2120_v24, %v4305_v63  ;;  %v2149_v0 = vrot.slane %v2143_v6, 4 }
 0x37d   : > { %2021 = vrot.lane.b32.xlu1 %v2018_v62, %s3132_s22  ;;  %v2043_v16 = vsel %vm307_vm6, %v2040_v39, %v2042_v46  ;;  %v2162_v39 = vstv %s2882_s11  ;;  %s2890_s11 = sld [smem:[#allocation3 + $0x59]] }
 0x37e   : > { %v1702_v7 = vpop.permute.xlu2 %1701  ;;  %v1622_v60 = vpop.permute.xlu0 %1621  ;;  %v2130_v59 = vrot.slane %v2123_v41, 4 }
 0x37f   : > { %v1634_v17 = vpop.permute.xlu1 %1633  ;;  %v1708_v18 = vadd.f32 %v1702_v7, %v1688_v30  ;;  %v1626_v20 = vadd.f32 %v1622_v60, %v1612_v49  ;;  %v2109_v30 = vrot.slane %v2102_v57, 4  ;;  %v2108_v49 = vsel %vm211_vm0, %v2106_v51, %v2107_v27 }
 0x380   : > { %v4537_v15 = vadd.f32 %v1634_v17, %v1625_v25 }
 0x381   : > { %v4540_v37 = vadd.f32 %v4502_v52, %v1626_v20  ;;  %v2110_v25 = vsel %vm211_vm0, %v2107_v27, %v2109_v30  ;;  %v2151_v20 = vrot.slane %v2144_v42, 4  ;;  %v2205_v42 = vmul.f32 %v2204_v33, %v4170_v48 }
 0x383   : > { %v2152_v10 = vsel %vm211_vm0, %v2149_v0, %v2151_v20 }
 0x384   : > { %2048 = vrot.lane.b32.xlu2 %v2042_v46, %s3130_s7  ;;  %2044 = vrot.lane.b32.xlu0 %v2041_v19, %s3130_s7  ;;  %v2183_v46 = vstv %s2883_s13  ;;  %v2131_v19 = vsel %vm211_vm0, %v2128_v47, %v2130_v59  ;;  %v2211_v59 = vrot.slane %v2205_v42, 4  ;;  %v2432_v42 = vstv %s2894_s9  ;;  %s2895_s13 = sld [smem:[#allocation3 + $0x5e]]  ;;  %s2907_s9 = sshll.u32 %s3177_s1, 3 }
 0x385   : > { %2046 = vrot.lane.b32.xlu1 %v2043_v16, %s3130_s7  ;;  %v2185_v14 = vmul.f32 %v2183_v46, %v3554_v29  ;;  %v2163_v16 = vmul.f32 %v2162_v39, %v4170_v48  ;;  %v2184_v53 = vmul.f32 %v2183_v46, %v4170_v48 }
 0x386   : > { %v1722_v52 = vpop.permute.xlu2 %1721  ;;  %v1658_v38 = vpop.permute.xlu0 %1657 }
 0x387   : > { %v1660_v21 = vpop.permute.xlu1 %1659  ;;  %v1728_v34 = vadd.f32 %v1722_v52, %v1708_v18  ;;  %v1666_v44 = vadd.f32 %v1658_v38, %v1643_v22  ;;  %v2148_v18 = vrot.slane %v2142_v40, 4  ;;  %v2164_v52 = vmul.f32 %v2162_v39, %v3554_v29 }
 0x388   : > { %v1667_v54 = vadd.f32 %v1660_v21, %v1644_v56  ;;  %v2186_v38 = vmul.f32 %v2183_v46, %v4305_v63  ;;  %v2169_v58 = vrot.slane %v2163_v16, 4  ;;  %v2244_v56 = vstv %s2886_s26  ;;  %s2898_s26 = sld [smem:[#allocation3 + $0x61]] }
 0x389   : > { %v2150_v50 = vsel %vm211_vm0, %v2148_v18, %v2149_v0  ;;  %v2170_v22 = vrot.slane %v2164_v52, 4  ;;  %v2245_v6 = vmul.f32 %v2244_v56, %v4170_v48 }
 0x38b   : > { %v2171_v11 = vsel %vm211_vm0, %v2169_v58, %v2170_v22 }
 0x38c   : > { %2073 = vrot.lane.b32.xlu2 %v2067_v5, %s3131_s8  ;;  %2069 = vrot.lane.b32.xlu0 %v2066_v28, %s3131_s8  ;;  %v2191_v5 = vrot.slane %v2185_v14, 4  ;;  %v2193_v28 = vrot.slane %v2186_v38, 4 }
 0x38d   : > { %2071 = vrot.lane.b32.xlu1 %v2068_v61, %s3131_s8 }
 0x38e   : > { %v1742_v13 = vpop.permute.xlu2 %1741  ;;  %v1678_v35 = vpop.permute.xlu0 %1677  ;;  %v2194_v61 = vsel %vm211_vm0, %v2191_v5, %v2193_v28 }
 0x38f   : > { %v1680_v26 = vpop.permute.xlu1 %1679  ;;  %v1748_v31 = vadd.f32 %v1742_v13, %v1728_v34  ;;  %v1686_v45 = vadd.f32 %v1678_v35, %v1666_v44  ;;  %v2165_v34 = vmul.f32 %v2162_v39, %v4305_v63  ;;  %v2246_v44 = vmul.f32 %v2244_v56, %v3554_v29 }
 0x390   : > { %v1687_v55 = vadd.f32 %v1680_v26, %v1667_v54  ;;  %v2206_v13 = vmul.f32 %v2204_v33, %v3554_v29  ;;  %v2247_v35 = vmul.f32 %v2244_v56, %v4305_v63 }
 0x391   : > { %v2172_v1 = vrot.slane %v2165_v34, 4  ;;  %v2252_v51 = vrot.slane %v2246_v44, 4  ;;  %v4628_v34 = vstv %s2871_s19  ;;  %s4919_s19 = smov 80  }
 0x392   : > { %v2212_v47 = vrot.slane %v2206_v13, 4  ;;  %v2254_v30 = vrot.slane %v2247_v35, 4  ;;  %v2294_v13 = vstv %s2888_s24  ;;  %s4920_s24 = smov 96  }
 0x393   : > { %v2173_v54 = vsel %vm211_vm0, %v2170_v22, %v2172_v1 }
 0x394   : > { %2132 = vrot.lane.b32.xlu2 %v2129_v43, %s3129_s28  ;;  %2111 = vrot.lane.b32.xlu0 %v2108_v49, %s3121_s18  ;;  %v2255_v43 = vsel %vm211_vm0, %v2252_v51, %v2254_v30  ;;  %v2213_v38 = vsel %vm211_vm0, %v2211_v59, %v2212_v47 }
 0x395   : > { %2113 = vrot.lane.b32.xlu1 %v2110_v25, %s3121_s18  ;;  %v1770_v25 = vstv %s2864_s27  ;;  %s4916_s27 = smov 16  }
 0x396   : > { %v1762_v8 = vpop.permute.xlu2 %1761  ;;  %v1698_v62 = vpop.permute.xlu0 %1697  ;;  %v1771_v41 = vmul.f32 %v1770_v25, %v4170_v48  ;;  %v1773_v18 = vmul.f32 %v1770_v25, %v4305_v63 }
 0x397   : > { %v1700_v3 = vpop.permute.xlu1 %1699  ;;  %v4574_v7 = vadd.f32 %v1762_v8, %v1748_v31  ;;  %v1706_v60 = vadd.f32 %v1698_v62, %v1686_v45  ;;  %v2207_v31 = vmul.f32 %v2204_v33, %v4305_v63  ;;  %v1772_v8 = vmul.f32 %v1770_v25, %v3554_v29 }
 0x398   : > { %v1707_v17 = vadd.f32 %v1700_v3, %v1687_v55  ;;  %v2190_v55 = vrot.slane %v2184_v53, 4  ;;  %v1777_v39 = vrot.slane %v1771_v41, 2  ;;  %v1780_v16 = vrot.slane %v1773_v18, 2 }
 0x399   : > { %v2214_v2 = vrot.slane %v2207_v31, 4  ;;  %v1778_v46 = vrot.slane %v1772_v8, 2  ;;  %v2295_v41 = vmul.f32 %v2294_v13, %v4170_v48 }
 0x39a   : > { %v2192_v49 = vsel %vm211_vm0, %v2190_v55, %v2191_v5  ;;  %v2297_v55 = vmul.f32 %v2294_v13, %v4305_v63 }
 0x39b   : > { %v2215_v40 = vsel %vm211_vm0, %v2212_v47, %v2214_v2 }
 0x39c   : > { %2155 = vrot.lane.b32.xlu2 %v2152_v10, %s3122_s21  ;;  %2134 = vrot.lane.b32.xlu0 %v2131_v19, %s3129_s28  ;;  %v2269_v10 = vstv %s2887_s5  ;;  %v2411_v19 = vstv %s2893_s6  ;;  %v2304_v25 = vrot.slane %v2297_v55, 4  ;;  %s4917_s5 = smov 48   ;;  %s4918_s6 = smov 64  }
 0x39d   : > { %2153 = vrot.lane.b32.xlu1 %v2150_v50, %s3122_s21  ;;  %v4621_v50 = vmul.f32 %v2411_v19, %v3554_v29  ;;  %v2271_v52 = vmul.f32 %v2269_v10, %v3554_v29  ;;  %v2272_v5 = vmul.f32 %v2269_v10, %v4305_v63  ;;  %v2414_v58 = vmul.f32 %v2411_v19, %v4305_v63 }
 0x39e   : > { %v4586_v36 = vpop.permute.xlu2 %1820  ;;  %v1718_v21 = vpop.permute.xlu0 %1717  ;;  %v2270_v31 = vmul.f32 %v2269_v10, %v4170_v48 }
 0x39f   : > { %v1720_v12 = vpop.permute.xlu1 %1719  ;;  %v1726_v4 = vadd.f32 %v1718_v21, %v1706_v60  ;;  %v1779_v21 = vsel %vm307_vm6, %v1777_v39, %v1778_v46  ;;  %v2419_v56 = vrot.slane %v4621_v50, 6  ;;  %v2421_v53 = vrot.slane %v2414_v58, 6 }
 0x3a0   : > { %v1727_v24 = vadd.f32 %v1720_v12, %v1707_v17  ;;  %v2251_v17 = vrot.slane %v2245_v6, 4  ;;  %v1781_v12 = vsel %vm307_vm6, %v1778_v46, %v1780_v16  ;;  %v2276_v2 = vrot.slane %v2270_v31, 4 }
 0x3a1   : > { %v2301_v46 = vrot.slane %v2295_v41, 4  ;;  %v2344_v31 = vstv %s2890_s11 }
 0x3a2   : > { %v2253_v14 = vsel %vm211_vm0, %v2251_v17, %v2252_v51  ;;  %v2435_v17 = vmul.f32 %v2432_v42, %v4305_v63 }
 0x3a4   : > { %2197 = vrot.lane.b32.xlu2 %v2194_v61, %s3130_s7  ;;  %2174 = vrot.lane.b32.xlu0 %v2171_v11, %s3132_s22  ;;  %v2277_v61 = vrot.slane %v2271_v52, 4  ;;  %v4641_v11 = vmul.f32 %v4628_v34, %v4305_v63  ;;  %v2442_v50 = vrot.slane %v2435_v17, 6  ;;  %v2319_v52 = vstv %s2889_s10 }
 0x3a5   : > { %2176 = vrot.lane.b32.xlu1 %v2173_v54, %s3132_s22  ;;  %v2322_v58 = vmul.f32 %v2319_v52, %v4305_v63  ;;  %v2320_v55 = vmul.f32 %v2319_v52, %v4170_v48 }
 0x3a6   : > { %v4599_v57 = vpop.permute.xlu2 %1843  ;;  %v1738_v26 = vpop.permute.xlu0 %1737 }
 0x3a7   : > { %v1740_v45 = vpop.permute.xlu1 %1739  ;;  %v1746_v23 = vadd.f32 %v1738_v26, %v1726_v4  ;;  %v1784_v4 = vadd.f32 %v1779_v21, %v4537_v15  ;;  %v2279_v15 = vrot.slane %v2272_v5, 4  ;;  %v1923_v26 = vrot.slane %v4641_v11, 2 }
 0x3a8   : > { %v1747_v27 = vadd.f32 %v1740_v45, %v1727_v24  ;;  %v1785_v24 = vadd.f32 %v1781_v12, %v4540_v37  ;;  %v2422_v37 = vsel %vm300_vm3, %v2419_v56, %v2421_v53  ;;  %v2296_v45 = vmul.f32 %v2294_v13, %v3554_v29 }
 0x3a9   : > { %v2280_v35 = vsel %vm211_vm0, %v2277_v61, %v2279_v15  ;;  %v2433_v12 = vmul.f32 %v2432_v42, %v4170_v48  ;;  %v2326_v11 = vrot.slane %v2320_v55, 4 }
 0x3ac   : > { %2258 = vrot.lane.b32.xlu2 %v2255_v43, %s3121_s18  ;;  %2195 = vrot.lane.b32.xlu0 %v2192_v49, %s3130_s7  ;;  %v2302_v49 = vrot.slane %v2296_v45, 4  ;;  %v2453_v45 = vstv %s2895_s13  ;;  %s2704_s13 = scalar_lea.hbm %s4847_s3, %s2907_s9 }
 0x3ad   : > { %2218 = vrot.lane.b32.xlu1 %v2215_v40, %s3131_s8  ;;  %v2278_v40 = vsel %vm211_vm0, %v2276_v2, %v2277_v61  ;;  %v2456_v2 = vmul.f32 %v2453_v45, %v4305_v63 }
 0x3ae   : > { %v4612_v62 = vpop.permute.xlu2 %1883  ;;  %v1758_v3 = vpop.permute.xlu0 %1757  ;;  %v2305_v8 = vsel %vm211_vm0, %v2302_v49, %v2304_v25 }
 0x3af   : > { %v1760_v60 = vpop.permute.xlu1 %1759  ;;  %v4614_v0 = vadd.f32 %v1758_v3, %v1746_v23  ;;  %v2434_v3 = vmul.f32 %v2432_v42, %v3554_v29 }
 0x3b0   : > { %v4617_v20 = vadd.f32 %v1760_v60, %v1747_v27 }
 0x3b4   : > { %2256 = vrot.lane.b32.xlu2 %v2253_v14, %s3121_s18  ;;  %2260 = vrot.lane.b32.xlu0 %v2254_v30, %s3121_s18  ;;  %v2440_v14 = vrot.slane %v2434_v3, 6 }
 0x3b5   : > { %2216 = vrot.lane.b32.xlu1 %v2213_v38, %s3131_s8  ;;  %v2303_v38 = vsel %vm211_vm0, %v2301_v46, %v2302_v49 }
 0x3b6   : > { %v4636_v22 = vpop.permute.xlu2 %1906  ;;  %v1800_v28 = vpop.permute.xlu0 %1799  ;;  %v2443_v5 = vsel %vm300_vm3, %v2440_v14, %v2442_v50 }
 0x3b7   : > { %v1802_v1 = vpop.permute.xlu1 %1801  ;;  %v1805_v33 = vadd.f32 %v1800_v28, %v1784_v4  ;;  %v2321_v4 = vmul.f32 %v2319_v52, %v3554_v29 }
 0x3b8   : > { %v1806_v44 = vadd.f32 %v1802_v1, %v1785_v24  ;;  %v1915_v24 = vmul.f32 %v4628_v34, %v3554_v29 }
 0x3b9   : > { %v1826_v54 = vadd.f32 %v4586_v36, %v1805_v33  ;;  %v1930_v36 = vadd.f32 %v1923_v26, %v4574_v7  ;;  %v2412_v7 = vmul.f32 %v2411_v19, %v4170_v48 }
 0x3bb   : > { %v2418_v10 = vrot.slane %v2412_v7, 6 }
 0x3bc   : > { %2425 = vrot.lane.b32.xlu2 %v2422_v37, %s3121_s18  ;;  %2283 = vrot.lane.b32.xlu0 %v2280_v35, %s3129_s28  ;;  %v2329_v37 = vrot.slane %v2322_v58, 4  ;;  %v1921_v35 = vrot.slane %v1915_v24, 2 }
 0x3bd   : > { %2285 = vrot.lane.b32.xlu1 %v2279_v15, %s3129_s28  ;;  %v2420_v21 = vsel %vm300_vm3, %v2418_v10, %v2419_v56  ;;  %v2327_v15 = vrot.slane %v2321_v4, 4  ;;  %v2345_v4 = vmul.f32 %v2344_v31, %v4170_v48 }
 0x3be   : > { %v1949_v23 = vpop.permute.xlu2 %1948  ;;  %v1823_v51 = vpop.permute.xlu0 %1822 }
 0x3bf   : > { %v1842_v27 = vpop.permute.xlu1 %1841  ;;  %v1955_v47 = vadd.f32 %v1949_v23, %v1930_v36  ;;  %v1827_v30 = vadd.f32 %v1823_v51, %v1806_v44  ;;  %v2439_v44 = vrot.slane %v2433_v12, 6  ;;  %v2330_v36 = vsel %vm211_vm0, %v2327_v15, %v2329_v37 }
 0x3c0   : > { %v1847_v43 = vadd.f32 %v1842_v27, %v1826_v54  ;;  %v4688_v23 = vmul.f32 %v2344_v31, %v3554_v29  ;;  %v2455_v51 = vmul.f32 %v2453_v45, %v3554_v29  ;;  %v1924_v27 = vsel %vm307_vm6, %v1921_v35, %v1923_v26 }
 0x3c1   : > { %v1848_v6 = vadd.f32 %v4599_v57, %v1827_v30  ;;  %v2347_v30 = vmul.f32 %v2344_v31, %v4305_v63  ;;  %v2463_v26 = vrot.slane %v2456_v2, 6 }
 0x3c2   : > { %v2352_v41 = vrot.slane %v4688_v23, 4  ;;  %v2461_v7 = vrot.slane %v2455_v51, 6 }
 0x3c3   : > { %v2354_v3 = vrot.slane %v2347_v30, 4 }
 0x3c4   : > { %2310 = vrot.lane.b32.xlu2 %v2304_v25, %s3122_s21  ;;  %2281 = vrot.lane.b32.xlu0 %v2278_v40, %s3129_s28 }
 0x3c5   : > { %2308 = vrot.lane.b32.xlu1 %v2305_v8, %s3122_s21 }
 0x3c6   : > { %v1974_v57 = vpop.permute.xlu2 %1973  ;;  %v1863_v60 = vpop.permute.xlu0 %1862 }
 0x3c7   : > { %v1865_v18 = vpop.permute.xlu1 %1864  ;;  %v1980_v59 = vadd.f32 %v1974_v57, %v1955_v47  ;;  %v1868_v39 = vadd.f32 %v1863_v60, %v1847_v43  ;;  %v1929_v43 = vadd.f32 %v1924_v27, %v4617_v20  ;;  %v2464_v60 = vsel %vm300_vm3, %v2461_v7, %v2463_v26 }
 0x3c8   : > { %v1869_v19 = vadd.f32 %v1865_v18, %v1848_v6  ;;  %v2328_v20 = vsel %vm211_vm0, %v2326_v11, %v2327_v15  ;;  %v2454_v18 = vmul.f32 %v2453_v45, %v4170_v48 }
 0x3c9   : > { %v1889_v16 = vadd.f32 %v4612_v62, %v1868_v39  ;;  %v1914_v62 = vmul.f32 %v4628_v34, %v4170_v48  ;;  %v2441_v34 = vsel %vm300_vm3, %v2439_v44, %v2440_v14 }
 0x3ca   : > { %v2460_v52 = vrot.slane %v2454_v18, 6 }
 0x3cb   : > { %v1920_v54 = vrot.slane %v1914_v62, 2 }
 0x3cc   : > { %2306 = vrot.lane.b32.xlu2 %v2303_v38, %s3122_s21  ;;  %2423 = vrot.lane.b32.xlu0 %v2420_v21, %s3121_s18  ;;  %s2896_s18 = sld [smem:[#allocation3 + $0x5f]] }
 0x3cd   : > { %2446 = vrot.lane.b32.xlu1 %v2443_v5, %s3129_s28  ;;  %v2462_v5 = vsel %vm300_vm3, %v2460_v52, %v2461_v7 }
 0x3ce   : > { %v1999_v28 = vpop.permute.xlu2 %1998  ;;  %v1886_v1 = vpop.permute.xlu0 %1885 }
 0x3cf   : > { %v1905_v33 = vpop.permute.xlu1 %1904  ;;  %v2005_v56 = vadd.f32 %v1999_v28, %v1980_v59  ;;  %v1890_v61 = vadd.f32 %v1886_v1, %v1869_v19 }
 0x3d0   : > { %v4680_v53 = vadd.f32 %v1905_v33, %v1889_v16 }
 0x3d1   : > { %v4683_v13 = vadd.f32 %v4636_v22, %v1890_v61  ;;  %v1922_v22 = vsel %vm307_vm6, %v1920_v54, %v1921_v35  ;;  %v2351_v61 = vrot.slane %v2345_v4, 4  ;;  %v2495_v35 = vstv %s2897_s23  ;;  %s2708_s23 = sshll.u32 %s2704_s13, 4  ;;  %s2709_s23 = int_to_ptr.hbm [resolvable:$true] %s2708_s23 }
 0x3d2   : > { %v1928_v47 = vadd.f32 %v1922_v22, %v4614_v0  ;;  %v2474_v57 = vstv %s2896_s18  ;;  %v2355_v0 = vsel %vm211_vm0, %v2352_v41, %v2354_v3  ;;  %v2498_v51 = vmul.f32 %v2495_v35, %v4305_v63  ;;  %s4922_s18 = sshll.u32 %s3253_s4, 3 }
 0x3d3   : > { %v2476_v17 = vmul.f32 %v2474_v57, %v3554_v29  ;;  %v2477_v59 = vmul.f32 %v2474_v57, %v4305_v63  ;;  %v2475_v45 = vmul.f32 %v2474_v57, %v4170_v48  ;;  %vm2664_vm6 = vcmask 261120  }
 0x3d4   : > { %2444 = vrot.lane.b32.xlu2 %v2441_v34, %s3129_s28  ;;  %2333 = vrot.lane.b32.xlu0 %v2330_v36, %s3132_s22  ;;  %s2891_s28 = sld [smem:[#allocation3 + $0x5a]]  ;;  %v2497_v36 = vmul.f32 %v2495_v35, %v3554_v29 }
 0x3d5   : > { %2335 = vrot.lane.b32.xlu1 %v2329_v37, %s3132_s22  ;;  %v2482_v16 = vrot.slane %v2476_v17, 6  ;;  %v2484_v38 = vrot.slane %v2477_v59, 6  ;;  %v2353_v37 = vsel %vm211_vm0, %v2351_v61, %v2352_v41  ;;  %v2481_v30 = vrot.slane %v2475_v45, 6 }
 0x3d6   : > { %v2024_v49 = vpop.permute.xlu2 %2023  ;;  %v1945_v6 = vpop.permute.xlu0 %1944  ;;  %v2496_v41 = vmul.f32 %v2495_v35, %v4170_v48 }
 0x3d7   : > { %v1947_v25 = vpop.permute.xlu1 %1946  ;;  %v2030_v40 = vadd.f32 %v2024_v49, %v2005_v56  ;;  %v1953_v42 = vadd.f32 %v1945_v6, %v1928_v47  ;;  %v2485_v21 = vsel %vm300_vm3, %v2482_v16, %v2484_v38  ;;  %v2505_v49 = vrot.slane %v2498_v51, 6 }
 0x3d8   : > { %v1954_v8 = vadd.f32 %v1947_v25, %v1929_v43  ;;  %v2503_v43 = vrot.slane %v2497_v36, 6  ;;  %v2516_v6 = vstv %s2898_s26  ;;  %s2693_s26 = scalar_lea.sflag [#allocation5], %s3253_s4 }
 0x3da   : > { %v2369_v12 = vstv %s2891_s28  ;;  %v2506_v7 = vsel %vm300_vm3, %v2503_v43, %v2505_v49  ;;  %s203_s28 = scalar_lea.vmem [#allocation8], %s4922_s18 }
 0x3db   : > { %v2371_v62 = vmul.f32 %v2369_v12, %v3554_v29  ;;  %v2372_v28 = vmul.f32 %v2369_v12, %v4305_v63  ;;  %v2370_v31 = vmul.f32 %v2369_v12, %v4170_v48  ;;  %s2706_s1 = sshll.u32 %s203_s28, 4  ;;  %s2707_s1 = int_to_ptr.vmem [resolvable:$true] %s2706_s1 }
 0x3dc   : > { %2358 = vrot.lane.b32.xlu2 %v2355_v0, %s3130_s7  ;;  %2467 = vrot.lane.b32.xlu0 %v2464_v60, %s3122_s21  ;;  %v2502_v60 = vrot.slane %v2496_v41, 6 }
 0x3dd   : > { %2331 = vrot.lane.b32.xlu1 %v2328_v20, %s3132_s22  ;;  %v2377_v15 = vrot.slane %v2371_v62, 4  ;;  %v2379_v54 = vrot.slane %v2372_v28, 4  ;;  %v2376_v47 = vrot.slane %v2370_v31, 4 }
 0x3de   : > { %v2049_v39 = vpop.permute.xlu2 %2048  ;;  %v1970_v46 = vpop.permute.xlu0 %1969 }
 0x3df   : > { %v1972_v10 = vpop.permute.xlu1 %1971  ;;  %v2055_v19 = vadd.f32 %v2049_v39, %v2030_v40  ;;  %v1978_v14 = vadd.f32 %v1970_v46, %v1953_v42  ;;  %v2380_v34 = vsel %vm211_vm0, %v2377_v15, %v2379_v54  ;;  %v2378_v25 = vsel %vm211_vm0, %v2376_v47, %v2377_v15 }
 0x3e0   : > { %v1979_v50 = vadd.f32 %v1972_v10, %v1954_v8  ;;  %v2483_v40 = vsel %vm300_vm3, %v2481_v30, %v2482_v16  ;;  %v2517_v42 = vmul.f32 %v2516_v6, %v4170_v48  ;;  %v2518_v8 = vmul.f32 %v2516_v6, %v3554_v29 }
 0x3e1   : > { %v2504_v46 = vsel %vm300_vm3, %v2502_v60, %v2503_v43 }
 0x3e2   : > { %v2523_v0 = vrot.slane %v2517_v42, 6  ;;  %v2524_v20 = vrot.slane %v2518_v8, 6 }
 0x3e4   : > { %2488 = vrot.lane.b32.xlu2 %v2485_v21, %s3132_s22  ;;  %2360 = vrot.lane.b32.xlu0 %v2354_v3, %s3130_s7  ;;  %v2519_v3 = vmul.f32 %v2516_v6, %v4305_v63  ;;  %v2525_v39 = vsel %vm300_vm3, %v2523_v0, %v2524_v20 }
 0x3e5   : > { %2465 = vrot.lane.b32.xlu1 %v2462_v5, %s3122_s21  ;;  %s2878_s21 = sld [smem:[#allocation3 + $0x4d]] }
 0x3e6   : > { %v2074_v58 = vpop.permute.xlu2 %2073  ;;  %v1995_v24 = vpop.permute.xlu0 %1994  ;;  %v2526_v59 = vrot.slane %v2519_v3, 6 }
 0x3e7   : > { %v1997_v1 = vpop.permute.xlu1 %1996  ;;  %v4721_v33 = vadd.f32 %v2074_v58, %v2055_v19  ;;  %v2003_v56 = vadd.f32 %v1995_v24, %v1978_v14 }
 0x3e8   : > { %v2004_v44 = vadd.f32 %v1997_v1, %v1979_v50  ;;  %v2527_v19 = vsel %vm300_vm3, %v2524_v20, %v2526_v59 }
 0x3eb   : > { %v2082_v10 = vstv %s2878_s21  ;;  %s3054_s21 = sshra.s32 %s2709_s23, 4  ;;  %s3055_s21 = int_to_ptr.hbm [resolvable:$true] %s3054_s21 }
 0x3ec   : > { %2385 = vrot.lane.b32.xlu2 %v2379_v54, %s3131_s8  ;;  %2356 = vrot.lane.b32.xlu0 %v2353_v37, %s3130_s7  ;;  %v2083_v14 = vmul.f32 %v2082_v10, %v4170_v48  ;;  %v2084_v16 = vmul.f32 %v2082_v10, %v3554_v29  ;;  %v2085_v21 = vmul.f32 %v2082_v10, %v4305_v63  ;;  %p3061_p9 = scmp.lt.s32.totalorder %s3055_s21, %s4847_s3 }
 0x3ed   : > { %2383 = vrot.lane.b32.xlu1 %v2380_v34, %s3131_s8 }
 0x3ee   : > { %v2020_v23 = vpop.permute.xlu0 %2019  ;;  %v2133_v55 = vpop.permute.xlu2 %2132  ;;  %v2089_v4 = vrot.slane %v2083_v14, 4  ;;  %v2090_v5 = vrot.slane %v2084_v16, 4  ;;  %v2092_v58 = vrot.slane %v2085_v21, 4 }
 0x3ef   : > { %v2022_v22 = vpop.permute.xlu1 %2021  ;;  %v2028_v27 = vadd.f32 %v2020_v23, %v2003_v56 }
 0x3f0   : > { %v2029_v2 = vadd.f32 %v2022_v22, %v2004_v44  ;;  %v2091_v24 = vsel %vm211_vm0, %v2089_v4, %v2090_v5  ;;  %v2093_v28 = vsel %vm211_vm0, %v2090_v5, %v2092_v58 }
 0x3f1   : > { %v2096_v1 = vadd.f32 %v2091_v24, %v4680_v53  ;;  %v2097_v56 = vadd.f32 %v2093_v28, %v4683_v13 }
 0x3f4   : > { %2381 = vrot.lane.b32.xlu2 %v2378_v25, %s3131_s8  ;;  %2486 = vrot.lane.b32.xlu0 %v2483_v40, %s3132_s22  ;;  %s2562_s22 = sld [smem:[#allocation2]] }
 0x3f5   : > { %2509 = vrot.lane.b32.xlu1 %v2506_v7, %s3130_s7 }
 0x3f6   : > { %v2045_v11 = vpop.permute.xlu0 %2044  ;;  %v2156_v18 = vpop.permute.xlu2 %2155 }
 0x3f7   : > { %v2047_v26 = vpop.permute.xlu1 %2046  ;;  %v2053_v57 = vadd.f32 %v2045_v11, %v2028_v27 }
 0x3f8   : > { %v2054_v17 = vadd.f32 %v2047_v26, %v2029_v2 }
 0x3fc   : > { %2528 = vrot.lane.b32.xlu2 %v2525_v39, %s3131_s8  ;;  %2507 = vrot.lane.b32.xlu0 %v2504_v46, %s3130_s7  ;;  %s2885_s7 = sld [smem:[#allocation3 + $0x54]] }
 0x3fd   : > { %2530 = vrot.lane.b32.xlu1 %v2527_v19, %s3131_s8  ;;  %s2892_s8 = sld [smem:[#allocation3 + $0x5b]] }
 0x3fe   : > { %v2070_v50 = vpop.permute.xlu0 %2069  ;;  %v2198_v62 = vpop.permute.xlu2 %2197 }
 0x3ff   : > { %v2072_v52 = vpop.permute.xlu1 %2071  ;;  %v4750_v38 = vadd.f32 %v2070_v50, %v2053_v57 }
 0x400   : > { %v2079_v12 = vadd.f32 %v2072_v52, %v2054_v17 }
 0x402   : > { %v2225_v0 = vstv %s2885_s7  ;;  %s3056_s7 = scalar_lea.hbm %s3055_s21, 8 }
 0x403   : > { %v2228_v20 = vmul.f32 %v2225_v0, %v4305_v63  ;;  %v2226_v52 = vmul.f32 %v2225_v0, %v4170_v48  ;;  %v2394_v24 = vstv %s2892_s8  ;;  %p3057_p1 = scmp.ne.s32.totalorder %s3055_s21, %s3056_s7 }
 0x405   : > { %v2235_v39 = vrot.slane %v2228_v20, 4  ;;  %v2232_v58 = vrot.slane %v2226_v52, 4  ;;  %p3058_p4 = pnand %p3057_p1, %p3222_p3 }
 0x406   : > { %v2112_v61 = vpop.permute.xlu0 %2111  ;;  %v2259_v35 = vpop.permute.xlu2 %2258 }
 0x407   : > { %v2114_v44 = vpop.permute.xlu1 %2113  ;;  %v2117_v15 = vadd.f32 %v2112_v61, %v2096_v1  ;;  %v2242_v10 = vadd.f32 %v2235_v39, %v4721_v33  ;;  %v2396_v61 = vmul.f32 %v2394_v24, %v3554_v29  ;;  %p3059_p8 = pneg %p3058_p4 }
 0x408   : > { %v2118_v54 = vadd.f32 %v2114_v44, %v2097_v56 }
 0x409   : > { %v2138_v37 = vadd.f32 %v2133_v55, %v2117_v15 }
 0x40e   : > { %v2135_v31 = vpop.permute.xlu0 %2134  ;;  %v2257_v22 = vpop.permute.xlu2 %2256 }
 0x40f   : > { %v2154_v45 = vpop.permute.xlu1 %2153  ;;  %v2139_v34 = vadd.f32 %v2135_v31, %v2118_v54 }
 0x410   : > { %v2159_v36 = vadd.f32 %v2154_v45, %v2138_v37  ;;  %v2397_v37 = vmul.f32 %v2394_v24, %v4305_v63 }
 0x411   : > { %v2160_v23 = vadd.f32 %v2156_v18, %v2139_v34  ;;  %v2227_v18 = vmul.f32 %v2225_v0, %v3554_v29  ;;  %v2402_v34 = vrot.slane %v2396_v61, 6 }
 0x413   : > { %v2233_v46 = vrot.slane %v2227_v18, 4 }
 0x415   : > { %v2236_v50 = vsel %vm211_vm0, %v2233_v46, %v2235_v39  ;;  %v2234_v54 = vsel %vm211_vm0, %v2232_v58, %v2233_v46 }
 0x416   : > { %v2175_v51 = vpop.permute.xlu0 %2174  ;;  %v4759_v6 = vpop.permute.xlu2 %2425  ;;  %v2241_v21 = vadd.f32 %v2236_v50, %v2079_v12  ;;  %v2240_v31 = vadd.f32 %v2234_v54, %v4750_v38 }
 0x417   : > { %v2177_v27 = vpop.permute.xlu1 %2176  ;;  %v2180_v47 = vadd.f32 %v2175_v51, %v2159_v36  ;;  %v2404_v36 = vrot.slane %v2397_v37, 6 }
 0x418   : > { %v2181_v30 = vadd.f32 %v2177_v27, %v2160_v23  ;;  %v2395_v27 = vmul.f32 %v2394_v24, %v4170_v48 }
 0x41a   : > { %v2202_v2 = vadd.f32 %v2198_v62, %v2181_v30  ;;  %v2266_v62 = vadd.f32 %v2259_v35, %v2241_v21  ;;  %v2265_v35 = vadd.f32 %v2257_v22, %v2240_v31  ;;  %v2401_v63 = vrot.slane %v2395_v27, 6 }
 0x41c   : > { %v2403_v0 = vsel %vm300_vm3, %v2401_v63, %v2402_v34 }
 0x41e   : > { %v2196_v53 = vpop.permute.xlu0 %2195  ;;  %v2311_v40 = vpop.permute.xlu2 %2310 }
 0x41f   : > { %v2219_v43 = vpop.permute.xlu1 %2218  ;;  %v4757_v13 = vadd.f32 %v2196_v53, %v2180_v47 }
 0x420   : > { %v2223_v49 = vadd.f32 %v2219_v43, %v2202_v2  ;;  %v2405_v2 = vsel %vm300_vm3, %v2402_v34, %v2404_v36 }
 0x422   : > { %v2409_v43 = vadd.f32 %v2405_v2, %v2223_v49 }
 0x424   : > { %v2430_v22 = vadd.f32 %v4759_v6, %v2409_v43 }
 0x426   : > { %v2261_v55 = vpop.permute.xlu0 %2260  ;;  %v2307_v7 = vpop.permute.xlu2 %2306 }
 0x427   : > { %v2217_v25 = vpop.permute.xlu1 %2216  ;;  %v2267_v16 = vadd.f32 %v2261_v55, %v2242_v10 }
 0x42e   : > { %v2284_v42 = vpop.permute.xlu0 %2283  ;;  %v4763_v26 = vpop.permute.xlu2 %2444 }
 0x42f   : > { %v2286_v41 = vpop.permute.xlu1 %2285  ;;  %v2291_v28 = vadd.f32 %v2284_v42, %v2266_v62 }
 0x430   : > { %v2292_v4 = vadd.f32 %v2286_v41, %v2267_v16  ;;  %v2222_v41 = vadd.f32 %v2217_v25, %v4757_v13 }
 0x432   : > { %v2317_v1 = vadd.f32 %v2311_v40, %v2292_v4 }
 0x436   : > { %v2282_v8 = vpop.permute.xlu0 %2281  ;;  %v2359_v59 = vpop.permute.xlu2 %2358 }
 0x437   : > { %v2309_v11 = vpop.permute.xlu1 %2308  ;;  %v2290_v51 = vadd.f32 %v2282_v8, %v2265_v35 }
 0x438   : > { %v2316_v33 = vadd.f32 %v2309_v11, %v2291_v28 }
 0x439   : > { %v2315_v40 = vadd.f32 %v2307_v7, %v2290_v51 }
 0x43e   : > { %v4761_v3 = vpop.permute.xlu0 %2423  ;;  %v2489_v5 = vpop.permute.xlu2 %2488 }
 0x43f   : > { %v2447_v57 = vpop.permute.xlu1 %2446 }
 0x440   : > { %v2451_v48 = vadd.f32 %v2447_v57, %v2430_v22 }
 0x446   : > { %v2334_v60 = vpop.permute.xlu0 %2333  ;;  %v2386_v23 = vpop.permute.xlu2 %2385 }
 0x447   : > { %v2336_v17 = vpop.permute.xlu1 %2335  ;;  %v2341_v12 = vadd.f32 %v2334_v60, %v2316_v33 }
 0x448   : > { %v2342_v15 = vadd.f32 %v2336_v17, %v2317_v1  ;;  %v2408_v17 = vadd.f32 %v2403_v0, %v2222_v41 }
 0x449   : > { %v2366_v29 = vadd.f32 %v2359_v59, %v2341_v12 }
 0x44a   : > { %v2429_v59 = vadd.f32 %v4761_v3, %v2408_v17 }
 0x44c   : > { %v2450_v13 = vadd.f32 %v4763_v26, %v2429_v59 }
 0x44e   : > { %v2468_v19 = vpop.permute.xlu0 %2467  ;;  %v2382_v7 = vpop.permute.xlu2 %2381 }
 0x44f   : > { %v2332_v14 = vpop.permute.xlu1 %2331  ;;  %v2472_v18 = vadd.f32 %v2468_v19, %v2451_v48  ;;  %v2563_v19 = vstv %s2562_s22 }
 0x450   : > { %v2340_v11 = vadd.f32 %v2332_v14, %v2315_v40 }
 0x451   : > { %v2493_v46 = vadd.f32 %v2489_v5, %v2472_v18 }
 0x456   : > { %v2361_v56 = vpop.permute.xlu0 %2360  ;;  %v2529_v62 = vpop.permute.xlu2 %2528 }
 0x457   : > { %v2466_v44 = vpop.permute.xlu1 %2465  ;;  %v2367_v45 = vadd.f32 %v2361_v56, %v2342_v15 }
 0x458   : > { %v2471_v10 = vadd.f32 %v2466_v44, %v2450_v13 }
 0x459   : > { %v2392_v47 = vadd.f32 %v2386_v23, %v2367_v45 }
 0x45b   : > { %v2554_v38 = vrot.slane %v2392_v47, 1 }
 0x45e   : > { %v2357_v30 = vpop.permute.xlu0 %2356 }
 0x45f   : > { %v2384_v53 = vpop.permute.xlu1 %2383  ;;  %v2365_v60 = vadd.f32 %v2357_v30, %v2340_v11 }
 0x460   : > { %v2391_v55 = vadd.f32 %v2384_v53, %v2366_v29 }
 0x461   : > { %v2390_v39 = vadd.f32 %v2382_v7, %v2365_v60 }
 0x462   : > { %v2552_v42 = vrot.slane %v2391_v55, 1 }
 0x463   : > { %v2551_v6 = vrot.slane %v2390_v39, 1 }
 0x464   : > { %v2555_v8 = vsel %vm309_vm7, %v2552_v42, %v2554_v38 }
 0x465   : > { %v2553_v52 = vsel %vm309_vm7, %v2551_v6, %v2552_v42  ;;  %vm2666_vm7 = vcmask 392192  }
 0x466   : > { %v2487_v49 = vpop.permute.xlu0 %2486 }
 0x467   : > { %v2510_v20 = vpop.permute.xlu1 %2509  ;;  %v2492_v16 = vadd.f32 %v2487_v49, %v2471_v10 }
 0x468   : > { %v2514_v25 = vadd.f32 %v2510_v20, %v2493_v46 }
 0x46e   : > { %v2508_v21 = vpop.permute.xlu0 %2507 }
 0x46f   : > { %v2531_v14 = vpop.permute.xlu1 %2530  ;;  %v2513_v4 = vadd.f32 %v2508_v21, %v2492_v16 }
 0x470   : > { %v2535_v57 = vadd.f32 %v2531_v14, %v2514_v25 }
 0x471   : > { %v2534_v58 = vadd.f32 %v2529_v62, %v2513_v4 }
 0x472   : > { %v2559_v50 = vadd.f32 %v2555_v8, %v2535_v57 }
 0x473   : > { %v2558_v5 = vadd.f32 %v2553_v52, %v2534_v58 }
 0x474   : > { %v2561_v3 = vadd.f32 %v2559_v50, %v4491_v32 }
 0x475   : > { %v2560_v26 = vadd.f32 %v2558_v5, %v4488_v9 }
 0x476   : > { %v2565_v24 = vadd.f32 %v2563_v19, %v2561_v3 }
 0x477   : > { %v2564_v1 = vadd.f32 %v2563_v19, %v2560_v26 }
 0x478   : > { %v2900_v28 = vmul.f32 -1.442695, %v2565_v24 }
 0x479   : > { %v2899_v56 = vmul.f32 -1.442695, %v2564_v1 }
 0x47a   : > { %2987 = vpow2.f32 %v2900_v28 }
 0x47b   : > { %2989 = vpow2.f32 %v2899_v56 }
 0x480   : > { %v2988_v61 = vpop.eup %2987 }
 0x481   : > { %v2573_v44 = vadd.f32 1.0, %v2988_v61  ;;  %v2990_v33 = vpop.eup %2989 }
 0x482   : > { %v2572_v15 = vadd.f32 1.0, %v2990_v33 }
 0x483   : > { %2991 = vrcp.f32 %v2573_v44  ;;  %v2600_v32 = vand.u32 2147483648, %v2573_v44  ;;  %v2598_v34 = vand.u32 2147483647, %v2573_v44  ;;  %vm2594_vm13 = vweird.f32 %v2573_v44 }
 0x484   : > { %2993 = vrcp.f32 %v2572_v15  ;;  %v2585_v27 = vand.u32 2147483648, %v2572_v15  ;;  %v2583_v29 = vand.u32 2147483647, %v2572_v15  ;;  %vm2579_vm2 = vweird.f32 %v2572_v15 }
 0x485   : > { %v2601_v36 = vor.u32 1.1754944e-38, %v2600_v32  ;;  %vm2599_vm15 = vcmp.eq.f32.partialorder %v2598_v34, 8.507059e+37 }
 0x486   : > { %v2586_v55 = vor.u32 1.1754944e-38, %v2585_v27  ;;  %vm2584_vm4 = vcmp.eq.f32.partialorder %v2583_v29, 8.507059e+37 }
 0x489   : > { %v2992_v54 = vpop.eup %2991 }
 0x48a   : > { %v2590_v37 = vmul.f32 %v2992_v54, %v2573_v44  ;;  %v2994_v12 = vpop.eup %2993  ;;  %vm2595_vm12 = vweird.f32 %v2992_v54 }
 0x48b   : > { %v2575_v35 = vmul.f32 %v2994_v12, %v2572_v15  ;;  %vm2596_vm14 = vmor %vm2594_vm13, %vm2595_vm12  ;;  %vm2580_vm1 = vweird.f32 %v2994_v12 }
 0x48c   : > { %v2591_v31 = vsub.f32 1.0, %v2590_v37  ;;  %vm2581_vm3 = vmor %vm2579_vm2, %vm2580_vm1 }
 0x48d   : > { %v2576_v23 = vsub.f32 1.0, %v2575_v35 }
 0x48e   : > { %v2592_v45 = vmul.f32 %v2992_v54, %v2591_v31  ;;  %v4923_v31 = vld [vmem:[#allocation12_spill] sm:$0xff] }
 0x48f   : > { %v2577_v47 = vmul.f32 %v2994_v12, %v2576_v23 }
 0x490   : > { %v2593_v9 = vadd.f32 %v2992_v54, %v2592_v45 }
 0x491   : > { %v2578_v43 = vadd.f32 %v2994_v12, %v2577_v47 }
 0x492   : > { %v2597_v51 = vsel %vm2596_vm14, %v2992_v54, %v2593_v9 }
 0x493   : > { %v2602_v30 = vsel %vm2599_vm15, %v2601_v36, %v2597_v51  ;;  %v2582_v63 = vsel %vm2581_vm3, %v2994_v12, %v2578_v43 }
 0x494   : > { %v2638_v2 = vrot.slane %v2602_v30, 2  ;;  %v2634_v53 = vrot.slane %v2602_v30, 1  ;;  %v2587_v40 = vsel %vm2584_vm4, %v2586_v55, %v2582_v63  ;;  %v2642_v42 = vrot.slane %v2602_v30, 3 }
 0x495   : > { %v2605_v38 = vrot.slane %v2587_v40, 1  ;;  %v2609_v41 = vrot.slane %v2587_v40, 2  ;;  %v2646_v22 = vrot.slane %v2602_v30, 4  ;;  %v2613_v11 = vrot.slane %v2587_v40, 3 }
 0x496   : > { %2639 = vrot.lane.b32.xlu1 %v2638_v2, %s3119_s12  ;;  %2635 = vrot.lane.b32.xlu0 %v2634_v53, %s4916_s27  ;;  %v2650_v8 = vrot.slane %v2602_v30, 5  ;;  %v2617_v48 = vrot.slane %v2587_v40, 4  ;;  %v2654_v0 = vrot.slane %v2602_v30, 6  ;;  %v2621_v60 = vrot.slane %v2587_v40, 5 }
 0x497   : > { %2606 = vrot.lane.b32.xlu2 %v2605_v38, %s4916_s27  ;;  %v2658_v17 = vrot.slane %v2602_v30, 7  ;;  %v2625_v20 = vrot.slane %v2587_v40, 6  ;;  %v2629_v18 = vrot.slane %v2587_v40, 7  ;;  %s3060_s27 = scalar_lea.hbm %s4847_s3, 16 }
 0x498   : > { %p3062_p10 = scmp.lt.s32.totalorder %s3060_s27, %s3056_s7 }
 0x49a   : > { %p3063_p2 = por %p3062_p10, %p3061_p9 }
 0x49c   : > { %p3064_p11 = pnand %p3063_p2, %p3059_p8 }
 0x49e   : > { %2643 = vrot.lane.b32.xlu0 %v2642_v42, %s4917_s5  ;;  %2610 = vrot.lane.b32.xlu1 %v2609_v41, %s3119_s12  ;;  %s4921_s12 = smov 112  }
 0x49f   : > { %2647 = vrot.lane.b32.xlu2 %v2646_v22, %s4918_s6 }
 0x4a6   : > { %2614 = vrot.lane.b32.xlu0 %v2613_v11, %s4917_s5  ;;  %2651 = vrot.lane.b32.xlu1 %v2650_v8, %s4919_s19 }
 0x4a7   : > { %2618 = vrot.lane.b32.xlu2 %v2617_v48, %s4918_s6 }
 0x4ae   : > { %2655 = vrot.lane.b32.xlu0 %v2654_v0, %s4920_s24  ;;  %2622 = vrot.lane.b32.xlu1 %v2621_v60, %s4919_s19 }
 0x4af   : > { %2659 = vrot.lane.b32.xlu2 %v2658_v17, %s4921_s12 }
 0x4b6   : > { %2626 = vrot.lane.b32.xlu0 %v2625_v20, %s4920_s24  ;;  %2630 = vrot.lane.b32.xlu1 %v2629_v18, %s4921_s12 }
 0x4f1   : > { %v2607_v49 = vpop.permute.xlu2 %2606 }
 0x4f2   : > { %v2663_v62 = vsel %vm2662_vm5, %v2587_v40, %v2607_v49 }
 0x4f9   : > { %v2648_v39 = vpop.permute.xlu2 %2647 }
 0x501   : > { %v2619_v14 = vpop.permute.xlu2 %2618 }
 0x508   : > { %v2640_v59 = vpop.permute.xlu1 %2639  ;;  %v2636_v7 = vpop.permute.xlu0 %2635 }
 0x509   : > { %v2676_v6 = vsel %vm2662_vm5, %v2602_v30, %v2636_v7  ;;  %v2660_v3 = vpop.permute.xlu2 %2659 }
 0x50a   : > { %v2677_v57 = vsel %vm2664_vm6, %v2676_v6, %v2640_v59 }
 0x510   : > { %v2611_v46 = vpop.permute.xlu1 %2610  ;;  %v2644_v13 = vpop.permute.xlu0 %2643 }
 0x511   : > { %v2678_v16 = vsel %vm2666_vm7, %v2677_v57, %v2644_v13  ;;  %v2665_v58 = vsel %vm2664_vm6, %v2663_v62, %v2611_v46 }
 0x512   : > { %v2679_v50 = vsel %vm2668_vm8, %v2678_v16, %v2648_v39 }
 0x518   : > { %v2652_v25 = vpop.permute.xlu1 %2651  ;;  %v2615_v10 = vpop.permute.xlu0 %2614 }
 0x519   : > { %v2680_v52 = vsel %vm2670_vm9, %v2679_v50, %v2652_v25  ;;  %v2667_v24 = vsel %vm2666_vm7, %v2665_v58, %v2615_v10 }
 0x51a   : > { %v2669_v28 = vsel %vm2668_vm8, %v2667_v24, %v2619_v14 }
 0x520   : > { %v2623_v21 = vpop.permute.xlu1 %2622  ;;  %v2656_v19 = vpop.permute.xlu0 %2655 }
 0x521   : > { %v2681_v4 = vsel %vm2672_vm10, %v2680_v52, %v2656_v19  ;;  %v2671_v1 = vsel %vm2670_vm9, %v2669_v28, %v2623_v21 }
 0x522   : > { %v2682_v5 = vsel %vm2674_vm11, %v2681_v4, %v2660_v3 }
 0x523   : > { %v2684_v26 = vperm.slane %v2682_v5, 0 }
 0x525   : > { %v2687_v15 = vrot.slane %v2684_v26, 4 }
 0x528   : > { %v2631_v56 = vpop.permute.xlu1 %2630  ;;  %v2627_v61 = vpop.permute.xlu0 %2626 }
 0x529   : > { %v2673_v44 = vsel %vm2672_vm10, %v2671_v1, %v2627_v61 }
 0x52a   : > { %v2675_v33 = vsel %vm2674_vm11, %v2673_v44, %v2631_v56 }
 0x52b   : > { %v2683_v54 = vperm.slane %v2675_v33, 0 }
 0x52d   : > { %v2688_v37 = vsel %vm211_vm0, %v2683_v54, %v2687_v15 }
 0x52e   : > { %v2690_v32 = vmul.f32 %v2688_v37, %v4923_v31 }
 0x530   : > { %2691 = vst [vmem:[%s203_s28] sm:$0xff] %v2690_v32 }
 0x531   : > { %3067 = shalt.err (!%p3064_p11)
}
 0x532   : > { %2914 = dma.vmem_to_hbm [thread:$0]  (%p3222_p3), %s2707_s1, 128, %s2709_s23, %s2693_s26  }
 0x533 PF: > { %s2720_s4 = sand.u32 1, %s3098_s14   ;;  %p4924_p12 = scmp.ge.s32.totalorder %s3110_s17, 2 }
 0x534   : > { %s2721_s19 = scalar_lea.sflag [#allocation5], %s2720_s4 }
 0x535   : > { %p2925_p13 = pnand %p4924_p12, %p3191_p6 }
 0x537   : > { %p2926_p0 = pneg %p2925_p13 }
 0x539   : > { %3093 = dma.done.wait (%p2926_p0), %s2721_s19, 128  }
 0x53a   : > { %3095 = vsyncadd (%p2926_p0), %s2721_s19, 4294967168  ;;  %p18_p5 = scmp.ge.s32.totalorder %s3207_s25, 4   ;;  %s4925_s14 = smov %s3102_s15 }
 0x53b   : > { %s4926_s15 = smov %s3106_s16  ;;  %s4927_s16 = smov %s3217_s29 }
 0x53c   : > { %s4928_s17 = smov %s3207_s25  ;;  %20 = sbr.rel (!%p18_p5) target bundleno = 8 (0x8), region = 82 }
 0x541   :  { %2727 = vsyncpa [#allocation4], 1 }
 0x542   :  { %2729 = vsyncpa [#allocation4 + $0x1], 1 }
 0x543   :  { %2730 = vsyncpa [#allocation5], 1 }
 0x544   :  { %2732 = vsyncpa [#allocation5 + $0x1], 1 }
 0x545   :  { %2733 = vsyncpa [#allocation6], 1 }
 0x546   :  { %2735 = vsyncpa [#allocation6 + $0x1], 1 }

</bundles_post_ra>
